<compile_context>
chip_gen: v5e
topology: v5e:2x2
jax: 0.10.0
libtpu: 0.0.40
codegen_flags: <defaults>
</compile_context>

<pallas_src>
import jax
import jax.numpy as jnp
from jax.experimental import pallas as pl
from jax.experimental.pallas import tpu as pltpu

_K = 7  # ConvTranspose2d kernel_size == stride == 7, padding == 0


def _convt_bn_gelu_kernel(x_ref, w_ref, b_ref, u_ref, m_ref, o_ref):
    """Fused ConvTranspose2d(7, s=7) + folded BatchNorm + exact GELU.

    x_ref: (1, Cin, TH, W)     input rows, natural NCHW layout
    w_ref: (1, 7*CG, 7*Cin)    folded weight, rows (kh, co), cols (kw, ci)
    b_ref: (1, CG, 1)          folded per-channel bias (float32)
    u_ref: (W, 7W)             one-hot lane upsample, U[w, l] = [l // 7 == w]
    m_ref: (7*Cin, 7W)         kw selection mask, M[kw*Cin+ci, l] = [l % 7 == kw]
    o_ref: (1, CG, TH, 49W)    output block, lane index = kh*7W + 7w + kw
    """
    th = x_ref.shape[2]
    cg = o_ref.shape[1]

    w_all = w_ref[0]            # (7*CG, 7*Cin), resident for the whole step
    bias = b_ref[0]             # (CG, 1) float32
    u = u_ref[...]              # (W, 7W)
    kwm = m_ref[...]            # (7*Cin, 7W)
    inv_sqrt2 = jnp.float32(0.7071067811865476)

    for h in range(th):         # static unroll; TH <= 8 in the tiled path
        xs = x_ref[0, :, h, :]                                    # (Cin, W)
        # One-hot lane upsample: xup[ci, l] = x[ci, h, l // 7]
        xup = jnp.dot(xs, u)                                      # (Cin, 7W)
        # Spread operand, rows ordered (kw, ci):
        #   xsp[kw*Cin+ci, 7w+kw'] = x[ci, h, w] * [kw' == kw]
        xsp = jnp.concatenate([xup] * _K, axis=0) * kwm           # (7Cin, 7W)
        # One MXU dot gives every (kh, co) tap for this row:
        #   acc[kh*CG+co, 7w+kw] = sum_ci Wf[ci, co, kh, kw] * x[ci, h, w]
        acc = jnp.dot(w_all, xsp,
                      preferred_element_type=jnp.float32)         # (7CG, 7W)
        # Assemble the lane-dense 49W row: lane = kh*7W + 7w + kw.
        row = jnp.concatenate(
            [acc[kh * cg:(kh + 1) * cg, :] for kh in range(_K)], axis=-1)  # (CG, 49W)
        z = row + bias
        # Exact (erf-based) GELU, matching torch.nn.functional.gelu default.
        y = 0.5 * z * (1.0 + jax.lax.erf(z * inv_sqrt2))
        o_ref[0, :, h, :] = y.astype(o_ref.dtype)


def unflatten_forward(x, weight, bias, gamma, beta, running_mean, running_var,
                      eps=1e-5):
    """y = gelu(batch_norm(conv_transpose2d(x, weight, bias, stride=7)))."""
    n, cin, h, w = x.shape
    assert weight.shape[0] == cin and weight.shape[2:] == (_K, _K)
    cout = weight.shape[1]
    itemsize = x.dtype.itemsize

    # Fold inference-mode BatchNorm (running stats) into the conv weight/bias.
    # TODO(synk): training-mode BatchNorm (batch statistics over N*7H*7W) is
    # not fused; it would need an extra reduction pass over the conv output.
    scale = (gamma / jnp.sqrt(running_var + eps)).astype(jnp.float32)        # (Cout,)
    shift = beta.astype(jnp.float32) - running_mean.astype(jnp.float32) * scale
    wf = weight.astype(jnp.float32) * scale[None, :, None, None]             # (Cin,Cout,7,7)
    bias_f = bias.astype(jnp.float32) * scale + shift                        # (Cout,)

    # Row tile along H: the output block's sublane dim must be a multiple of 8
    # (f32/bf16 tiling) or equal to H.  TH=8 maximizes pipelined grid steps.
    th = 8 if h % 8 == 0 else h

    # Channel grouping: ensure ~>=8 grid steps so v7x's 2 TensorCores each see
    # >=4 pipelined steps (the spread work duplicated per group is tiny).
    ng = 1
    while n * (h // th) * ng < 8 and cout % (ng * 2) == 0:
        ng *= 2
    cg = cout // ng

    # Folded weight, rows ordered (kh, co_local) per group, cols (kw, ci):
    #   wg[g, kh*cg + c, kw*cin + ci] = wf[ci, g*cg + c, kh, kw]
    wt = jnp.transpose(wf, (1, 2, 3, 0))                   # (Cout, 7, 7, Cin)
    wg = wt.reshape(ng, cg, _K, _K, cin)
    wg = jnp.transpose(wg, (0, 2, 1, 3, 4)).reshape(ng, _K * cg, _K * cin)
    wg = wg.astype(x.dtype)
    bias_g = bias_f.reshape(ng, cg, 1)                     # float32

    # One-hot lane upsample matrix: U[w, l] = 1 iff l // 7 == w   (l = 7w + kw)
    lane = jnp.arange(_K * w)
    u_mat = (lane[None, :] // _K == jnp.arange(w)[:, None]).astype(x.dtype)  # (W, 7W)
    # kw selection mask, rows (kw, ci): M[kw*cin + ci, l] = 1 iff l % 7 == kw
    kw_of_row = jnp.arange(_K * cin)[:, None] // cin
    kw_mask = ((lane[None, :] % _K) == kw_of_row).astype(x.dtype)            # (7Cin, 7W)

    lanes_out = _K * _K * w
    grid = (n, h // th, ng)

    # VMEM budget (double-buffered in/out blocks + resident constants); keep
    # well under v7x's 64 MiB physical VMEM.
    def _pad(v, m):
        return -(-v // m) * m
    blk_in = cin * _pad(th, 8) * _pad(w, 128) * itemsize
    blk_out = cg * _pad(th, 8) * _pad(lanes_out, 128) * itemsize
    const_b = (wg.size + u_mat.size + kw_mask.size) * itemsize + bias_g.size * 4
    vmem_limit = int(min(48 * 1024 * 1024,
                         max(16 * 1024 * 1024,
                             4 * (blk_in + blk_out) + 2 * const_b)))

    # Advisory cost: bytes are dominated by the 49x-amplified output write.
    out_elems = n * cout * h * w * _K * _K
    macs = n * h * (cin * w * (_K * w)                      # lane upsample
                    + ng * (_K * cg) * (_K * cin) * (_K * w))   # fused conv
    cost = pl.CostEstimate(
        flops=int(2 * macs + 12 * out_elems),
        transcendentals=int(out_elems),
        bytes_accessed=int(out_elems * itemsize + ng * x.size * itemsize
                           + (wg.size + u_mat.size + kw_mask.size) * itemsize))

    out4 = pl.pallas_call(
        _convt_bn_gelu_kernel,
        out_shape=jax.ShapeDtypeStruct((n, cout, h, lanes_out), x.dtype),
        grid=grid,
        in_specs=[
            pl.BlockSpec((1, cin, th, w), lambda i, j, g: (i, 0, j, 0)),
            pl.BlockSpec((1, _K * cg, _K * cin), lambda i, j, g: (g, 0, 0)),
            pl.BlockSpec((1, cg, 1), lambda i, j, g: (g, 0, 0)),
            pl.BlockSpec((w, _K * w), lambda i, j, g: (0, 0)),
            pl.BlockSpec((_K * cin, _K * w), lambda i, j, g: (0, 0)),
        ],
        out_specs=pl.BlockSpec((1, cg, th, lanes_out),
                               lambda i, j, g: (i, g, j, 0)),
        compiler_params=pltpu.CompilerParams(
            dimension_semantics=("parallel", "parallel", "parallel"),
            vmem_limit_bytes=vmem_limit),
        cost_estimate=cost,
    )(x, wg, bias_g, u_mat, kw_mask)

    # (N, Cout, H, 49W) -> (N, Cout, 7H, 7W) is a free, contiguous reshape.
    return out4.reshape(n, cout, _K * h, _K * w)


def _reference(x, weight, bias, gamma, beta, running_mean, running_var, eps=1e-5):
    """Pure-JAX reference: ConvTranspose2d(7,7,s=7) + eval-mode BN + erf GELU."""
    n, cin, h, w = x.shape
    cout = weight.shape[1]
    y = jnp.einsum("nihw,iokl->nohkwl", x, weight)        # (N,Cout,H,7,W,7)
    y = y.reshape(n, cout, _K * h, _K * w) + bias[None, :, None, None]
    s = gamma / jnp.sqrt(running_var + eps)
    y = (y - running_mean[None, :, None, None]) * s[None, :, None, None] \
        + beta[None, :, None, None]
    return 0.5 * y * (1.0 + jax.lax.erf(y / jnp.sqrt(2.0)))


if __name__ == "__main__":
    key = jax.random.PRNGKey(0)
    k_x, k_w, k_b, k_g, k_be, k_m, k_v = jax.random.split(key, 7)

    N, C, H, W = 2, 4, 16, 16          # small demo; output is (2, 4, 112, 112)
    x = jax.random.normal(k_x, (N, C, H, W), jnp.float32)

    fan_in = C * _K * _K
    weight = jax.random.normal(k_w, (C, C, _K, _K), jnp.float32) / jnp.sqrt(fan_in)
    bias = 0.1 * jax.random.normal(k_b, (C,), jnp.float32)
    gamma = 1.0 + 0.1 * jax.random.normal(k_g, (C,), jnp.float32)
    beta = 0.1 * jax.random.normal(k_be, (C,), jnp.float32)
    running_mean = 0.1 * jax.random.normal(k_m, (C,), jnp.float32)
    running_var = jax.random.uniform(k_v, (C,), jnp.float32, 0.5, 1.5)

    y = unflatten_forward(x, weight, bias, gamma, beta, running_mean, running_var)
    y = jax.block_until_ready(y)

    y_ref = _reference(x, weight, bias, gamma, beta, running_mean, running_var)
    assert y.shape == (N, C, _K * H, _K * W), y.shape
    # Tolerance covers MXU f32 matmul (multi-pass bf16) vs XLA einsum accumulation.
    err = float(jnp.max(jnp.abs(y - y_ref)))
    assert jnp.allclose(y, y_ref, atol=2e-3, rtol=2e-3), err

    print("KERNEL_OK")
</pallas_src>

<mosaic_0001>
module attributes {stable_mosaic.version = 11 : i64} {
  func.func @_convt_bn_gelu_kernel(%arg0: i32, %arg1: i32, %arg2: i32, %arg3: memref<1x4x8x16xf32, #tpu.memory_space<vmem>>, %arg4: memref<1x14x28xf32, #tpu.memory_space<vmem>>, %arg5: memref<1x2x1xf32, #tpu.memory_space<vmem>>, %arg6: memref<16x112xf32, #tpu.memory_space<vmem>>, %arg7: memref<28x112xf32, #tpu.memory_space<vmem>>, %arg8: memref<1x2x8x784xf32, #tpu.memory_space<vmem>>) attributes {dimension_semantics = [#tpu.dimension_semantics<parallel>, #tpu.dimension_semantics<parallel>, #tpu.dimension_semantics<parallel>], iteration_bounds = array<i64: 2, 2, 2>, scalar_prefetch = 0 : i64, scratch_operands = 0 : i64, tpu.core_type = #tpu.core_type<tc>, window_params = [{transform_indices = @transform_0, window_bounds = array<i64: 1, 4, 8, 16>}, {transform_indices = @transform_1, window_bounds = array<i64: 1, 14, 28>}, {transform_indices = @transform_2, window_bounds = array<i64: 1, 2, 1>}, {pipeline_mode = #tpu.pipeline_mode<synchronous>, transform_indices = @transform_3, window_bounds = array<i64: 16, 112>}, {pipeline_mode = #tpu.pipeline_mode<synchronous>, transform_indices = @transform_4, window_bounds = array<i64: 28, 112>}, {transform_indices = @transform_5, window_bounds = array<i64: 1, 2, 8, 784>}]} {
    %c0 = arith.constant 0 : index
    %c0_0 = arith.constant 0 : index
    %c0_1 = arith.constant 0 : index
    %0 = vector.load %arg4[%c0, %c0_0, %c0_1] : memref<1x14x28xf32, #tpu.memory_space<vmem>>, vector<1x14x28xf32>
    %1 = vector.shape_cast %0 : vector<1x14x28xf32> to vector<14x28xf32>
    %c0_2 = arith.constant 0 : index
    %c0_3 = arith.constant 0 : index
    %c0_4 = arith.constant 0 : index
    %2 = vector.load %arg5[%c0_2, %c0_3, %c0_4] : memref<1x2x1xf32, #tpu.memory_space<vmem>>, vector<1x2x1xf32>
    %3 = vector.shape_cast %2 : vector<1x2x1xf32> to vector<2x1xf32>
    %c0_5 = arith.constant 0 : index
    %c0_6 = arith.constant 0 : index
    %4 = vector.load %arg6[%c0_5, %c0_6] : memref<16x112xf32, #tpu.memory_space<vmem>>, vector<16x112xf32>
    %c0_7 = arith.constant 0 : index
    %c0_8 = arith.constant 0 : index
    %5 = vector.load %arg7[%c0_7, %c0_8] : memref<28x112xf32, #tpu.memory_space<vmem>>, vector<28x112xf32>
    %c0_9 = arith.constant 0 : index
    %c0_10 = arith.constant 0 : index
    %c0_11 = arith.constant 0 : index
    %c0_12 = arith.constant 0 : index
    %6 = vector.load %arg3[%c0_9, %c0_10, %c0_11, %c0_12] : memref<1x4x8x16xf32, #tpu.memory_space<vmem>>, vector<1x4x1x16xf32>
    %7 = vector.shape_cast %6 : vector<1x4x1x16xf32> to vector<4x16xf32>
    %cst = arith.constant dense<0.000000e+00> : vector<4x112xf32>
    %8 = tpu.matmul %7, %4, %cst {dimension_numbers = #tpu.dot_dimension_numbers<[1], [0], [0], [1], [0, 0, 1, 1], [], []>} : vector<4x16xf32>, vector<16x112xf32>, vector<4x112xf32> -> vector<4x112xf32>
    %9 = tpu.concatenate %8, %8, %8, %8, %8, %8, %8 in 0 : vector<4x112xf32>, vector<4x112xf32>, vector<4x112xf32>, vector<4x112xf32>, vector<4x112xf32>, vector<4x112xf32>, vector<4x112xf32> -> vector<28x112xf32>
    %10 = arith.mulf %9, %5 : vector<28x112xf32>
    %cst_13 = arith.constant dense<0.000000e+00> : vector<14x112xf32>
    %11 = tpu.matmul %1, %10, %cst_13 {dimension_numbers = #tpu.dot_dimension_numbers<[1], [0], [0], [1], [0, 0, 1, 1], [], []>} : vector<14x28xf32>, vector<28x112xf32>, vector<14x112xf32> -> vector<14x112xf32>
    %12 = vector.extract_strided_slice %11 {offsets = [0, 0], sizes = [2, 112], strides = [1, 1]} : vector<14x112xf32> to vector<2x112xf32>
    %13 = vector.extract_strided_slice %11 {offsets = [2, 0], sizes = [2, 112], strides = [1, 1]} : vector<14x112xf32> to vector<2x112xf32>
    %14 = vector.extract_strided_slice %11 {offsets = [4, 0], sizes = [2, 112], strides = [1, 1]} : vector<14x112xf32> to vector<2x112xf32>
    %15 = vector.extract_strided_slice %11 {offsets = [6, 0], sizes = [2, 112], strides = [1, 1]} : vector<14x112xf32> to vector<2x112xf32>
    %16 = vector.extract_strided_slice %11 {offsets = [8, 0], sizes = [2, 112], strides = [1, 1]} : vector<14x112xf32> to vector<2x112xf32>
    %17 = vector.extract_strided_slice %11 {offsets = [10, 0], sizes = [2, 112], strides = [1, 1]} : vector<14x112xf32> to vector<2x112xf32>
    %18 = vector.extract_strided_slice %11 {offsets = [12, 0], sizes = [2, 112], strides = [1, 1]} : vector<14x112xf32> to vector<2x112xf32>
    %19 = tpu.concatenate %12, %13, %14, %15, %16, %17, %18 in 1 : vector<2x112xf32>, vector<2x112xf32>, vector<2x112xf32>, vector<2x112xf32>, vector<2x112xf32>, vector<2x112xf32>, vector<2x112xf32> -> vector<2x784xf32>
    %20 = vector.broadcast %3 : vector<2x1xf32> to vector<2x784xf32>
    %21 = arith.addf %19, %20 : vector<2x784xf32>
    %cst_14 = arith.constant 5.000000e-01 : f32
    %22 = vector.broadcast %cst_14 : f32 to vector<2x784xf32>
    %23 = arith.mulf %22, %21 : vector<2x784xf32>
    %cst_15 = arith.constant 0.707106769 : f32
    %24 = vector.broadcast %cst_15 : f32 to vector<2x784xf32>
    %25 = arith.mulf %21, %24 : vector<2x784xf32>
    %26 = math.erf %25 : vector<2x784xf32>
    %cst_16 = arith.constant 1.000000e+00 : f32
    %27 = vector.broadcast %cst_16 : f32 to vector<2x784xf32>
    %28 = arith.addf %27, %26 : vector<2x784xf32>
    %29 = arith.mulf %23, %28 : vector<2x784xf32>
    %c0_17 = arith.constant 0 : index
    %c0_18 = arith.constant 0 : index
    %c0_19 = arith.constant 0 : index
    %c0_20 = arith.constant 0 : index
    %30 = vector.load %arg8[%c0_17, %c0_18, %c0_19, %c0_20] : memref<1x2x8x784xf32, #tpu.memory_space<vmem>>, vector<1x2x1x784xf32>
    %31 = vector.shape_cast %30 : vector<1x2x1x784xf32> to vector<2x784xf32>
    %32 = vector.shape_cast %29 : vector<2x784xf32> to vector<1x2x1x784xf32>
    tpu.vector_store %arg8[%c0_17, %c0_18, %c0_19, %c0_20], %32 {strides = array<i32>} : memref<1x2x8x784xf32, #tpu.memory_space<vmem>>, vector<1x2x1x784xf32>,
    %c0_21 = arith.constant 0 : index
    %c0_22 = arith.constant 0 : index
    %c1 = arith.constant 1 : index
    %c0_23 = arith.constant 0 : index
    %33 = vector.load %arg3[%c0_21, %c0_22, %c1, %c0_23] : memref<1x4x8x16xf32, #tpu.memory_space<vmem>>, vector<1x4x1x16xf32>
    %34 = vector.shape_cast %33 : vector<1x4x1x16xf32> to vector<4x16xf32>
    %cst_24 = arith.constant dense<0.000000e+00> : vector<4x112xf32>
    %35 = tpu.matmul %34, %4, %cst_24 {dimension_numbers = #tpu.dot_dimension_numbers<[1], [0], [0], [1], [0, 0, 1, 1], [], []>} : vector<4x16xf32>, vector<16x112xf32>, vector<4x112xf32> -> vector<4x112xf32>
    %36 = tpu.concatenate %35, %35, %35, %35, %35, %35, %35 in 0 : vector<4x112xf32>, vector<4x112xf32>, vector<4x112xf32>, vector<4x112xf32>, vector<4x112xf32>, vector<4x112xf32>, vector<4x112xf32> -> vector<28x112xf32>
    %37 = arith.mulf %36, %5 : vector<28x112xf32>
    %cst_25 = arith.constant dense<0.000000e+00> : vector<14x112xf32>
    %38 = tpu.matmul %1, %37, %cst_25 {dimension_numbers = #tpu.dot_dimension_numbers<[1], [0], [0], [1], [0, 0, 1, 1], [], []>} : vector<14x28xf32>, vector<28x112xf32>, vector<14x112xf32> -> vector<14x112xf32>
    %39 = vector.extract_strided_slice %38 {offsets = [0, 0], sizes = [2, 112], strides = [1, 1]} : vector<14x112xf32> to vector<2x112xf32>
    %40 = vector.extract_strided_slice %38 {offsets = [2, 0], sizes = [2, 112], strides = [1, 1]} : vector<14x112xf32> to vector<2x112xf32>
    %41 = vector.extract_strided_slice %38 {offsets = [4, 0], sizes = [2, 112], strides = [1, 1]} : vector<14x112xf32> to vector<2x112xf32>
    %42 = vector.extract_strided_slice %38 {offsets = [6, 0], sizes = [2, 112], strides = [1, 1]} : vector<14x112xf32> to vector<2x112xf32>
    %43 = vector.extract_strided_slice %38 {offsets = [8, 0], sizes = [2, 112], strides = [1, 1]} : vector<14x112xf32> to vector<2x112xf32>
    %44 = vector.extract_strided_slice %38 {offsets = [10, 0], sizes = [2, 112], strides = [1, 1]} : vector<14x112xf32> to vector<2x112xf32>
    %45 = vector.extract_strided_slice %38 {offsets = [12, 0], sizes = [2, 112], strides = [1, 1]} : vector<14x112xf32> to vector<2x112xf32>
    %46 = tpu.concatenate %39, %40, %41, %42, %43, %44, %45 in 1 : vector<2x112xf32>, vector<2x112xf32>, vector<2x112xf32>, vector<2x112xf32>, vector<2x112xf32>, vector<2x112xf32>, vector<2x112xf32> -> vector<2x784xf32>
    %47 = vector.broadcast %3 : vector<2x1xf32> to vector<2x784xf32>
    %48 = arith.addf %46, %47 : vector<2x784xf32>
    %cst_26 = arith.constant 5.000000e-01 : f32
    %49 = vector.broadcast %cst_26 : f32 to vector<2x784xf32>
    %50 = arith.mulf %49, %48 : vector<2x784xf32>
    %cst_27 = arith.constant 0.707106769 : f32
    %51 = vector.broadcast %cst_27 : f32 to vector<2x784xf32>
    %52 = arith.mulf %48, %51 : vector<2x784xf32>
    %53 = math.erf %52 : vector<2x784xf32>
    %cst_28 = arith.constant 1.000000e+00 : f32
    %54 = vector.broadcast %cst_28 : f32 to vector<2x784xf32>
    %55 = arith.addf %54, %53 : vector<2x784xf32>
    %56 = arith.mulf %50, %55 : vector<2x784xf32>
    %c0_29 = arith.constant 0 : index
    %c0_30 = arith.constant 0 : index
    %c1_31 = arith.constant 1 : index
    %c0_32 = arith.constant 0 : index
    %57 = vector.load %arg8[%c0_29, %c0_30, %c1_31, %c0_32] : memref<1x2x8x784xf32, #tpu.memory_space<vmem>>, vector<1x2x1x784xf32>
    %58 = vector.shape_cast %57 : vector<1x2x1x784xf32> to vector<2x784xf32>
    %59 = vector.shape_cast %56 : vector<2x784xf32> to vector<1x2x1x784xf32>
    tpu.vector_store %arg8[%c0_29, %c0_30, %c1_31, %c0_32], %59 {strides = array<i32>} : memref<1x2x8x784xf32, #tpu.memory_space<vmem>>, vector<1x2x1x784xf32>,
    %c0_33 = arith.constant 0 : index
    %c0_34 = arith.constant 0 : index
    %c2 = arith.constant 2 : index
    %c0_35 = arith.constant 0 : index
    %60 = vector.load %arg3[%c0_33, %c0_34, %c2, %c0_35] : memref<1x4x8x16xf32, #tpu.memory_space<vmem>>, vector<1x4x1x16xf32>
    %61 = vector.shape_cast %60 : vector<1x4x1x16xf32> to vector<4x16xf32>
    %cst_36 = arith.constant dense<0.000000e+00> : vector<4x112xf32>
    %62 = tpu.matmul %61, %4, %cst_36 {dimension_numbers = #tpu.dot_dimension_numbers<[1], [0], [0], [1], [0, 0, 1, 1], [], []>} : vector<4x16xf32>, vector<16x112xf32>, vector<4x112xf32> -> vector<4x112xf32>
    %63 = tpu.concatenate %62, %62, %62, %62, %62, %62, %62 in 0 : vector<4x112xf32>, vector<4x112xf32>, vector<4x112xf32>, vector<4x112xf32>, vector<4x112xf32>, vector<4x112xf32>, vector<4x112xf32> -> vector<28x112xf32>
    %64 = arith.mulf %63, %5 : vector<28x112xf32>
    %cst_37 = arith.constant dense<0.000000e+00> : vector<14x112xf32>
    %65 = tpu.matmul %1, %64, %cst_37 {dimension_numbers = #tpu.dot_dimension_numbers<[1], [0], [0], [1], [0, 0, 1, 1], [], []>} : vector<14x28xf32>, vector<28x112xf32>, vector<14x112xf32> -> vector<14x112xf32>
    %66 = vector.extract_strided_slice %65 {offsets = [0, 0], sizes = [2, 112], strides = [1, 1]} : vector<14x112xf32> to vector<2x112xf32>
    %67 = vector.extract_strided_slice %65 {offsets = [2, 0], sizes = [2, 112], strides = [1, 1]} : vector<14x112xf32> to vector<2x112xf32>
    %68 = vector.extract_strided_slice %65 {offsets = [4, 0], sizes = [2, 112], strides = [1, 1]} : vector<14x112xf32> to vector<2x112xf32>
    %69 = vector.extract_strided_slice %65 {offsets = [6, 0], sizes = [2, 112], strides = [1, 1]} : vector<14x112xf32> to vector<2x112xf32>
    %70 = vector.extract_strided_slice %65 {offsets = [8, 0], sizes = [2, 112], strides = [1, 1]} : vector<14x112xf32> to vector<2x112xf32>
    %71 = vector.extract_strided_slice %65 {offsets = [10, 0], sizes = [2, 112], strides = [1, 1]} : vector<14x112xf32> to vector<2x112xf32>
    %72 = vector.extract_strided_slice %65 {offsets = [12, 0], sizes = [2, 112], strides = [1, 1]} : vector<14x112xf32> to vector<2x112xf32>
    %73 = tpu.concatenate %66, %67, %68, %69, %70, %71, %72 in 1 : vector<2x112xf32>, vector<2x112xf32>, vector<2x112xf32>, vector<2x112xf32>, vector<2x112xf32>, vector<2x112xf32>, vector<2x112xf32> -> vector<2x784xf32>
    %74 = vector.broadcast %3 : vector<2x1xf32> to vector<2x784xf32>
    %75 = arith.addf %73, %74 : vector<2x784xf32>
    %cst_38 = arith.constant 5.000000e-01 : f32
    %76 = vector.broadcast %cst_38 : f32 to vector<2x784xf32>
    %77 = arith.mulf %76, %75 : vector<2x784xf32>
    %cst_39 = arith.constant 0.707106769 : f32
    %78 = vector.broadcast %cst_39 : f32 to vector<2x784xf32>
    %79 = arith.mulf %75, %78 : vector<2x784xf32>
    %80 = math.erf %79 : vector<2x784xf32>
    %cst_40 = arith.constant 1.000000e+00 : f32
    %81 = vector.broadcast %cst_40 : f32 to vector<2x784xf32>
    %82 = arith.addf %81, %80 : vector<2x784xf32>
    %83 = arith.mulf %77, %82 : vector<2x784xf32>
    %c0_41 = arith.constant 0 : index
    %c0_42 = arith.constant 0 : index
    %c2_43 = arith.constant 2 : index
    %c0_44 = arith.constant 0 : index
    %84 = vector.load %arg8[%c0_41, %c0_42, %c2_43, %c0_44] : memref<1x2x8x784xf32, #tpu.memory_space<vmem>>, vector<1x2x1x784xf32>
    %85 = vector.shape_cast %84 : vector<1x2x1x784xf32> to vector<2x784xf32>
    %86 = vector.shape_cast %83 : vector<2x784xf32> to vector<1x2x1x784xf32>
    tpu.vector_store %arg8[%c0_41, %c0_42, %c2_43, %c0_44], %86 {strides = array<i32>} : memref<1x2x8x784xf32, #tpu.memory_space<vmem>>, vector<1x2x1x784xf32>,
    %c0_45 = arith.constant 0 : index
    %c0_46 = arith.constant 0 : index
    %c3 = arith.constant 3 : index
    %c0_47 = arith.constant 0 : index
    %87 = vector.load %arg3[%c0_45, %c0_46, %c3, %c0_47] : memref<1x4x8x16xf32, #tpu.memory_space<vmem>>, vector<1x4x1x16xf32>
    %88 = vector.shape_cast %87 : vector<1x4x1x16xf32> to vector<4x16xf32>
    %cst_48 = arith.constant dense<0.000000e+00> : vector<4x112xf32>
    %89 = tpu.matmul %88, %4, %cst_48 {dimension_numbers = #tpu.dot_dimension_numbers<[1], [0], [0], [1], [0, 0, 1, 1], [], []>} : vector<4x16xf32>, vector<16x112xf32>, vector<4x112xf32> -> vector<4x112xf32>
    %90 = tpu.concatenate %89, %89, %89, %89, %89, %89, %89 in 0 : vector<4x112xf32>, vector<4x112xf32>, vector<4x112xf32>, vector<4x112xf32>, vector<4x112xf32>, vector<4x112xf32>, vector<4x112xf32> -> vector<28x112xf32>
    %91 = arith.mulf %90, %5 : vector<28x112xf32>
    %cst_49 = arith.constant dense<0.000000e+00> : vector<14x112xf32>
    %92 = tpu.matmul %1, %91, %cst_49 {dimension_numbers = #tpu.dot_dimension_numbers<[1], [0], [0], [1], [0, 0, 1, 1], [], []>} : vector<14x28xf32>, vector<28x112xf32>, vector<14x112xf32> -> vector<14x112xf32>
    %93 = vector.extract_strided_slice %92 {offsets = [0, 0], sizes = [2, 112], strides = [1, 1]} : vector<14x112xf32> to vector<2x112xf32>
    %94 = vector.extract_strided_slice %92 {offsets = [2, 0], sizes = [2, 112], strides = [1, 1]} : vector<14x112xf32> to vector<2x112xf32>
    %95 = vector.extract_strided_slice %92 {offsets = [4, 0], sizes = [2, 112], strides = [1, 1]} : vector<14x112xf32> to vector<2x112xf32>
    %96 = vector.extract_strided_slice %92 {offsets = [6, 0], sizes = [2, 112], strides = [1, 1]} : vector<14x112xf32> to vector<2x112xf32>
    %97 = vector.extract_strided_slice %92 {offsets = [8, 0], sizes = [2, 112], strides = [1, 1]} : vector<14x112xf32> to vector<2x112xf32>
    %98 = vector.extract_strided_slice %92 {offsets = [10, 0], sizes = [2, 112], strides = [1, 1]} : vector<14x112xf32> to vector<2x112xf32>
    %99 = vector.extract_strided_slice %92 {offsets = [12, 0], sizes = [2, 112], strides = [1, 1]} : vector<14x112xf32> to vector<2x112xf32>
    %100 = tpu.concatenate %93, %94, %95, %96, %97, %98, %99 in 1 : vector<2x112xf32>, vector<2x112xf32>, vector<2x112xf32>, vector<2x112xf32>, vector<2x112xf32>, vector<2x112xf32>, vector<2x112xf32> -> vector<2x784xf32>
    %101 = vector.broadcast %3 : vector<2x1xf32> to vector<2x784xf32>
    %102 = arith.addf %100, %101 : vector<2x784xf32>
    %cst_50 = arith.constant 5.000000e-01 : f32
    %103 = vector.broadcast %cst_50 : f32 to vector<2x784xf32>
    %104 = arith.mulf %103, %102 : vector<2x784xf32>
    %cst_51 = arith.constant 0.707106769 : f32
    %105 = vector.broadcast %cst_51 : f32 to vector<2x784xf32>
    %106 = arith.mulf %102, %105 : vector<2x784xf32>
    %107 = math.erf %106 : vector<2x784xf32>
    %cst_52 = arith.constant 1.000000e+00 : f32
    %108 = vector.broadcast %cst_52 : f32 to vector<2x784xf32>
    %109 = arith.addf %108, %107 : vector<2x784xf32>
    %110 = arith.mulf %104, %109 : vector<2x784xf32>
    %c0_53 = arith.constant 0 : index
    %c0_54 = arith.constant 0 : index
    %c3_55 = arith.constant 3 : index
    %c0_56 = arith.constant 0 : index
    %111 = vector.load %arg8[%c0_53, %c0_54, %c3_55, %c0_56] : memref<1x2x8x784xf32, #tpu.memory_space<vmem>>, vector<1x2x1x784xf32>
    %112 = vector.shape_cast %111 : vector<1x2x1x784xf32> to vector<2x784xf32>
    %113 = vector.shape_cast %110 : vector<2x784xf32> to vector<1x2x1x784xf32>
    tpu.vector_store %arg8[%c0_53, %c0_54, %c3_55, %c0_56], %113 {strides = array<i32>} : memref<1x2x8x784xf32, #tpu.memory_space<vmem>>, vector<1x2x1x784xf32>,
    %c0_57 = arith.constant 0 : index
    %c0_58 = arith.constant 0 : index
    %c4 = arith.constant 4 : index
    %c0_59 = arith.constant 0 : index
    %114 = vector.load %arg3[%c0_57, %c0_58, %c4, %c0_59] : memref<1x4x8x16xf32, #tpu.memory_space<vmem>>, vector<1x4x1x16xf32>
    %115 = vector.shape_cast %114 : vector<1x4x1x16xf32> to vector<4x16xf32>
    %cst_60 = arith.constant dense<0.000000e+00> : vector<4x112xf32>
    %116 = tpu.matmul %115, %4, %cst_60 {dimension_numbers = #tpu.dot_dimension_numbers<[1], [0], [0], [1], [0, 0, 1, 1], [], []>} : vector<4x16xf32>, vector<16x112xf32>, vector<4x112xf32> -> vector<4x112xf32>
    %117 = tpu.concatenate %116, %116, %116, %116, %116, %116, %116 in 0 : vector<4x112xf32>, vector<4x112xf32>, vector<4x112xf32>, vector<4x112xf32>, vector<4x112xf32>, vector<4x112xf32>, vector<4x112xf32> -> vector<28x112xf32>
    %118 = arith.mulf %117, %5 : vector<28x112xf32>
    %cst_61 = arith.constant dense<0.000000e+00> : vector<14x112xf32>
    %119 = tpu.matmul %1, %118, %cst_61 {dimension_numbers = #tpu.dot_dimension_numbers<[1], [0], [0], [1], [0, 0, 1, 1], [], []>} : vector<14x28xf32>, vector<28x112xf32>, vector<14x112xf32> -> vector<14x112xf32>
    %120 = vector.extract_strided_slice %119 {offsets = [0, 0], sizes = [2, 112], strides = [1, 1]} : vector<14x112xf32> to vector<2x112xf32>
    %121 = vector.extract_strided_slice %119 {offsets = [2, 0], sizes = [2, 112], strides = [1, 1]} : vector<14x112xf32> to vector<2x112xf32>
    %122 = vector.extract_strided_slice %119 {offsets = [4, 0], sizes = [2, 112], strides = [1, 1]} : vector<14x112xf32> to vector<2x112xf32>
    %123 = vector.extract_strided_slice %119 {offsets = [6, 0], sizes = [2, 112], strides = [1, 1]} : vector<14x112xf32> to vector<2x112xf32>
    %124 = vector.extract_strided_slice %119 {offsets = [8, 0], sizes = [2, 112], strides = [1, 1]} : vector<14x112xf32> to vector<2x112xf32>
    %125 = vector.extract_strided_slice %119 {offsets = [10, 0], sizes = [2, 112], strides = [1, 1]} : vector<14x112xf32> to vector<2x112xf32>
    %126 = vector.extract_strided_slice %119 {offsets = [12, 0], sizes = [2, 112], strides = [1, 1]} : vector<14x112xf32> to vector<2x112xf32>
    %127 = tpu.concatenate %120, %121, %122, %123, %124, %125, %126 in 1 : vector<2x112xf32>, vector<2x112xf32>, vector<2x112xf32>, vector<2x112xf32>, vector<2x112xf32>, vector<2x112xf32>, vector<2x112xf32> -> vector<2x784xf32>
    %128 = vector.broadcast %3 : vector<2x1xf32> to vector<2x784xf32>
    %129 = arith.addf %127, %128 : vector<2x784xf32>
    %cst_62 = arith.constant 5.000000e-01 : f32
    %130 = vector.broadcast %cst_62 : f32 to vector<2x784xf32>
    %131 = arith.mulf %130, %129 : vector<2x784xf32>
    %cst_63 = arith.constant 0.707106769 : f32
    %132 = vector.broadcast %cst_63 : f32 to vector<2x784xf32>
    %133 = arith.mulf %129, %132 : vector<2x784xf32>
    %134 = math.erf %133 : vector<2x784xf32>
    %cst_64 = arith.constant 1.000000e+00 : f32
    %135 = vector.broadcast %cst_64 : f32 to vector<2x784xf32>
    %136 = arith.addf %135, %134 : vector<2x784xf32>
    %137 = arith.mulf %131, %136 : vector<2x784xf32>
    %c0_65 = arith.constant 0 : index
    %c0_66 = arith.constant 0 : index
    %c4_67 = arith.constant 4 : index
    %c0_68 = arith.constant 0 : index
    %138 = vector.load %arg8[%c0_65, %c0_66, %c4_67, %c0_68] : memref<1x2x8x784xf32, #tpu.memory_space<vmem>>, vector<1x2x1x784xf32>
    %139 = vector.shape_cast %138 : vector<1x2x1x784xf32> to vector<2x784xf32>
    %140 = vector.shape_cast %137 : vector<2x784xf32> to vector<1x2x1x784xf32>
    tpu.vector_store %arg8[%c0_65, %c0_66, %c4_67, %c0_68], %140 {strides = array<i32>} : memref<1x2x8x784xf32, #tpu.memory_space<vmem>>, vector<1x2x1x784xf32>,
    %c0_69 = arith.constant 0 : index
    %c0_70 = arith.constant 0 : index
    %c5 = arith.constant 5 : index
    %c0_71 = arith.constant 0 : index
    %141 = vector.load %arg3[%c0_69, %c0_70, %c5, %c0_71] : memref<1x4x8x16xf32, #tpu.memory_space<vmem>>, vector<1x4x1x16xf32>
    %142 = vector.shape_cast %141 : vector<1x4x1x16xf32> to vector<4x16xf32>
    %cst_72 = arith.constant dense<0.000000e+00> : vector<4x112xf32>
    %143 = tpu.matmul %142, %4, %cst_72 {dimension_numbers = #tpu.dot_dimension_numbers<[1], [0], [0], [1], [0, 0, 1, 1], [], []>} : vector<4x16xf32>, vector<16x112xf32>, vector<4x112xf32> -> vector<4x112xf32>
    %144 = tpu.concatenate %143, %143, %143, %143, %143, %143, %143 in 0 : vector<4x112xf32>, vector<4x112xf32>, vector<4x112xf32>, vector<4x112xf32>, vector<4x112xf32>, vector<4x112xf32>, vector<4x112xf32> -> vector<28x112xf32>
    %145 = arith.mulf %144, %5 : vector<28x112xf32>
    %cst_73 = arith.constant dense<0.000000e+00> : vector<14x112xf32>
    %146 = tpu.matmul %1, %145, %cst_73 {dimension_numbers = #tpu.dot_dimension_numbers<[1], [0], [0], [1], [0, 0, 1, 1], [], []>} : vector<14x28xf32>, vector<28x112xf32>, vector<14x112xf32> -> vector<14x112xf32>
    %147 = vector.extract_strided_slice %146 {offsets = [0, 0], sizes = [2, 112], strides = [1, 1]} : vector<14x112xf32> to vector<2x112xf32>
    %148 = vector.extract_strided_slice %146 {offsets = [2, 0], sizes = [2, 112], strides = [1, 1]} : vector<14x112xf32> to vector<2x112xf32>
    %149 = vector.extract_strided_slice %146 {offsets = [4, 0], sizes = [2, 112], strides = [1, 1]} : vector<14x112xf32> to vector<2x112xf32>
    %150 = vector.extract_strided_slice %146 {offsets = [6, 0], sizes = [2, 112], strides = [1, 1]} : vector<14x112xf32> to vector<2x112xf32>
    %151 = vector.extract_strided_slice %146 {offsets = [8, 0], sizes = [2, 112], strides = [1, 1]} : vector<14x112xf32> to vector<2x112xf32>
    %152 = vector.extract_strided_slice %146 {offsets = [10, 0], sizes = [2, 112], strides = [1, 1]} : vector<14x112xf32> to vector<2x112xf32>
    %153 = vector.extract_strided_slice %146 {offsets = [12, 0], sizes = [2, 112], strides = [1, 1]} : vector<14x112xf32> to vector<2x112xf32>
    %154 = tpu.concatenate %147, %148, %149, %150, %151, %152, %153 in 1 : vector<2x112xf32>, vector<2x112xf32>, vector<2x112xf32>, vector<2x112xf32>, vector<2x112xf32>, vector<2x112xf32>, vector<2x112xf32> -> vector<2x784xf32>
    %155 = vector.broadcast %3 : vector<2x1xf32> to vector<2x784xf32>
    %156 = arith.addf %154, %155 : vector<2x784xf32>
    %cst_74 = arith.constant 5.000000e-01 : f32
    %157 = vector.broadcast %cst_74 : f32 to vector<2x784xf32>
    %158 = arith.mulf %157, %156 : vector<2x784xf32>
    %cst_75 = arith.constant 0.707106769 : f32
    %159 = vector.broadcast %cst_75 : f32 to vector<2x784xf32>
    %160 = arith.mulf %156, %159 : vector<2x784xf32>
    %161 = math.erf %160 : vector<2x784xf32>
    %cst_76 = arith.constant 1.000000e+00 : f32
    %162 = vector.broadcast %cst_76 : f32 to vector<2x784xf32>
    %163 = arith.addf %162, %161 : vector<2x784xf32>
    %164 = arith.mulf %158, %163 : vector<2x784xf32>
    %c0_77 = arith.constant 0 : index
    %c0_78 = arith.constant 0 : index
    %c5_79 = arith.constant 5 : index
    %c0_80 = arith.constant 0 : index
    %165 = vector.load %arg8[%c0_77, %c0_78, %c5_79, %c0_80] : memref<1x2x8x784xf32, #tpu.memory_space<vmem>>, vector<1x2x1x784xf32>
    %166 = vector.shape_cast %165 : vector<1x2x1x784xf32> to vector<2x784xf32>
    %167 = vector.shape_cast %164 : vector<2x784xf32> to vector<1x2x1x784xf32>
    tpu.vector_store %arg8[%c0_77, %c0_78, %c5_79, %c0_80], %167 {strides = array<i32>} : memref<1x2x8x784xf32, #tpu.memory_space<vmem>>, vector<1x2x1x784xf32>,
    %c0_81 = arith.constant 0 : index
    %c0_82 = arith.constant 0 : index
    %c6 = arith.constant 6 : index
    %c0_83 = arith.constant 0 : index
    %168 = vector.load %arg3[%c0_81, %c0_82, %c6, %c0_83] : memref<1x4x8x16xf32, #tpu.memory_space<vmem>>, vector<1x4x1x16xf32>
    %169 = vector.shape_cast %168 : vector<1x4x1x16xf32> to vector<4x16xf32>
    %cst_84 = arith.constant dense<0.000000e+00> : vector<4x112xf32>
    %170 = tpu.matmul %169, %4, %cst_84 {dimension_numbers = #tpu.dot_dimension_numbers<[1], [0], [0], [1], [0, 0, 1, 1], [], []>} : vector<4x16xf32>, vector<16x112xf32>, vector<4x112xf32> -> vector<4x112xf32>
    %171 = tpu.concatenate %170, %170, %170, %170, %170, %170, %170 in 0 : vector<4x112xf32>, vector<4x112xf32>, vector<4x112xf32>, vector<4x112xf32>, vector<4x112xf32>, vector<4x112xf32>, vector<4x112xf32> -> vector<28x112xf32>
    %172 = arith.mulf %171, %5 : vector<28x112xf32>
    %cst_85 = arith.constant dense<0.000000e+00> : vector<14x112xf32>
    %173 = tpu.matmul %1, %172, %cst_85 {dimension_numbers = #tpu.dot_dimension_numbers<[1], [0], [0], [1], [0, 0, 1, 1], [], []>} : vector<14x28xf32>, vector<28x112xf32>, vector<14x112xf32> -> vector<14x112xf32>
    %174 = vector.extract_strided_slice %173 {offsets = [0, 0], sizes = [2, 112], strides = [1, 1]} : vector<14x112xf32> to vector<2x112xf32>
    %175 = vector.extract_strided_slice %173 {offsets = [2, 0], sizes = [2, 112], strides = [1, 1]} : vector<14x112xf32> to vector<2x112xf32>
    %176 = vector.extract_strided_slice %173 {offsets = [4, 0], sizes = [2, 112], strides = [1, 1]} : vector<14x112xf32> to vector<2x112xf32>
    %177 = vector.extract_strided_slice %173 {offsets = [6, 0], sizes = [2, 112], strides = [1, 1]} : vector<14x112xf32> to vector<2x112xf32>
    %178 = vector.extract_strided_slice %173 {offsets = [8, 0], sizes = [2, 112], strides = [1, 1]} : vector<14x112xf32> to vector<2x112xf32>
    %179 = vector.extract_strided_slice %173 {offsets = [10, 0], sizes = [2, 112], strides = [1, 1]} : vector<14x112xf32> to vector<2x112xf32>
    %180 = vector.extract_strided_slice %173 {offsets = [12, 0], sizes = [2, 112], strides = [1, 1]} : vector<14x112xf32> to vector<2x112xf32>
    %181 = tpu.concatenate %174, %175, %176, %177, %178, %179, %180 in 1 : vector<2x112xf32>, vector<2x112xf32>, vector<2x112xf32>, vector<2x112xf32>, vector<2x112xf32>, vector<2x112xf32>, vector<2x112xf32> -> vector<2x784xf32>
    %182 = vector.broadcast %3 : vector<2x1xf32> to vector<2x784xf32>
    %183 = arith.addf %181, %182 : vector<2x784xf32>
    %cst_86 = arith.constant 5.000000e-01 : f32
    %184 = vector.broadcast %cst_86 : f32 to vector<2x784xf32>
    %185 = arith.mulf %184, %183 : vector<2x784xf32>
    %cst_87 = arith.constant 0.707106769 : f32
    %186 = vector.broadcast %cst_87 : f32 to vector<2x784xf32>
    %187 = arith.mulf %183, %186 : vector<2x784xf32>
    %188 = math.erf %187 : vector<2x784xf32>
    %cst_88 = arith.constant 1.000000e+00 : f32
    %189 = vector.broadcast %cst_88 : f32 to vector<2x784xf32>
    %190 = arith.addf %189, %188 : vector<2x784xf32>
    %191 = arith.mulf %185, %190 : vector<2x784xf32>
    %c0_89 = arith.constant 0 : index
    %c0_90 = arith.constant 0 : index
    %c6_91 = arith.constant 6 : index
    %c0_92 = arith.constant 0 : index
    %192 = vector.load %arg8[%c0_89, %c0_90, %c6_91, %c0_92] : memref<1x2x8x784xf32, #tpu.memory_space<vmem>>, vector<1x2x1x784xf32>
    %193 = vector.shape_cast %192 : vector<1x2x1x784xf32> to vector<2x784xf32>
    %194 = vector.shape_cast %191 : vector<2x784xf32> to vector<1x2x1x784xf32>
    tpu.vector_store %arg8[%c0_89, %c0_90, %c6_91, %c0_92], %194 {strides = array<i32>} : memref<1x2x8x784xf32, #tpu.memory_space<vmem>>, vector<1x2x1x784xf32>,
    %c0_93 = arith.constant 0 : index
    %c0_94 = arith.constant 0 : index
    %c7 = arith.constant 7 : index
    %c0_95 = arith.constant 0 : index
    %195 = vector.load %arg3[%c0_93, %c0_94, %c7, %c0_95] : memref<1x4x8x16xf32, #tpu.memory_space<vmem>>, vector<1x4x1x16xf32>
    %196 = vector.shape_cast %195 : vector<1x4x1x16xf32> to vector<4x16xf32>
    %cst_96 = arith.constant dense<0.000000e+00> : vector<4x112xf32>
    %197 = tpu.matmul %196, %4, %cst_96 {dimension_numbers = #tpu.dot_dimension_numbers<[1], [0], [0], [1], [0, 0, 1, 1], [], []>} : vector<4x16xf32>, vector<16x112xf32>, vector<4x112xf32> -> vector<4x112xf32>
    %198 = tpu.concatenate %197, %197, %197, %197, %197, %197, %197 in 0 : vector<4x112xf32>, vector<4x112xf32>, vector<4x112xf32>, vector<4x112xf32>, vector<4x112xf32>, vector<4x112xf32>, vector<4x112xf32> -> vector<28x112xf32>
    %199 = arith.mulf %198, %5 : vector<28x112xf32>
    %cst_97 = arith.constant dense<0.000000e+00> : vector<14x112xf32>
    %200 = tpu.matmul %1, %199, %cst_97 {dimension_numbers = #tpu.dot_dimension_numbers<[1], [0], [0], [1], [0, 0, 1, 1], [], []>} : vector<14x28xf32>, vector<28x112xf32>, vector<14x112xf32> -> vector<14x112xf32>
    %201 = vector.extract_strided_slice %200 {offsets = [0, 0], sizes = [2, 112], strides = [1, 1]} : vector<14x112xf32> to vector<2x112xf32>
    %202 = vector.extract_strided_slice %200 {offsets = [2, 0], sizes = [2, 112], strides = [1, 1]} : vector<14x112xf32> to vector<2x112xf32>
    %203 = vector.extract_strided_slice %200 {offsets = [4, 0], sizes = [2, 112], strides = [1, 1]} : vector<14x112xf32> to vector<2x112xf32>
    %204 = vector.extract_strided_slice %200 {offsets = [6, 0], sizes = [2, 112], strides = [1, 1]} : vector<14x112xf32> to vector<2x112xf32>
    %205 = vector.extract_strided_slice %200 {offsets = [8, 0], sizes = [2, 112], strides = [1, 1]} : vector<14x112xf32> to vector<2x112xf32>
    %206 = vector.extract_strided_slice %200 {offsets = [10, 0], sizes = [2, 112], strides = [1, 1]} : vector<14x112xf32> to vector<2x112xf32>
    %207 = vector.extract_strided_slice %200 {offsets = [12, 0], sizes = [2, 112], strides = [1, 1]} : vector<14x112xf32> to vector<2x112xf32>
    %208 = tpu.concatenate %201, %202, %203, %204, %205, %206, %207 in 1 : vector<2x112xf32>, vector<2x112xf32>, vector<2x112xf32>, vector<2x112xf32>, vector<2x112xf32>, vector<2x112xf32>, vector<2x112xf32> -> vector<2x784xf32>
    %209 = vector.broadcast %3 : vector<2x1xf32> to vector<2x784xf32>
    %210 = arith.addf %208, %209 : vector<2x784xf32>
    %cst_98 = arith.constant 5.000000e-01 : f32
    %211 = vector.broadcast %cst_98 : f32 to vector<2x784xf32>
    %212 = arith.mulf %211, %210 : vector<2x784xf32>
    %cst_99 = arith.constant 0.707106769 : f32
    %213 = vector.broadcast %cst_99 : f32 to vector<2x784xf32>
    %214 = arith.mulf %210, %213 : vector<2x784xf32>
    %215 = math.erf %214 : vector<2x784xf32>
    %cst_100 = arith.constant 1.000000e+00 : f32
    %216 = vector.broadcast %cst_100 : f32 to vector<2x784xf32>
    %217 = arith.addf %216, %215 : vector<2x784xf32>
    %218 = arith.mulf %212, %217 : vector<2x784xf32>
    %c0_101 = arith.constant 0 : index
    %c0_102 = arith.constant 0 : index
    %c7_103 = arith.constant 7 : index
    %c0_104 = arith.constant 0 : index
    %219 = vector.load %arg8[%c0_101, %c0_102, %c7_103, %c0_104] : memref<1x2x8x784xf32, #tpu.memory_space<vmem>>, vector<1x2x1x784xf32>
    %220 = vector.shape_cast %219 : vector<1x2x1x784xf32> to vector<2x784xf32>
    %221 = vector.shape_cast %218 : vector<2x784xf32> to vector<1x2x1x784xf32>
    tpu.vector_store %arg8[%c0_101, %c0_102, %c7_103, %c0_104], %221 {strides = array<i32>} : memref<1x2x8x784xf32, #tpu.memory_space<vmem>>, vector<1x2x1x784xf32>,
    return
  }
  func.func @transform_0(%arg0: i32, %arg1: i32, %arg2: i32) -> (i32, i32, i32, i32) {
    %c0_i32 = arith.constant 0 : i32
    %c0_i32_0 = arith.constant 0 : i32
    %c0_i32_1 = arith.constant 0 : i32
    return %arg0, %c0_i32, %arg1, %c0_i32_0 : i32, i32, i32, i32
  }
  func.func @transform_1(%arg0: i32, %arg1: i32, %arg2: i32) -> (i32, i32, i32) {
    %c0_i32 = arith.constant 0 : i32
    %c0_i32_0 = arith.constant 0 : i32
    %c0_i32_1 = arith.constant 0 : i32
    return %arg2, %c0_i32, %c0_i32_0 : i32, i32, i32
  }
  func.func @transform_2(%arg0: i32, %arg1: i32, %arg2: i32) -> (i32, i32, i32) {
    %c0_i32 = arith.constant 0 : i32
    %c0_i32_0 = arith.constant 0 : i32
    %c0_i32_1 = arith.constant 0 : i32
    return %arg2, %c0_i32, %c0_i32_0 : i32, i32, i32
  }
  func.func @transform_3(%arg0: i32, %arg1: i32, %arg2: i32) -> (i32, i32) {
    %c0_i32 = arith.constant 0 : i32
    %c0_i32_0 = arith.constant 0 : i32
    %c0_i32_1 = arith.constant 0 : i32
    return %c0_i32, %c0_i32_0 : i32, i32
  }
  func.func @transform_4(%arg0: i32, %arg1: i32, %arg2: i32) -> (i32, i32) {
    %c0_i32 = arith.constant 0 : i32
    %c0_i32_0 = arith.constant 0 : i32
    %c0_i32_1 = arith.constant 0 : i32
    return %c0_i32, %c0_i32_0 : i32, i32
  }
  func.func @transform_5(%arg0: i32, %arg1: i32, %arg2: i32) -> (i32, i32, i32, i32) {
    %c0_i32 = arith.constant 0 : i32
    %c0_i32_0 = arith.constant 0 : i32
    return %arg0, %arg2, %arg1, %c0_i32 : i32, i32, i32, i32
  }
}

</mosaic_0001>

<bundles_post_ra>
// kernel: tpu_custom_call.1
= control target key start
LH: loop header
LB: loop body
LE: loop exit
PB: predicated region body
PF: predicated region fallthrough
CT: control target
= control target key end

     0   :  { %s8361_s0 = inlined_call_operand.hbm [shape: f32[2,4,16,16], index: 0, kind: input, shape index: {}]   ;;  %s8362_s1 = inlined_call_operand.vmem [shape: f32[2,14,28], index: 1, kind: input, shape index: {}]   ;;  %s8363_s2 = inlined_call_operand.vmem [shape: f32[2,2,1], index: 2, kind: input, shape index: {}]   ;;  %s8364_s3 = inlined_call_operand.vmem [shape: f32[16,112], index: 3, kind: input, shape index: {}]   ;;  %s8365_s4 = inlined_call_operand.vmem [shape: f32[28,112], index: 4, kind: input, shape index: {}]   ;;  %s8366_s5 = inlined_call_operand.hbm [shape: f32[2,4,16,784], index: 5, kind: output, shape index: {}]  }
   0x1   :  { %8409 = sst [smem:[#allocation27_spill]] %s8366_s5 }
   0x2   :  { %10 = vsyncpa [#allocation3], 0 }
   0x3   :  { %12 = vsyncpa [#allocation3 + $0x1], 0 }
   0x4   :  { %13 = vsyncpa [#allocation4], 0 }
   0x5   :  { %15 = vsyncpa [#allocation4 + $0x1], 0  ;;  %s4697_s18 = smov 0   ;;  %s4699_s19 = smov 0  }
   0x6   :  { %s4701_s20 = smov 0   ;;  %s4703_s21 = smov 0  }
   0x7   :  { %s4705_s22 = smov 0   ;;  %s4707_s23 = smov 0  }
   0x8   :  { %s4709_s24 = smov 0   ;;  %s4711_s25 = smov 0  }
   0x9   :  { %s4713_s26 = smov 0   ;;  %s4715_s27 = smov 0  }
   0xa   :  { %s4717_s28 = smov 0   ;;  %s4719_s29 = smov 0  }
   0xb   :  { %s4721_s30 = smov 0  }
   0xc LB: > { %8410 = sst [smem:[#allocation8_spill]] %s4604_s18  ;;  %s4094_s6 = sadd.s32 4294967295, %s4652_s30   ;;  %s4652_s30 = sphi %s4721_s30, %s21_s30   ;;  %s4648_s29 = sphi %s4719_s29, %s8714_s29   ;;  %s4644_s28 = sphi %s4717_s28, %s8713_s28   ;;  %s4640_s27 = sphi %s4715_s27, %s8702_s27   ;;  %s4636_s26 = sphi %s4713_s26, %s8712_s26   ;;  %s4632_s25 = sphi %s4711_s25, %s8711_s25   ;;  %s4628_s24 = sphi %s4709_s24, %s8700_s24   ;;  %s4624_s23 = sphi %s4707_s23, %s8710_s23   ;;  %s4620_s22 = sphi %s4705_s22, %s8709_s22   ;;  %s4616_s21 = sphi %s4703_s21, %s8708_s21   ;;  %s4612_s20 = sphi %s4701_s20, %s8707_s20   ;;  %s4608_s19 = sphi %s4699_s19, %s8706_s19   ;;  %s4604_s18 = sphi %s4697_s18, %s8705_s18  }
   0xd   : > { %8411 = sst [smem:[#allocation9_spill]] %s4636_s26  ;;  %s4095_s7 = sadd.s32 4294967294, %s4652_s30  }
   0xe   : > { %8412 = sst [smem:[#allocation10_spill]] %s4640_s27  ;;  %s33_s8 = sadd.s32 1, %s4640_s27 }
   0xf   : > { %8413 = sst [smem:[#allocation11_spill]] %s4648_s29  ;;  %s36_s9 = sadd.s32 1, %s4644_s28 }
  0x10   : > { %p34_p0 = scmp.ge.s32.totalorder %s33_s8, 2  ;;  %s40_s10 = sadd.s32 1, %s4648_s29 }
  0x11   : > { %p56_p1 = scmp.ne.s32.totalorder %s4624_s23, %s4620_s22  ;;  %p57_p2 = scmp.eq.s32.totalorder %s4652_s30, 0 }
  0x12   : > { %s8716_s8 = smov (%p34_p0, %s33_s8), 0  ;;  %s8718_s9 = smov (!%p34_p0, %s36_s9), %s4644_s28 }
  0x13   : > { %8414 = sst [smem:[#allocation12_spill]] %s8716_s8  ;;  %p62_p3 = scmp.ne.s32.totalorder %s4620_s22, %s4616_s21 }
  0x14   : > { %p38_p4 = scmp.ge.s32.totalorder %s8718_s9, 2  ;;  %p63_p5 = scmp.eq.s32.totalorder %s4094_s6, 0 }
  0x15   : > { %p4776_p6 = por %p57_p2, %p56_p1  ;;  %s167_s13 = ssub.s32 %s4640_s27, %s8716_s8 }
  0x16   : > { %s8720_s9 = smov (%p38_p4, %s8718_s9), 0  ;;  %s8722_s10 = smov (!%p38_p4, %s40_s10), %s4648_s29 }
  0x17   : > { %8416 = sst [smem:[#allocation13_spill]] %s8720_s9  ;;  %s45_s14 = ssub.s32 %s4644_s28, %s8720_s9 }
  0x18   : > { %p4787_p7 = por %p63_p5, %p62_p3  ;;  %p42_p8 = scmp.ge.s32.totalorder %s8722_s10, 2 }
  0x19   : > { %s173_s16 = sadd.s32 1, %s4612_s20  ;;  %p183_p9 = scmp.ne.s32.totalorder %s4612_s20, %s4608_s19 }
  0x1a   : > { %p184_p10 = scmp.eq.s32.totalorder %s4094_s6, 7  ;;  %s8724_s10 = smov (%p42_p8, %s8722_s10), 0 }
  0x1b   : > { %8418 = sst [smem:[#allocation14_spill]] %s8724_s10  ;;  %p189_p12 = scmp.ne.s32.totalorder %s4608_s19, %s4604_s18 }
  0x1c   : > { %p4796_p11 = por %p184_p10, %p183_p9  ;;  %s44_s21 = ssub.s32 %s4648_s29, %s8724_s10 }
  0x1d   : > { %p190_p13 = scmp.eq.s32.totalorder %s4095_s7, 7  ;;  %s46_s11 = sor.u32 %s45_s14, %s44_s21 }
  0x1e   : > { %s8419_s17 = scalar_select %p4796_p11, 1, 0 }
  0x1f   : > { %s168_s9 = sor.u32 %s167_s13, %s44_s21  ;;  %p47_p0 = scmp.eq.s32.totalorder %s46_s11, 0 }
  0x20   : > { %8420 = sst [smem:[#allocation15_spill]] %s8419_s17  ;;  %s170_s8 = sor.u32 %s168_s9, %s45_s14 }
  0x21   : > { %p171_p1 = scmp.eq.s32.totalorder %s170_s8, 0  ;;  %p4804_p2 = por %p190_p13, %p189_p12 }
  0x22   : > { %s8423_s27 = sadd.s32 1, %s4624_s23  ;;  %p4246_p3 = scmp.lt.s32.totalorder %s4652_s30, 8 }
  0x23   : > { %s8421_s6 = scalar_select %p4804_p2, 1, 0 }
  0x24   : > { %s4811_s5 = scalar_select %p47_p0, %s4624_s23, %s8423_s27  }
  0x25   : > { %8422 = sst [smem:[#allocation16_spill]] %s8421_s6  ;;  %s216_s18 = sand.u32 1, %s4624_s23  }
  0x26   : > { %8424 = sst [smem:[#allocation17_spill]] %s4811_s5  ;;  %s4099_s10 = sshll.u32 %s4648_s29, 3 }
  0x27   : > { %s4814_s26 = scalar_select %p171_p1, %s4612_s20, %s173_s16  }
  0x28   : > { %s4098_s7 = sshll.u32 %s216_s18, 5  ;;  %s224_s13 = sadd.s32 %s4644_s28, %s4099_s10 }
  0x29   : > { %s4100_s11 = sshll.u32 %s224_s13, 3  ;;  %s220_s9 = scalar_lea.vmem [#allocation2], %s4098_s7 }
  0x2a   : > { %s229_s14 = sshll.u32 %s220_s9, 4  ;;  %s226_s17 = scalar_lea.hbm %s8361_s0, %s4100_s11  ;;  %s230_s14 = int_to_ptr.vmem [resolvable:$true] %s229_s14 }
  0x2b   : > { %s227_s6 = sshll.u32 %s226_s17, 4  ;;  %p4239_p4 = pnand %p4246_p3, %p4776_p6  ;;  %s228_s6 = int_to_ptr.hbm [resolvable:$true] %s227_s6 }
  0x2c   : > { %p4101_p5 = scmp.ge.s32.totalorder %s4652_s30, 1  ;;  %s217_s27 = scalar_lea.sflag [#allocation3], %s216_s18 }
  0x2d   : > { %s4654_s16 = smov 256   ;;  %s4655_s5 = smov 128  }
  0x2e   : > { %s4656_s29 = smov 8   ;;  %p252_p8 = scmp.lt.s32.totalorder %s4652_s30, 9 }
  0x2f   : > { %4241 = dma.hbm_to_vmem [thread:$0]  (!%p4239_p4), %s228_s6, 512, %s230_s14, %s217_s27, %s4654_s16, %s4655_s5, %s4656_s29  }
  0x30   : > { %p253_p9 = pnand %p4101_p5, %p252_p8 }
  0x32   : > { %256 = sbr.rel (%p253_p9) target bundleno = 1196 (0x4ac), region = 40 }
  0x37   : > { %s258_s10 = sand.u32 1, %s4620_s22  }
  0x38   : > { %s4102_s7 = sshll.u32 %s258_s10, 5  ;;  %s259_s13 = scalar_lea.sflag [#allocation3], %s258_s10 }
  0x39   : > { %s4828_s11 = scalar_lea.vmem [#allocation2], %s4102_s7 }
  0x3a   : > { %4595 = dma.done.wait (%p4787_p7), %s259_s13, 512  }
  0x3b   : > { %4597 = vsyncadd (%p4787_p7), %s259_s13, 4294966784  ;;  %vm8392_vm0 = vcmask 1041409   ;;  %v4837_v0 = vld [vmem:[%s8364_s3 + $0x8] sm:$0xff]  ;;  %v4842_v1 = vld [vmem:[%s8364_s3] sm:$0xff]  ;;  %vm330_vm1 = vcmask 1042434   ;;  %vm333_vm2 = vcmask 1043459  }
  0x3c   : > { %v318_v2 = vld [vmem:[%s4828_s11] sm:$0x1]  ;;  %352 = vmatpush.msra.mxu0 %v4837_v0  ;;  %832 = vmatpush.msra.mxu3 %v4837_v0  ;;  %v319_v3 = vld [vmem:[%s4828_s11 + $0x8] sm:$0x1]  ;;  %v320_v4 = vld [vmem:[%s4828_s11 + $0x10] sm:$0x1] }
  0x3d   : > { %v321_v5 = vld [vmem:[%s4828_s11 + $0x18] sm:$0x1]  ;;  %v326_v6 = vrot.slane %v319_v3, 7  ;;  %v329_v7 = vrot.slane %v320_v4, 6  ;;  %vm335_vm3 = vcmask 130048   ;;  %p299_p6 = scmp.lt.s32.totalorder %s4628_s24, 1 }
  0x3e   : > { %v332_v8 = vrot.slane %v321_v5, 5  ;;  %v802_v9 = vld [vmem:[%s4828_s11 + $0x1] sm:$0x1]  ;;  %353 = vmatpush.msra.mxu0 %v4842_v1  ;;  %833 = vmatpush.msra.mxu3 %v4842_v1  ;;  %v803_v10 = vld [vmem:[%s4828_s11 + $0x9] sm:$0x1]  ;;  %vm8408_vm4 = vcmask 1043456  }
  0x3f   : > { %v804_v11 = vld [vmem:[%s4828_s11 + $0x11] sm:$0x1]  ;;  %v805_v12 = vld [vmem:[%s4828_s11 + $0x19] sm:$0x1]  ;;  %v328_v13 = vsel %vm8392_vm0, %v326_v6, %v318_v2  ;;  %v810_v14 = vrot.slane %v803_v10, 7  ;;  %s4891_s6 = scalar_select %p299_p6, %s4628_s24, 1 }
  0x40   : > { %v812_v15 = vrot.slane %v804_v11, 6  ;;  %v814_v16 = vrot.slane %v805_v12, 5  ;;  %1282 = vmatpush.msrb.mxu0 %v4837_v0  ;;  %v1252_v17 = vld [vmem:[%s4828_s11 + $0x2] sm:$0x1]  ;;  %v331_v18 = vsel %vm330_vm1, %v329_v7, %v328_v13  ;;  %v1253_v19 = vld [vmem:[%s4828_s11 + $0xa] sm:$0x1] }
  0x41   : > { %v1254_v20 = vld [vmem:[%s4828_s11 + $0x12] sm:$0x1]  ;;  %v1255_v21 = vld [vmem:[%s4828_s11 + $0x1a] sm:$0x1]  ;;  %v334_v22 = vsel %vm333_vm2, %v332_v8, %v331_v18  ;;  %v811_v23 = vsel %vm8392_vm0, %v810_v14, %v802_v9  ;;  %v1260_v24 = vrot.slane %v1253_v19, 7  ;;  %v4902_v47 = vld [vmem:[%s8365_s4 + $0x8] sm:$0xff] }
  0x42   : > { %1283 = vmatpush.msrb.mxu0 %v4842_v1  ;;  %v1262_v25 = vrot.slane %v1254_v20, 6  ;;  %v813_v26 = vsel %vm330_vm1, %v812_v15, %v811_v23  ;;  %v1703_v27 = vld [vmem:[%s4828_s11 + $0xb] sm:$0x1]  ;;  %v1264_v30 = vrot.slane %v1255_v21, 5  ;;  %v1704_v32 = vld [vmem:[%s4828_s11 + $0x13] sm:$0x1] }
  0x43   : > { %4106 = vmatmul.msk.f32.vlgmr.msra.gmra.mxu0 %vm335_vm3, %v334_v22  ;;  %v815_v28 = vsel %vm333_vm2, %v814_v16, %v813_v26  ;;  %v1261_v29 = vsel %vm8392_vm0, %v1260_v24, %v1252_v17  ;;  %v1710_v33 = vrot.slane %v1703_v27, 7  ;;  %v1702_v34 = vld [vmem:[%s4828_s11 + $0x3] sm:$0x1]  ;;  %v1705_v36 = vld [vmem:[%s4828_s11 + $0x1b] sm:$0x1]  ;;  %v1712_v37 = vrot.slane %v1704_v32, 6 }
  0x44   : > { %1732 = vmatpush.msra.mxu0 %v4837_v0  ;;  %4119 = vmatmul.msk.f32.vlgmr.msra.gmra.mxu3 %vm335_vm3, %v815_v28  ;;  %v1263_v31 = vsel %vm330_vm1, %v1262_v25, %v1261_v29  ;;  %v1714_v39 = vrot.slane %v1705_v36, 5  ;;  %v4888_v42 = vld [vmem:[%s8365_s4 + $0x18] sm:$0xf]  ;;  %v4897_v46 = vld [vmem:[%s8365_s4 + $0x10] sm:$0xff]  ;;  %s4229_s27 = sshll.u32 %s4891_s6, 4  ;;  %v4910_v49 = vld [vmem:[%s8365_s4] sm:$0xff] }
  0x45   : > { %v1265_v35 = vsel %vm333_vm2, %v1264_v30, %v1263_v31  ;;  %v1711_v38 = vsel %vm8392_vm0, %v1710_v33, %v1702_v34  ;;  %s4917_s5 = scalar_lea.vmem %s8362_s1, %s4229_s27  ;;  %vm8377_vm5 = vcmask 228352   ;;  %s4105_s18 = sshll.u32 %s4891_s6, 1  ;;  %v4657_v6 = vmov 0   ;;  %v2153_v13 = vld [vmem:[%s4828_s11 + $0xc] sm:$0x1] }
  0x46   : > { %1733 = vmatpush.msra.mxu0 %v4842_v1  ;;  %v1713_v40 = vsel %vm330_vm1, %v1712_v37, %v1711_v38  ;;  %v4921_v55 = vld [vmem:[%s4917_s5] sm:$0xff]  ;;  %s307_s15 = scalar_lea.vmem %s8363_s2, %s4105_s18  ;;  %4365 = vset.pattern.permute.xlu0 %v4657_v6  ;;  %v4942_v8 = vld [vmem:[%s4917_s5 + $0x8] sm:$0x3f]  ;;  %v2154_v17 = vld [vmem:[%s4828_s11 + $0x14] sm:$0x1]  ;;  %v2160_v18 = vrot.slane %v2153_v13, 7 }
  0x47   : > { %v1715_v41 = vsel %vm333_vm2, %v1714_v39, %v1713_v40  ;;  %v311_v5 = vld [vmem:[%s307_s15] sm:$0x3]  ;;  %v2603_v15 = vld [vmem:[%s4828_s11 + $0xd] sm:$0x1]  ;;  %v2152_v19 = vld [vmem:[%s4828_s11 + $0x4] sm:$0x1] }
  0x48   : > { %439 = vperm.xlu0 %4365, %v311_v5   ;;  %v2604_v21 = vld [vmem:[%s4828_s11 + $0x15] sm:$0x1]  ;;  %v2610_v22 = vrot.slane %v2603_v15, 7  ;;  %v2602_v23 = vld [vmem:[%s4828_s11 + $0x5] sm:$0x1]  ;;  %v2162_v25 = vrot.slane %v2154_v17, 6  ;;  %v2161_v26 = vsel %vm8392_vm0, %v2160_v18, %v2152_v19 }
  0x49   : > { %v2155_v24 = vld [vmem:[%s4828_s11 + $0x1c] sm:$0x1]  ;;  %v2605_v27 = vld [vmem:[%s4828_s11 + $0x1d] sm:$0x1]  ;;  %v2612_v28 = vrot.slane %v2604_v21, 6  ;;  %s4658_s17 = smov 80  }
  0x4a   : > { %v2611_v29 = vsel %vm8392_vm0, %v2610_v22, %v2602_v23  ;;  %v2164_v30 = vrot.slane %v2155_v24, 5  ;;  %v3053_v31 = vld [vmem:[%s4828_s11 + $0xe] sm:$0x1]  ;;  %v2163_v32 = vsel %vm330_vm1, %v2162_v25, %v2161_v26  ;;  %v2614_v33 = vrot.slane %v2605_v27, 5  ;;  %v3052_v38 = vld [vmem:[%s4828_s11 + $0x6] sm:$0x1] }
  0x4b   : > { %4134 = vmatmul.msk.f32.vlgmr.msrb.gmra.mxu0 %vm335_vm3, %v1265_v35  ;;  %v2613_v34 = vsel %vm330_vm1, %v2612_v28, %v2611_v29  ;;  %v3054_v35 = vld [vmem:[%s4828_s11 + $0x16] sm:$0x1]  ;;  %v3060_v36 = vrot.slane %v3053_v31, 7  ;;  %v3055_v40 = vld [vmem:[%s4828_s11 + $0x1e] sm:$0x1]  ;;  %s4659_s6 = smov 112  }
  0x4c   : > { %v2165_v37 = vsel %vm333_vm2, %v2164_v30, %v2163_v32  ;;  %v2615_v39 = vsel %vm333_vm2, %v2614_v33, %v2613_v34  ;;  %s4660_s9 = smov 96   ;;  %s4661_s14 = smov 64   ;;  %v3503_v30 = vld [vmem:[%s4828_s11 + $0xf] sm:$0x1]  ;;  %v3504_v33 = vld [vmem:[%s4828_s11 + $0x17] sm:$0x1] }
  0x4d   : > { %s4662_s8 = smov 48   ;;  %s4663_s21 = smov 32   ;;  %v3502_v34 = vld [vmem:[%s4828_s11 + $0x7] sm:$0x1]  ;;  %vm8378_vm6 = vcmask 261120   ;;  %vm8381_vm7 = vcmask 916480  }
  0x4e   : > { %vm8380_vm8 = vcmask 785408   ;;  %vm8391_vm9 = vcmask 654336   ;;  %vm8396_vm10 = vcmask 523264   ;;  %vm8379_vm11 = vcmask 392192   ;;  %s8686_s10 = sld [smem:[#allocation27_spill]] }
  0x53   : > { %4149 = vmatmul.msk.f32.vlgmr.msra.gmra.mxu0 %vm335_vm3, %v1715_v41  ;;  %v3062_v41 = vrot.slane %v3054_v35, 6 }
  0xc0   : > { %v355_v43 = vpop.f32.mrf.mxu0 }
  0xc1   : > { %v359_v44 = vrot.slane %v355_v43, 4  ;;  %v366_v45 = vmul.f32 %v355_v43, %v4888_v42 }
  0xc3   : > { %v362_v48 = vsel %vm8408_vm4, %v355_v43, %v359_v44  ;;  %4107 = vmatpush.msk.msra.mxu1 %vm8408_vm4, %v366_v45  ;;  %v3061_v43 = vsel %vm8392_vm0, %v3060_v36, %v3052_v38  ;;  %v3064_v44 = vrot.slane %v3055_v40, 5  ;;  %v3512_v38 = vrot.slane %v3504_v33, 6 }
  0xc4   : > { %v365_v50 = vmul.f32 %v362_v48, %v4897_v46  ;;  %v364_v51 = vmul.f32 %v362_v48, %v4902_v47  ;;  %v363_v52 = vmul.f32 %v362_v48, %v4910_v49  ;;  %v3063_v45 = vsel %vm330_vm1, %v3062_v41, %v3061_v43 }
  0xc5   : > { %v3065_v48 = vsel %vm333_vm2, %v3064_v44, %v3063_v45  ;;  %v5090_v44 = vpop.permute.xlu0 %439 }
  0xc6   : > { %390 = vmatpush.msra.mxu1 %v365_v50  ;;  %8425 = vst [vmem:[#allocation18_spill] sm:$0xff] %v5090_v44 }
  0xc7   : > { %v835_v53 = vpop.f32.mrf.mxu3 }
  0xc8   : > { %391 = vmatpush.msra.mxu1 %v364_v51  ;;  %v1285_v54 = vpop.f32.mrf.mxu0  ;;  %v839_v56 = vrot.slane %v835_v53, 4  ;;  %v845_v57 = vmul.f32 %v835_v53, %v4888_v42 }
  0xc9   : > { %v1289_v58 = vrot.slane %v1285_v54, 4  ;;  %v1295_v59 = vmul.f32 %v1285_v54, %v4888_v42 }
  0xca   : > { %392 = vmatpush.msra.mxu1 %v363_v52  ;;  %v841_v60 = vsel %vm8408_vm4, %v835_v53, %v839_v56  ;;  %4120 = vmatpush.msk.msrb.mxu3 %vm8408_vm4, %v845_v57 }
  0xcb   : > { %v1291_v61 = vsel %vm8408_vm4, %v1285_v54, %v1289_v58  ;;  %4108 = vmatmul.msk.f32.vlgmr.msra.gmra.mxu1 %vm8377_vm5, %v4921_v55  ;;  %v844_v62 = vmul.f32 %v841_v60, %v4897_v46  ;;  %4135 = vmatpush.msk.msra.mxu2 %vm8408_vm4, %v1295_v59  ;;  %v843_v3 = vmul.f32 %v841_v60, %v4902_v47 }
  0xcc   : > { %v1294_v63 = vmul.f32 %v1291_v61, %v4897_v46  ;;  %v1293_v2 = vmul.f32 %v1291_v61, %v4902_v47  ;;  %v1292_v4 = vmul.f32 %v1291_v61, %v4910_v49  ;;  %v842_v7 = vmul.f32 %v841_v60, %v4910_v49 }
  0xcd   : > { %862 = vmatpush.msrb.mxu3 %v844_v62 }
  0xce   : > { %1312 = vmatpush.msra.mxu2 %v1294_v63 }
  0xcf   : > { %863 = vmatpush.msrb.mxu3 %v843_v3 }
  0xd0   : > { %1313 = vmatpush.msra.mxu2 %v1293_v2  ;;  %v1735_v9 = vpop.f32.mrf.mxu0 }
  0xd1   : > { %v1739_v10 = vrot.slane %v1735_v9, 4  ;;  %v1745_v11 = vmul.f32 %v1735_v9, %v4888_v42  ;;  %864 = vmatpush.msrb.mxu3 %v842_v7 }
  0xd2   : > { %1314 = vmatpush.msra.mxu2 %v1292_v4  ;;  %4121 = vmatmul.msk.f32.vlgmr.msrb.gmra.mxu3 %vm8377_vm5, %v4921_v55 }
  0xd3   : > { %4109 = vmatmul.msk.f32.gmra.mxu1 %vm8377_vm5, %v4942_v8  ;;  %v1741_v12 = vsel %vm8408_vm4, %v1735_v9, %v1739_v10  ;;  %2182 = vmatpush.msra.mxu3 %v4837_v0 }
  0xd4   : > { %4136 = vmatmul.msk.f32.vlgmr.msra.gmra.mxu2 %vm8377_vm5, %v4921_v55  ;;  %v1744_v14 = vmul.f32 %v1741_v12, %v4897_v46  ;;  %4150 = vmatpush.msk.msrb.mxu1 %vm8408_vm4, %v1745_v11  ;;  %v1743_v16 = vmul.f32 %v1741_v12, %v4902_v47  ;;  %v1742_v20 = vmul.f32 %v1741_v12, %v4910_v49 }
  0xd5   : > { %2632 = vmatpush.msrb.mxu2 %v4837_v0  ;;  %2183 = vmatpush.msra.mxu3 %v4842_v1 }
  0xd6   : > { %1762 = vmatpush.msrb.mxu1 %v1744_v14 }
  0xd7   : > { %2633 = vmatpush.msrb.mxu2 %v4842_v1 }
  0xd8   : > { %1763 = vmatpush.msrb.mxu1 %v1743_v16 }
  0xd9   : > { %3082 = vmatpush.msra.mxu2 %v4837_v0 }
  0xda   : > { %4122 = vmatmul.msk.f32.gmra.mxu3 %vm8377_vm5, %v4942_v8  ;;  %1764 = vmatpush.msrb.mxu1 %v1742_v20 }
  0xdb   : > { %3083 = vmatpush.msra.mxu2 %v4842_v1  ;;  %4151 = vmatmul.msk.f32.vlgmr.msrb.gmra.mxu1 %vm8377_vm5, %v4921_v55 }
  0xdc   : > { %4137 = vmatmul.msk.f32.gmra.mxu2 %vm8377_vm5, %v4942_v8 }
  0xe2   : > { %4164 = vmatmul.msk.f32.vlgmr.msra.gmra.mxu3 %vm335_vm3, %v2165_v37  ;;  %v3505_v37 = vld [vmem:[%s4828_s11 + $0x1f] sm:$0x1]  ;;  %s296_s11 = sand.u32 1, %s4608_s19  }
  0xe3   : > { %4152 = vmatmul.msk.f32.gmra.mxu1 %vm8377_vm5, %v4942_v8  ;;  %s4230_s27 = smul.u32 112, %s296_s11  ;;  %s3953_s12 = scalar_lea.sflag [#allocation4], %s296_s11 }
  0xe4   : > { %4179 = vmatmul.msk.f32.vlgmr.msrb.gmra.mxu2 %vm335_vm3, %v2615_v39  ;;  %v3514_v39 = vrot.slane %v3505_v37, 5 }
  0xe5   : > { %s5564_s16 = scalar_lea.vmem [#allocation5], %s4230_s27 }
  0xe6   : > { %s3970_s13 = sshll.u32 %s5564_s16, 4  ;;  %s3971_s13 = int_to_ptr.vmem [resolvable:$true] %s3970_s13 }
  0xec   : > { %4194 = vmatmul.msk.f32.vlgmr.msra.gmra.mxu2 %vm335_vm3, %v3065_v48 }
 0x148   : > { %v4994_v50 = vpop.f32.mrf.mxu1 }
 0x149   : > { %v409_v51 = vrot.slane %v4994_v50, 6  ;;  %v401_v52 = vrot.slane %v4994_v50, 2  ;;  %v405_v53 = vrot.slane %v4994_v50, 4 }
 0x14b   : > { %410 = vrot.lane.b32.xlu1 %v409_v51, %s4658_s17  ;;  %402 = vrot.lane.b32.xlu0 %v401_v52, %s4659_s6 }
 0x150   : > { %v397_v54 = vpop.f32.mrf.mxu1 }
 0x151   : > { %v417_v56 = vrot.slane %v397_v54, 2  ;;  %v421_v59 = vrot.slane %v397_v54, 4 }
 0x153   : > { %406 = vrot.lane.b32.xlu0 %v405_v53, %s4660_s9  ;;  %414 = vrot.lane.b32.xlu1 %v397_v54, %s4661_s14 }
 0x154   : > { %418 = vrot.lane.b32.xlu2 %v417_v56, %s4662_s8 }
 0x155   : > { %v5004_v57 = vpop.f32.mrf.mxu3 }
 0x156   : > { %v873_v61 = vrot.slane %v5004_v57, 2  ;;  %v881_v4 = vrot.slane %v5004_v57, 6  ;;  %v877_v5 = vrot.slane %v5004_v57, 4 }
 0x157   : > { %v5006_v58 = vpop.f32.mrf.mxu2 }
 0x158   : > { %v1327_v60 = vrot.slane %v5006_v58, 4  ;;  %v5013_v62 = vpop.f32.mrf.mxu1  ;;  %v1331_v10 = vrot.slane %v5006_v58, 6  ;;  %v1323_v12 = vrot.slane %v5006_v58, 2 }
 0x159   : > { %v1777_v2 = vrot.slane %v5013_v62, 4  ;;  %v1781_v24 = vrot.slane %v5013_v62, 6  ;;  %v1773_v26 = vrot.slane %v5013_v62, 2 }
 0x15b   : > { %1328 = vrot.lane.b32.xlu0 %v1327_v60, %s4660_s9  ;;  %874 = vrot.lane.b32.xlu1 %v873_v61, %s4659_s6 }
 0x15c   : > { %422 = vrot.lane.b32.xlu2 %v421_v59, %s4663_s21 }
 0x15d   : > { %v5015_v63 = vpop.f32.mrf.mxu3 }
 0x15e   : > { %v889_v15 = vrot.slane %v5015_v63, 2 }
 0x15f   : > { %v5018_v3 = vpop.f32.mrf.mxu2 }
 0x160   : > { %v1339_v29 = vrot.slane %v5018_v3, 2  ;;  %v1769_v36 = vpop.f32.mrf.mxu1  ;;  %v1343_v41 = vrot.slane %v5018_v3, 4 }
 0x163   : > { %882 = vrot.lane.b32.xlu1 %v881_v4, %s4658_s17  ;;  %1778 = vrot.lane.b32.xlu0 %v1777_v2, %s4660_s9 }
 0x164   : > { %878 = vrot.lane.b32.xlu2 %v877_v5, %s4660_s9 }
 0x165   : > { %v2185_v6 = vpop.f32.mrf.mxu3 }
 0x166   : > { %v2189_v7 = vrot.slane %v2185_v6, 4  ;;  %v2195_v9 = vmul.f32 %v2185_v6, %v4888_v42 }
 0x167   : > { %v2635_v11 = vpop.f32.mrf.mxu2 }
 0x168   : > { %v2639_v13 = vrot.slane %v2635_v11, 4  ;;  %v2645_v14 = vmul.f32 %v2635_v11, %v4888_v42  ;;  %v2191_v16 = vsel %vm8408_vm4, %v2185_v6, %v2189_v7  ;;  %4165 = vmatpush.msk.msrb.mxu0 %vm8408_vm4, %v2195_v9 }
 0x169   : > { %v2194_v17 = vmul.f32 %v2191_v16, %v4897_v46  ;;  %v2193_v21 = vmul.f32 %v2191_v16, %v4902_v47  ;;  %v2192_v23 = vmul.f32 %v2191_v16, %v4910_v49 }
 0x16a   : > { %v2641_v18 = vsel %vm8408_vm4, %v2635_v11, %v2639_v13  ;;  %4180 = vmatpush.msk.msrb.mxu3 %vm8408_vm4, %v2645_v14 }
 0x16b   : > { %1332 = vrot.lane.b32.xlu1 %v1331_v10, %s4658_s17  ;;  %890 = vrot.lane.b32.xlu0 %v889_v15, %s4662_s8  ;;  %v2644_v19 = vmul.f32 %v2641_v18, %v4897_v46  ;;  %v2643_v20 = vmul.f32 %v2641_v18, %v4902_v47  ;;  %v2642_v22 = vmul.f32 %v2641_v18, %v4910_v49 }
 0x16c   : > { %2212 = vmatpush.msrb.mxu0 %v2194_v17  ;;  %1324 = vrot.lane.b32.xlu2 %v1323_v12, %s4659_s6 }
 0x16d   : > { %2662 = vmatpush.msrb.mxu3 %v2644_v19 }
 0x16e   : > { %2213 = vmatpush.msrb.mxu0 %v2193_v21 }
 0x16f   : > { %2663 = vmatpush.msrb.mxu3 %v2643_v20  ;;  %v3085_v25 = vpop.f32.mrf.mxu2 }
 0x170   : > { %2214 = vmatpush.msrb.mxu0 %v2192_v23  ;;  %v3089_v27 = vrot.slane %v3085_v25, 4  ;;  %v3095_v28 = vmul.f32 %v3085_v25, %v4888_v42 }
 0x171   : > { %4166 = vmatmul.msk.f32.vlgmr.msrb.gmra.mxu0 %vm8377_vm5, %v4921_v55  ;;  %2664 = vmatpush.msrb.mxu3 %v2642_v22 }
 0x172   : > { %3532 = vmatpush.msra.mxu0 %v4837_v0  ;;  %4181 = vmatmul.msk.f32.vlgmr.msrb.gmra.mxu3 %vm8377_vm5, %v4921_v55  ;;  %v3091_v31 = vsel %vm8408_vm4, %v3085_v25, %v3089_v27  ;;  %v3510_v0 = vrot.slane %v3503_v30, 7 }
 0x173   : > { %1782 = vrot.lane.b32.xlu1 %v1781_v24, %s4658_s17  ;;  %4195 = vmatpush.msk.msra.mxu1 %vm8408_vm4, %v3095_v28  ;;  %v3094_v42 = vmul.f32 %v3091_v31, %v4897_v46  ;;  %v3093_v32 = vmul.f32 %v3091_v31, %v4902_v47  ;;  %v3092_v35 = vmul.f32 %v3091_v31, %v4910_v49  ;;  %v893_v47 = vrot.slane %v5015_v63, 4 }
 0x174   : > { %1774 = vrot.lane.b32.xlu2 %v1773_v26, %s4659_s6  ;;  %3533 = vmatpush.msra.mxu0 %v4842_v1  ;;  %v3511_v46 = vsel %vm8392_vm0, %v3510_v0, %v3502_v34  ;;  %v1789_v1 = vrot.slane %v1769_v36, 2 }
 0x175   : > { %3112 = vmatpush.msra.mxu1 %v3094_v42  ;;  %1340 = vrot.lane.b32.xlu0 %v1339_v29, %s4662_s8  ;;  %v3513_v49 = vsel %vm330_vm1, %v3512_v38, %v3511_v46 }
 0x176   : > { %v3515_v40 = vsel %vm333_vm2, %v3514_v39, %v3513_v49 }
 0x177   : > { %3113 = vmatpush.msra.mxu1 %v3093_v32 }
 0x179   : > { %4167 = vmatmul.msk.f32.gmra.mxu0 %vm8377_vm5, %v4942_v8  ;;  %3114 = vmatpush.msra.mxu1 %v3092_v35 }
 0x17a   : > { %4196 = vmatmul.msk.f32.vlgmr.msra.gmra.mxu1 %vm8377_vm5, %v4921_v55  ;;  %4182 = vmatmul.msk.f32.gmra.mxu3 %vm8377_vm5, %v4942_v8  ;;  %v1793_v55 = vrot.slane %v1769_v36, 4 }
 0x17b   : > { %894 = vrot.lane.b32.xlu1 %v893_v47, %s4663_s21 }
 0x17c   : > { %886 = vrot.lane.b32.xlu2 %v5015_v63, %s4661_s14 }
 0x17d   : > { %1790 = vrot.lane.b32.xlu0 %v1789_v1, %s4662_s8 }
 0x181   : > { %4209 = vmatmul.msk.f32.vlgmr.msra.gmra.mxu0 %vm335_vm3, %v3515_v40 }
 0x182   : > { %4197 = vmatmul.msk.f32.gmra.mxu1 %vm8377_vm5, %v4942_v8 }
 0x183   : > { %1344 = vrot.lane.b32.xlu1 %v1343_v41, %s4663_s21 }
 0x184   : > { %1336 = vrot.lane.b32.xlu2 %v5018_v3, %s4661_s14 }
 0x18b   : > { %1794 = vrot.lane.b32.xlu1 %v1793_v55, %s4663_s21 }
 0x18c   : > { %1786 = vrot.lane.b32.xlu2 %v1769_v36, %s4661_s14 }
 0x1ae   : > { %v5088_v43 = vpop.permute.xlu2 %418 }
 0x1b6   : > { %v423_v45 = vpop.permute.xlu2 %422 }
 0x1b7   : > { %v436_v48 = vsel %vm8378_vm6, %v5088_v43, %v423_v45  ;;  %v5105_v56 = vadd.f32 %v5090_v44, %v423_v45 }
 0x1b8   : > { %v5095_v8 = vadd.f32 %v5090_v44, %v436_v48 }
 0x1b9   : > { %v5109_v61 = vmul.f32 0.70710677, %v5105_v56 }
 0x1ba   : > { %v5098_v51 = vmul.f32 0.70710677, %v5095_v8 }
 0x1bb   : > { %v703_v9 = vmul.f32 %v5109_v61, %v5109_v61 }
 0x1bc   : > { %v663_v52 = vmul.f32 %v5098_v51, %v5098_v51 }
 0x1bd   : > { %v403_v53 = vpop.permute.xlu0 %402  ;;  %v5113_v5 = vpop.permute.xlu1 %410 }
 0x1be   : > { %v5102_v54 = vmin.f32 %v663_v52, 16.0  ;;  %v426_v6 = vsel %vm8381_vm7, %v4994_v50, %v403_v53  ;;  %v5132_v50 = vmin.f32 %v703_v9, 16.0 }
 0x1bf   : > { %v5121_v10 = vadd.f32 %v5090_v44, %v426_v6 }
 0x1c0   : > { %v676_v59 = vmul.f32 3.8918573e-05, %v5102_v54  ;;  %v665_v3 = vmul.f32 2.1237322e-06, %v5102_v54  ;;  %v716_v20 = vmul.f32 3.8918573e-05, %v5132_v50 }
 0x1c1   : > { %v5135_v15 = vmul.f32 0.70710677, %v5121_v10  ;;  %v705_v24 = vmul.f32 2.1237322e-06, %v5132_v50 }
 0x1c2   : > { %v677_v60 = vadd.f32 0.001143296, %v676_v59  ;;  %v666_v19 = vadd.f32 0.00028619796, %v665_v3  ;;  %v717_v25 = vadd.f32 0.001143296, %v716_v20 }
 0x1c3   : > { %v463_v21 = vmul.f32 %v5135_v15, %v5135_v15  ;;  %v706_v0 = vadd.f32 0.00028619796, %v705_v24 }
 0x1c4   : > { %v678_v63 = vmul.f32 %v677_v60, %v5102_v54  ;;  %v667_v30 = vmul.f32 %v666_v19, %v5102_v54  ;;  %v718_v31 = vmul.f32 %v717_v25, %v5132_v50 }
 0x1c5   : > { %v407_v2 = vpop.permute.xlu0 %406  ;;  %v5150_v26 = vmin.f32 %v463_v21, 16.0  ;;  %v707_v39 = vmul.f32 %v706_v0, %v5132_v50 }
 0x1c6   : > { %v679_v4 = vadd.f32 0.014752088, %v678_v63  ;;  %v428_v7 = vsel %vm8380_vm8, %v403_v53, %v407_v2  ;;  %v430_v11 = vsel %vm8391_vm9, %v407_v2, %v5113_v5  ;;  %v719_v34 = vadd.f32 0.014752088, %v718_v31 }
 0x1c7   : > { %v5126_v12 = vadd.f32 %v5090_v44, %v428_v7  ;;  %v5130_v14 = vadd.f32 %v5090_v44, %v430_v11  ;;  %v476_v42 = vmul.f32 3.8918573e-05, %v5150_v26  ;;  %v668_v46 = vadd.f32 0.0036580483, %v667_v30 }
 0x1c8   : > { %v680_v13 = vmul.f32 %v679_v4, %v5102_v54  ;;  %v720_v47 = vmul.f32 %v719_v34, %v5132_v50  ;;  %v708_v52 = vadd.f32 0.0036580483, %v707_v39  ;;  %v465_v53 = vmul.f32 2.1237322e-06, %v5150_v26 }
 0x1c9   : > { %v5138_v16 = vmul.f32 0.70710677, %v5126_v12  ;;  %v5141_v18 = vmul.f32 0.70710677, %v5130_v14  ;;  %v477_v35 = vadd.f32 0.001143296, %v476_v42  ;;  %v669_v45 = vmul.f32 %v668_v46, %v5102_v54 }
 0x1ca   : > { %v681_v17 = vadd.f32 0.112945676, %v680_v13  ;;  %v721_v49 = vadd.f32 0.112945676, %v720_v47  ;;  %v466_v3 = vadd.f32 0.00028619796, %v465_v53  ;;  %v415_v47 = vpop.permute.xlu1 %414 }
 0x1cb   : > { %v503_v22 = vmul.f32 %v5138_v16, %v5138_v16  ;;  %v543_v28 = vmul.f32 %v5141_v18, %v5141_v18  ;;  %v478_v1 = vmul.f32 %v477_v35, %v5150_v26  ;;  %v670_v7 = vadd.f32 0.05243302, %v669_v45 }
 0x1cc   : > { %v682_v23 = vmul.f32 %v681_v17, %v5102_v54  ;;  %v722_v48 = vmul.f32 %v721_v49, %v5132_v50  ;;  %v467_v11 = vmul.f32 %v466_v3, %v5150_v26  ;;  %v709_v17 = vmul.f32 %v708_v52, %v5132_v50 }
 0x1cd   : > { %v5152_v27 = vmin.f32 %v503_v22, 16.0  ;;  %v5161_v36 = vmin.f32 %v543_v28, 16.0  ;;  %v479_v55 = vadd.f32 0.014752088, %v478_v1  ;;  %v671_v28 = vmul.f32 %v670_v7, %v5102_v54 }
 0x1ce   : > { %v683_v29 = vadd.f32 0.4994258, %v682_v23  ;;  %v723_v60 = vadd.f32 0.4994258, %v722_v48  ;;  %v468_v23 = vadd.f32 0.0036580483, %v467_v11  ;;  %v432_v49 = vsel %vm8396_vm10, %v5113_v5, %v415_v47 }
 0x1cf   : > { %v516_v32 = vmul.f32 3.8918573e-05, %v5152_v27  ;;  %v556_v41 = vmul.f32 3.8918573e-05, %v5161_v36  ;;  %v480_v59 = vmul.f32 %v479_v55, %v5150_v26  ;;  %v505_v25 = vmul.f32 2.1237322e-06, %v5152_v27 }
 0x1d0   : > { %v684_v33 = vmul.f32 %v683_v29, %v5102_v54  ;;  %v724_v9 = vmul.f32 %v723_v60, %v5132_v50  ;;  %v5189_v29 = vpop.permute.xlu2 %878  ;;  %v710_v31 = vadd.f32 0.05243302, %v709_v17  ;;  %v469_v0 = vmul.f32 %v468_v23, %v5150_v26 }
 0x1d1   : > { %v517_v38 = vadd.f32 0.001143296, %v516_v32  ;;  %v557_v2 = vadd.f32 0.001143296, %v556_v41  ;;  %v481_v4 = vadd.f32 0.112945676, %v480_v59  ;;  %v434_v41 = vsel %vm8379_vm11, %v415_v47, %v5088_v43 }
 0x1d2   : > { %v5163_v37 = vadd.f32 1.0, %v684_v33  ;;  %v5181_v19 = vadd.f32 1.0, %v724_v9  ;;  %v506_v42 = vadd.f32 0.00028619796, %v505_v25  ;;  %v672_v35 = vadd.f32 0.18741608, %v671_v28 }
 0x1d3   : > { %v518_v40 = vmul.f32 %v517_v38, %v5152_v27  ;;  %v482_v13 = vmul.f32 %v481_v4, %v5150_v26  ;;  %v558_v21 = vmul.f32 %v557_v2, %v5161_v36  ;;  %v545_v46 = vmul.f32 2.1237322e-06, %v5161_v36 }
 0x1d4   : > { %4366 = vrcp.f32 %v5163_v37  ;;  %v507_v39 = vmul.f32 %v506_v42, %v5152_v27  ;;  %v470_v48 = vadd.f32 0.05243302, %v469_v0  ;;  %v673_v59 = vmul.f32 %v672_v35, %v5102_v54 }
 0x1d5   : > { %v519_v63 = vadd.f32 0.014752088, %v518_v40  ;;  %v483_v24 = vadd.f32 0.4994258, %v482_v13  ;;  %4368 = vrcp.f32 %v5181_v19  ;;  %v559_v34 = vadd.f32 0.014752088, %v558_v21 }
 0x1d6   : > { %v711_v40 = vmul.f32 %v710_v31, %v5132_v50  ;;  %vm691_vm12 = vweird.f32 %v5163_v37  ;;  %v546_v60 = vadd.f32 0.00028619796, %v545_v46  ;;  %v5211_v5 = vadd.f32 %v5090_v44, %v432_v49 }
 0x1d7   : > { %v520_v20 = vmul.f32 %v519_v63, %v5152_v27  ;;  %v484_v30 = vmul.f32 %v483_v24, %v5150_v26  ;;  %v560_v53 = vmul.f32 %v559_v34, %v5161_v36  ;;  %v508_v43 = vadd.f32 0.0036580483, %v507_v39 }
 0x1d8   : > { %v695_v2 = vand.u32 2147483647, %v5163_v37  ;;  %v697_v3 = vand.u32 2147483648, %v5163_v37  ;;  %v712_v4 = vadd.f32 0.18741608, %v711_v40  ;;  %v5220_v7 = vpop.permute.xlu2 %1324  ;;  %v471_v11 = vmul.f32 %v470_v48, %v5150_v26 }
 0x1d9   : > { %v521_v32 = vadd.f32 0.112945676, %v520_v20  ;;  %v5196_v1 = vadd.f32 1.0, %v484_v30  ;;  %v561_v17 = vadd.f32 0.112945676, %v560_v53  ;;  %v547_v21 = vmul.f32 %v546_v60, %v5161_v36 }
 0x1da   : > { %v5175_v6 = vpop.eup %4366  ;;  %v674_v23 = vadd.f32 1.1283791, %v673_v59  ;;  %v509_v24 = vmul.f32 %v508_v43, %v5152_v27  ;;  %v1347_v25 = vsel %vm8381_vm7, %v5006_v58, %v5220_v7  ;;  %vm5241_vm15 = vcmp.eq.f32.partialorder %v695_v2, 8.507059e+37 }
 0x1db   : > { %v687_v22 = vmul.f32 %v5175_v6, %v5163_v37  ;;  %v522_v38 = vmul.f32 %v521_v32, %v5152_v27  ;;  %v5204_v55 = vpop.eup %4368  ;;  %vm692_vm13 = vweird.f32 %v5175_v6  ;;  %4370 = vrcp.f32 %v5196_v1 }
 0x1dc   : > { %v727_v54 = vmul.f32 %v5204_v55, %v5181_v19  ;;  %vm5228_vm14 = vmor %vm691_vm12, %vm692_vm13  ;;  %v698_v28 = vor.u32 1.1754944e-38, %v697_v3  ;;  %v5246_v31 = vmul.f32 0.70710677, %v5211_v5  ;;  %v472_v0 = vadd.f32 0.18741608, %v471_v11 }
 0x1dd   : > { %v688_v33 = vsub.f32 1.0, %v687_v22  ;;  %v523_v52 = vadd.f32 0.4994258, %v522_v38  ;;  %v5234_v22 = vadd.f32 %v5090_v44, %v434_v41  ;;  %v562_v58 = vmul.f32 %v561_v17, %v5161_v36 }
 0x1de   : > { %v728_v30 = vsub.f32 1.0, %v727_v54  ;;  %v5256_v34 = vmul.f32 0.5, %v5095_v8  ;;  %v548_v35 = vadd.f32 0.0036580483, %v547_v21  ;;  %v5259_v38 = vadd.f32 %v1347_v25, %v5090_v44 }
 0x1df   : > { %v689_v45 = vmul.f32 %v5175_v6, %v688_v33  ;;  %v524_v63 = vmul.f32 %v523_v52, %v5152_v27  ;;  %v713_v33 = vmul.f32 %v712_v4, %v5132_v50  ;;  %v675_v46 = vmul.f32 %v674_v23, %v5098_v51 }
 0x1e0   : > { %v510_v47 = vadd.f32 0.05243302, %v509_v24  ;;  %v563_v39 = vadd.f32 0.4994258, %v562_v58  ;;  %v5263_v49 = vmul.f32 0.70710677, %v5234_v22  ;;  %v583_v40 = vmul.f32 %v5246_v31, %v5246_v31 }
 0x1e1   : > { %v690_v9 = vadd.f32 %v5175_v6, %v689_v45  ;;  %v5224_v13 = vadd.f32 1.0, %v524_v63  ;;  %v5248_v42 = vpop.eup %4370  ;;  %v714_v45 = vadd.f32 1.1283791, %v713_v33  ;;  %vm731_vm3 = vweird.f32 %v5181_v19 }
 0x1e2   : > { %v487_v8 = vmul.f32 %v5248_v42, %v5196_v1  ;;  %v473_v51 = vmul.f32 %v472_v0, %v5150_v26  ;;  %v564_v48 = vmul.f32 %v563_v39, %v5161_v36  ;;  %vm732_vm12 = vweird.f32 %v5204_v55 }
 0x1e3   : > { %4372 = vrcp.f32 %v5224_v13  ;;  %v694_v32 = vsel %vm5228_vm14, %v5175_v6, %v690_v9  ;;  %v729_v6 = vmul.f32 %v5204_v55, %v728_v30  ;;  %v735_v52 = vand.u32 2147483647, %v5181_v19  ;;  %vm5297_vm13 = vmor %vm731_vm3, %vm732_vm12 }
 0x1e4   : > { %v699_v50 = vsel %vm5241_vm15, %v698_v28, %v694_v32  ;;  %v737_v53 = vand.u32 2147483648, %v5181_v19  ;;  %v549_v59 = vmul.f32 %v548_v35, %v5161_v36  ;;  %v511_v43 = vmul.f32 %v510_v47, %v5152_v27 }
 0x1e5   : > { %v5281_v60 = vmul.f32 %v699_v50, %v675_v46  ;;  %v5284_v63 = vadd.f32 1.0, %v564_v48  ;;  %v623_v2 = vmul.f32 %v5263_v49, %v5263_v49  ;;  %v730_v26 = vadd.f32 %v5204_v55, %v729_v6 }
 0x1e6   : > { %v488_v3 = vsub.f32 1.0, %v487_v8  ;;  %v497_v4 = vand.u32 2147483648, %v5196_v1  ;;  %v5293_v9 = vmul.f32 %v714_v45, %v5109_v61  ;;  %v474_v17 = vadd.f32 1.1283791, %v473_v51 }
 0x1e7   : > { %4374 = vrcp.f32 %v5284_v63  ;;  %v5302_v20 = vmin.f32 %v583_v40, 16.0  ;;  %vm5304_vm14 = vcmp.eq.f32.partialorder %v735_v52, 8.507059e+37  ;;  %v738_v23 = vor.u32 1.1754944e-38, %v737_v53  ;;  %v5336_v40 = vpop.permute.xlu0 %1328 }
 0x1e8   : > { %vm491_vm15 = vweird.f32 %v5196_v1  ;;  %v550_v61 = vadd.f32 0.05243302, %v549_v59  ;;  %v4115_v24 = vclamps-f32 %v5281_v60, 1.0  ;;  %v495_v19 = vand.u32 2147483647, %v5196_v1 }
 0x1e9   : > { %v5272_v41 = vpop.eup %4372  ;;  %v512_v25 = vadd.f32 0.18741608, %v511_v43  ;;  %v5311_v37 = vmin.f32 %v623_v2, 16.0  ;;  %v734_v28 = vsel %vm5297_vm13, %v5204_v55, %v730_v26  ;;  %v489_v30 = vmul.f32 %v5248_v42, %v488_v3 }
 0x1ea   : > { %v527_v54 = vmul.f32 %v5272_v41, %v5224_v13  ;;  %v5317_v32 = vor.u32 1.1754944e-38, %v497_v4  ;;  %v5320_v0 = vmul.f32 %v474_v17, %v5135_v15  ;;  %vm492_vm3 = vweird.f32 %v5248_v42 }
 0x1eb   : > { %vm531_vm12 = vweird.f32 %v5224_v13  ;;  %v535_v58 = vand.u32 2147483647, %v5224_v13  ;;  %v537_v35 = vand.u32 2147483648, %v5224_v13  ;;  %v551_v46 = vmul.f32 %v550_v61, %v5161_v36  ;;  %vm5359_vm6 = vmor %vm491_vm15, %vm492_vm3 }
 0x1ec   : > { %v528_v33 = vsub.f32 1.0, %v527_v54  ;;  %v585_v55 = vmul.f32 2.1237322e-06, %v5302_v20  ;;  %v596_v47 = vmul.f32 3.8918573e-05, %v5302_v20  ;;  %v739_v15 = vsel %vm5304_vm14, %v738_v23, %v734_v28 }
 0x1ed   : > { %v5329_v39 = vpop.eup %4374  ;;  %v513_v50 = vmul.f32 %v512_v25, %v5152_v27  ;;  %v625_v6 = vmul.f32 2.1237322e-06, %v5311_v37  ;;  %v636_v8 = vmul.f32 3.8918573e-05, %v5311_v37  ;;  %v490_v45 = vadd.f32 %v5248_v42, %v489_v30 }
 0x1ee   : > { %v529_v51 = vmul.f32 %v5272_v41, %v528_v33  ;;  %v567_v48 = vmul.f32 %v5329_v39, %v5284_v63  ;;  %v586_v52 = vadd.f32 0.00028619796, %v585_v55  ;;  %vm5342_vm13 = vcmp.eq.f32.partialorder %v495_v19, 8.507059e+37 }
 0x1ef   : > { %vm532_vm14 = vweird.f32 %v5272_v41  ;;  %vm5347_vm5 = vcmp.eq.f32.partialorder %v535_v58, 8.507059e+37  ;;  %v597_v59 = vadd.f32 0.001143296, %v596_v47  ;;  %v626_v43 = vadd.f32 0.00028619796, %v625_v6 }
 0x1f0   : > { %v637_v2 = vadd.f32 0.001143296, %v636_v8  ;;  %v552_v26 = vadd.f32 0.18741608, %v551_v46  ;;  %v568_v3 = vsub.f32 1.0, %v567_v48  ;;  %v587_v4 = vmul.f32 %v586_v52, %v5302_v20  ;;  %vm5374_vm15 = vmor %vm531_vm12, %vm532_vm14 }
 0x1f1   : > { %v1348_v54 = vsel %vm8380_vm8, %v5220_v7, %v5336_v40  ;;  %v598_v17 = vmul.f32 %v597_v59, %v5302_v20  ;;  %v627_v21 = vmul.f32 %v626_v43, %v5311_v37  ;;  %v5367_v61 = vmul.f32 0.70710677, %v5259_v38 }
 0x1f2   : > { %v638_v23 = vmul.f32 %v637_v2, %v5311_v37  ;;  %v514_v19 = vadd.f32 1.1283791, %v513_v50  ;;  %v530_v7 = vadd.f32 %v5272_v41, %v529_v51  ;;  %v538_v25 = vor.u32 1.1754944e-38, %v537_v35 }
 0x1f3   : > { %v588_v28 = vadd.f32 0.0036580483, %v587_v4  ;;  %v599_v30 = vadd.f32 0.014752088, %v598_v17  ;;  %v628_v33 = vadd.f32 0.0036580483, %v627_v21  ;;  %v1374_v46 = vmul.f32 %v5367_v61, %v5367_v61 }
 0x1f4   : > { %v639_v58 = vadd.f32 0.014752088, %v638_v23  ;;  %v494_v55 = vsel %vm5359_vm6, %v5248_v42, %v490_v45  ;;  %v553_v35 = vmul.f32 %v552_v26, %v5161_v36  ;;  %v5386_v13 = vadd.f32 %v1348_v54, %v5090_v44 }
 0x1f5   : > { %v589_v47 = vmul.f32 %v588_v28, %v5302_v20  ;;  %v569_v50 = vmul.f32 %v5329_v39, %v568_v3  ;;  %v600_v6 = vmul.f32 %v599_v30, %v5302_v20  ;;  %v629_v8 = vmul.f32 %v628_v33, %v5311_v37 }
 0x1f6   : > { %v640_v51 = vmul.f32 %v639_v58, %v5311_v37  ;;  %v534_v48 = vsel %vm5374_vm15, %v5272_v41, %v530_v7  ;;  %vm571_vm6 = vweird.f32 %v5284_v63  ;;  %v5396_v42 = vmin.f32 %v1374_v46, 16.0 }
 0x1f7   : > { %v590_v36 = vadd.f32 0.05243302, %v589_v47  ;;  %vm572_vm3 = vweird.f32 %v5329_v39  ;;  %v601_v45 = vadd.f32 0.112945676, %v600_v6  ;;  %v630_v52 = vadd.f32 0.05243302, %v629_v8 }
 0x1f8   : > { %v641_v59 = vadd.f32 0.112945676, %v640_v51  ;;  %v740_v43 = vmul.f32 %v739_v15, %v5293_v9  ;;  %v515_v2 = vmul.f32 %v514_v19, %v5138_v16  ;;  %v577_v26 = vand.u32 2147483648, %v5284_v63  ;;  %vm5418_vm12 = vmor %vm571_vm6, %vm572_vm3 }
 0x1f9   : > { %v5403_v3 = vmul.f32 0.70710677, %v5386_v13  ;;  %v570_v41 = vadd.f32 %v5329_v39, %v569_v50  ;;  %v575_v4 = vand.u32 2147483647, %v5284_v63  ;;  %v602_v54 = vmul.f32 %v601_v45, %v5302_v20  ;;  %v875_v50 = vpop.permute.xlu1 %874 }
 0x1fa   : > { %v642_v11 = vmul.f32 %v641_v59, %v5311_v37  ;;  %v499_v17 = vsel %vm5342_vm13, %v5317_v32, %v494_v55  ;;  %v539_v16 = vsel %vm5347_vm5, %v538_v25, %v534_v48  ;;  %v554_v9 = vadd.f32 1.1283791, %v553_v35 }
 0x1fb   : > { %v1387_v21 = vmul.f32 3.8918573e-05, %v5396_v42  ;;  %v591_v23 = vmul.f32 %v590_v36, %v5302_v20  ;;  %v603_v19 = vadd.f32 0.4994258, %v602_v54  ;;  %v631_v53 = vmul.f32 %v630_v52, %v5311_v37 }
 0x1fc   : > { %v643_v32 = vadd.f32 0.4994258, %v642_v11  ;;  %v4116_v7 = vclamps-f32 %v740_v43, 1.0  ;;  %v748_v27 = vadd.f32 1.0, %v4115_v24  ;;  %v578_v25 = vor.u32 1.1754944e-38, %v577_v26 }
 0x1fd   : > { %v1414_v63 = vmul.f32 %v5403_v3, %v5403_v3  ;;  %v574_v28 = vsel %vm5418_vm12, %v5329_v39, %v570_v41  ;;  %vm576_vm5 = vcmp.eq.f32.partialorder %v575_v4, 8.507059e+37  ;;  %v604_v1 = vmul.f32 %v603_v19, %v5302_v20 }
 0x1fe   : > { %v644_v30 = vmul.f32 %v643_v32, %v5311_v37  ;;  %v500_v33 = vmul.f32 %v499_v17, %v5320_v0  ;;  %v540_v58 = vmul.f32 %v539_v16, %v515_v2  ;;  %v555_v46 = vmul.f32 %v554_v9, %v5141_v18 }
 0x1ff   : > { %v1388_v60 = vadd.f32 0.001143296, %v1387_v21  ;;  %v592_v24 = vadd.f32 0.18741608, %v591_v23  ;;  %v605_v55 = vadd.f32 1.0, %v604_v1  ;;  %v579_v6 = vsel %vm576_vm5, %v578_v25, %v574_v28 }
 0x200   : > { %v632_v35 = vadd.f32 0.18741608, %v631_v53  ;;  %v5436_v47 = vadd.f32 1.0, %v644_v30  ;;  %v5438_v8 = vmin.f32 %v1414_v63, 16.0  ;;  %v455_v39 = vmul.f32 0.5, %v5105_v56 }
 0x201   : > { %v749_v51 = vadd.f32 1.0, %v4116_v7  ;;  %v5442_v48 = vmul.f32 %v748_v27, %v5256_v34  ;;  %4376 = vrcp.f32 %v605_v55  ;;  %v4110_v0 = vclamps-f32 %v500_v33, 1.0 }
 0x202   : > { %4378 = vrcp.f32 %v5436_v47  ;;  %v1389_v18 = vmul.f32 %v1388_v60, %v5396_v42  ;;  %v897_v36 = vsel %vm8381_vm7, %v5004_v57, %v875_v50  ;;  %v4111_v45 = vclamps-f32 %v540_v58, 1.0 }
 0x203   : > { %v580_v52 = vmul.f32 %v579_v6, %v555_v46  ;;  %v593_v59 = vmul.f32 %v592_v24, %v5302_v20  ;;  %v633_v43 = vmul.f32 %v632_v35, %v5311_v37  ;;  %v5451_v56 = vmul.f32 0.5, %v5121_v10 }
 0x204   : > { %v450_v34 = vmul.f32 0.5, %v5126_v12  ;;  %v5455_v2 = vmul.f32 0.5, %v5130_v14  ;;  %v1427_v26 = vmul.f32 3.8918573e-05, %v5438_v8  ;;  %v5458_v41 = vmul.f32 %v749_v51, %v455_v39 }
 0x205   : > { %v768_v57 = vrot.slane %v5442_v48, 3  ;;  %v898_v4 = vsel %vm8380_vm8, %v875_v50, %v5189_v29  ;;  %v5464_v20 = vadd.f32 %v897_v36, %v5090_v44  ;;  %v5466_v37 = vadd.f32 1.0, %v4110_v0 }
 0x206   : > { %v793_v10 = vlaneseq  ;;  %v1390_v54 = vadd.f32 0.014752088, %v1389_v18  ;;  %v1428_v12 = vadd.f32 0.001143296, %v1427_v26  ;;  %v4112_v14 = vclamps-f32 %v580_v52, 1.0 }
 0x207   : > { %v4377_v11 = vpop.eup %4376  ;;  %v744_v17 = vadd.f32 1.0, %v4111_v45  ;;  %v594_v16 = vadd.f32 1.1283791, %v593_v59  ;;  %v634_v9 = vadd.f32 1.1283791, %v633_v43  ;;  %vm611_vm13 = vweird.f32 %v605_v55 }
 0x208   : > { %v4379_v15 = vpop.eup %4378  ;;  %v607_v21 = vmul.f32 %v4377_v11, %v605_v55  ;;  %v5469_v23 = vadd.f32 %v898_v4, %v5090_v44  ;;  %v5472_v19 = vmul.f32 0.70710677, %v5464_v20  ;;  %v615_v53 = vand.u32 2147483647, %v605_v55 }
 0x209   : > { %v617_v32 = vand.u32 2147483648, %v605_v55  ;;  %v647_v7 = vmul.f32 %v4379_v15, %v5436_v47  ;;  %v657_v27 = vand.u32 2147483648, %v5436_v47  ;;  %vm612_vm14 = vweird.f32 %v4377_v11 }
 0x20a   : > { %v608_v25 = vsub.f32 1.0, %v607_v21  ;;  %v1391_v63 = vmul.f32 %v1390_v54, %v5396_v42  ;;  %v1429_v28 = vmul.f32 %v1428_v12, %v5438_v8  ;;  %vm651_vm15 = vweird.f32 %v5436_v47  ;;  %vm5487_vm3 = vmor %vm611_vm13, %vm612_vm14 }
 0x20b   : > { %v648_v1 = vsub.f32 1.0, %v647_v7  ;;  %vm652_vm6 = vweird.f32 %v4379_v15  ;;  %v655_v30 = vand.u32 2147483647, %v5436_v47  ;;  %v5481_v46 = vmul.f32 0.70710677, %v5469_v23 }
 0x20c   : > { %v609_v33 = vmul.f32 %v4377_v11, %v608_v25  ;;  %v1430_v58 = vadd.f32 0.014752088, %v1429_v28  ;;  %v924_v60 = vmul.f32 %v5472_v19, %v5472_v19  ;;  %v595_v24 = vmul.f32 %v594_v16, %v5246_v31  ;;  %vm5495_vm5 = vmor %vm651_vm15, %vm652_vm6 }
 0x20d   : > { %vm5491_vm12 = vcmp.eq.f32.partialorder %v615_v53, 8.507059e+37  ;;  %v618_v47 = vor.u32 1.1754944e-38, %v617_v32  ;;  %v649_v6 = vmul.f32 %v4379_v15, %v648_v1  ;;  %v658_v0 = vor.u32 1.1754944e-38, %v657_v27 }
 0x20e   : > { %v610_v39 = vadd.f32 %v4377_v11, %v609_v33  ;;  %v1392_v18 = vadd.f32 0.112945676, %v1391_v63  ;;  %v1431_v31 = vmul.f32 %v1430_v58, %v5438_v8  ;;  %v745_v55 = vadd.f32 1.0, %v4112_v14 }
 0x20f   : > { %v635_v36 = vmul.f32 %v634_v9, %v5263_v49  ;;  %v650_v45 = vadd.f32 %v4379_v15, %v649_v6  ;;  %vm656_vm13 = vcmp.eq.f32.partialorder %v655_v30, 8.507059e+37  ;;  %vm770_vm14 = vcmask 1040384  }
 0x210   : > { %v452_v52 = vmul.f32 0.5, %v5211_v5  ;;  %v614_v59 = vsel %vm5487_vm3, %v4377_v11, %v610_v39  ;;  %v5504_v43 = vmin.f32 %v924_v60, 16.0  ;;  %v964_v26 = vmul.f32 %v5481_v46, %v5481_v46 }
 0x211   : > { %v751_v4 = vmul.f32 %v744_v17, %v450_v34  ;;  %v619_v54 = vsel %vm5491_vm12, %v618_v47, %v614_v59  ;;  %v654_v49 = vsel %vm5495_vm5, %v4379_v15, %v650_v45  ;;  %v1376_v12 = vmul.f32 2.1237322e-06, %v5396_v42 }
 0x212   : > { %vm8386_vm15 = vcmask 1044484   ;;  %vm8385_vm6 = vcmask 1045509   ;;  %v620_v5 = vmul.f32 %v619_v54, %v595_v24  ;;  %v659_v14 = vsel %vm656_vm13, %v658_v0, %v654_v49 }
 0x213   : > { %v1393_v11 = vmul.f32 %v1392_v18, %v5396_v42  ;;  %v1432_v16 = vadd.f32 0.112945676, %v1431_v31  ;;  %v752_v9 = vmul.f32 %v745_v55, %v5455_v2  ;;  %vm8384_vm3 = vcmask 1045508  }
 0x214   : > { %v453_v34 = vmul.f32 0.5, %v5234_v22  ;;  %v660_v17 = vmul.f32 %v659_v14, %v635_v36  ;;  %v1416_v21 = vmul.f32 2.1237322e-06, %v5438_v8  ;;  %vm773_vm12 = vcmask 1041408  }
 0x215   : > { %vm8397_vm5 = vcmask 1042433   ;;  %v4113_v15 = vclamps-f32 %v620_v5, 1.0  ;;  %v1433_v53 = vmul.f32 %v1432_v16, %v5438_v8  ;;  %v937_v32 = vmul.f32 3.8918573e-05, %v5504_v43 }
 0x216   : > { %v5519_v7 = vmin.f32 %v964_v26, 16.0  ;;  %v750_v27 = vmul.f32 %v5466_v37, %v5451_v56  ;;  %v764_v25 = vrot.slane %v751_v4, 7  ;;  %v4114_v2 = vclamps-f32 %v660_v17, 1.0  ;;  %v5527_v37 = vpop.permute.xlu1 %882 }
 0x217   : > { %v1377_v22 = vadd.f32 0.00028619796, %v1376_v12  ;;  %v769_v63 = vrot.slane %v5458_v41, 2  ;;  %v746_v28 = vadd.f32 1.0, %v4113_v15  ;;  %v1394_v1 = vadd.f32 0.4994258, %v1393_v11 }
 0x218   : > { %v938_v30 = vadd.f32 0.001143296, %v937_v32  ;;  %vm8383_vm13 = vcmask 1046533   ;;  %v747_v33 = vadd.f32 1.0, %v4114_v2  ;;  %v1417_v58 = vadd.f32 0.00028619796, %v1416_v21 }
 0x219   : > { %v1434_v60 = vadd.f32 0.4994258, %v1433_v53  ;;  %v765_v24 = vrot.slane %v752_v9, 6  ;;  %v753_v35 = vmul.f32 %v746_v28, %v452_v52  ;;  %v977_v56 = vmul.f32 3.8918573e-05, %v5519_v7  ;;  %v5591_v28 = vpop.permute.xlu2 %1774 }
 0x21a   : > { %v939_v50 = vmul.f32 %v938_v30, %v5504_v43  ;;  %v771_v47 = vsel %vm770_vm14, %v750_v27, %v764_v25  ;;  %vm8382_vm11 = vcmask 1044481   ;;  %vm5533_vm8 = vcmp.lt.s32.totalorder %v793_v10, 784 }
 0x21b   : > { %v754_v6 = vmul.f32 %v747_v33, %v453_v34  ;;  %v780_v39 = vsel %vm8392_vm0, %v750_v27, %v764_v25  ;;  %v766_v51 = vrot.slane %v753_v35, 5  ;;  %v1378_v0 = vmul.f32 %v1377_v22, %v5396_v42 }
 0x21c   : > { %v1395_v18 = vmul.f32 %v1394_v1, %v5396_v42  ;;  %v1418_v55 = vmul.f32 %v1417_v58, %v5438_v8  ;;  %v1435_v36 = vmul.f32 %v1434_v60, %v5438_v8  ;;  %v899_v10 = vsel %vm8391_vm9, %v5189_v29, %v5527_v37 }
 0x21d   : > { %v767_v31 = vrot.slane %v754_v6, 4  ;;  %v772_v45 = vsel %vm330_vm1, %v765_v24, %v766_v51  ;;  %v781_v52 = vsel %vm333_vm2, %v765_v24, %v766_v51  ;;  %v940_v59 = vadd.f32 0.014752088, %v939_v50 }
 0x21e   : > { %v978_v26 = vadd.f32 0.001143296, %v977_v56  ;;  %v774_v4 = vsel %vm773_vm12, %v771_v47, %v772_v45  ;;  %v783_v49 = vsel %vm8397_vm5, %v780_v39, %v781_v52  ;;  %v1379_v14 = vadd.f32 0.0036580483, %v1378_v0 }
 0x21f   : > { %v776_v54 = vsel %vm8386_vm15, %v767_v31, %v768_v57  ;;  %v785_v12 = vsel %vm8385_vm6, %v767_v31, %v768_v57  ;;  %v5557_v11 = vadd.f32 1.0, %v1395_v18  ;;  %v1419_v34 = vadd.f32 0.0036580483, %v1418_v55 }
 0x220   : > { %v778_v29 = vsel %vm8384_vm3, %v776_v54, %v769_v63  ;;  %v787_v5 = vsel %vm8383_vm13, %v785_v12, %v769_v63  ;;  %v5562_v17 = vadd.f32 %v899_v10, %v5090_v44  ;;  %v5569_v48 = vadd.f32 1.0, %v1435_v36 }
 0x221   : > { %v779_v16 = vsel %vm8408_vm4, %v774_v4, %v778_v29  ;;  %v789_v9 = vsel %vm8382_vm11, %v783_v49, %v787_v5  ;;  %v941_v57 = vmul.f32 %v940_v59, %v5504_v43  ;;  %v979_v15 = vmul.f32 %v978_v26, %v5519_v7  ;;  %v5617_v12 = vpop.permute.xlu2 %886 }
 0x222   : > { %v790_v21 = vrot.slane %v789_v9, 1  ;;  %797 = vst.msk [vmem:[%s5564_s16] ss:$8 sm:$0xf] %vm5533_vm8, %v779_v16  ;;  %v926_v53 = vmul.f32 2.1237322e-06, %v5504_v43  ;;  %4380 = vrcp.f32 %v5557_v11  ;;  %v1380_v27 = vmul.f32 %v1379_v14, %v5396_v42 }
 0x223   : > { %798 = vst.msk [vmem:[%s5564_s16] ss:$8 sm:$0x70] %vm5533_vm8, %v779_v16  ;;  %v942_v32 = vadd.f32 0.112945676, %v941_v57  ;;  %4382 = vrcp.f32 %v5569_v48  ;;  %v1420_v63 = vmul.f32 %v1419_v34, %v5438_v8  ;;  %v1797_v59 = vsel %vm8381_vm7, %v5013_v62, %v5591_v28 }
 0x224   : > { %4117 = vst.msk [vmem:[%s5564_s16 + $0x38] ss:$8 sm:$0xf] %vm5533_vm8, %v790_v21  ;;  %v980_v2 = vadd.f32 0.014752088, %v979_v15  ;;  %v5622_v14 = vadd.f32 %v1797_v59, %v5090_v44  ;;  %v900_v57 = vsel %vm8396_vm10, %v5527_v37, %v5617_v12  ;;  %v5633_v15 = vmul.f32 0.5, %v5259_v38 }
 0x225   : > { %4118 = vst.msk [vmem:[%s5564_s16 + $0x38] ss:$8 sm:$0x70] %vm5533_vm8, %v790_v21  ;;  %v943_v25 = vmul.f32 %v942_v32, %v5504_v43  ;;  %v5588_v22 = vmul.f32 0.70710677, %v5562_v17  ;;  %vm1442_vm11 = vweird.f32 %v5569_v48  ;;  %vm1402_vm3 = vweird.f32 %v5557_v11 }
 0x226   : > { %v927_v1 = vadd.f32 0.00028619796, %v926_v53  ;;  %v981_v30 = vmul.f32 %v980_v2, %v5519_v7  ;;  %v1381_v58 = vadd.f32 0.05243302, %v1380_v27  ;;  %v966_v60 = vmul.f32 2.1237322e-06, %v5519_v7 }
 0x227   : > { %v1004_v33 = vmul.f32 %v5588_v22, %v5588_v22  ;;  %v944_v35 = vadd.f32 0.4994258, %v943_v25  ;;  %v1421_v47 = vadd.f32 0.05243302, %v1420_v63  ;;  %8452 = vst [vmem:[#allocation19_spill] sm:$0xff] %v5622_v14  ;;  %v1408_v2 = vand.u32 2147483648, %v5557_v11 }
 0x228   : > { %v5597_v24 = vpop.eup %4380  ;;  %v982_v50 = vadd.f32 0.112945676, %v981_v30  ;;  %v928_v39 = vmul.f32 %v927_v1, %v5504_v43  ;;  %v967_v18 = vadd.f32 0.00028619796, %v966_v60  ;;  %v1382_v55 = vmul.f32 %v1381_v58, %v5396_v42 }
 0x229   : > { %v5599_v56 = vmin.f32 %v1004_v33, 16.0  ;;  %v5601_v6 = vpop.eup %4382  ;;  %v1398_v0 = vmul.f32 %v5597_v24, %v5557_v11  ;;  %v945_v36 = vmul.f32 %v944_v35, %v5504_v43  ;;  %v1422_v10 = vmul.f32 %v1421_v47, %v5438_v8 }
 0x22a   : > { %v983_v31 = vmul.f32 %v982_v50, %v5519_v7  ;;  %v1438_v45 = vmul.f32 %v5601_v6, %v5569_v48  ;;  %v929_v52 = vadd.f32 0.0036580483, %v928_v39  ;;  %v968_v54 = vmul.f32 %v967_v18, %v5519_v7 }
 0x22b   : > { %v1017_v51 = vmul.f32 3.8918573e-05, %v5599_v56  ;;  %v1399_v4 = vsub.f32 1.0, %v1398_v0  ;;  %v1383_v29 = vadd.f32 0.18741608, %v1382_v55  ;;  %v5619_v5 = vadd.f32 1.0, %v945_v36 }
 0x22c   : > { %v984_v49 = vadd.f32 0.4994258, %v983_v31  ;;  %v1423_v16 = vadd.f32 0.18741608, %v1422_v10  ;;  %v1439_v9 = vsub.f32 1.0, %v1438_v45  ;;  %v930_v21 = vmul.f32 %v929_v52, %v5504_v43 }
 0x22d   : > { %v1018_v26 = vadd.f32 0.001143296, %v1017_v51  ;;  %v5627_v62 = vmul.f32 0.70710677, %v5622_v14  ;;  %v1400_v53 = vmul.f32 %v5597_v24, %v1399_v4  ;;  %v969_v32 = vadd.f32 0.0036580483, %v968_v54  ;;  %v5682_v54 = vpop.permute.xlu1 %1332 }
 0x22e   : > { %v985_v27 = vmul.f32 %v984_v49, %v5519_v7  ;;  %v1384_v25 = vmul.f32 %v1383_v29, %v5396_v42  ;;  %4384 = vrcp.f32 %v5619_v5  ;;  %v1424_v1 = vmul.f32 %v1423_v16, %v5438_v8 }
 0x22f   : > { %v1019_v34 = vmul.f32 %v1018_v26, %v5599_v56  ;;  %v1824_v63 = vmul.f32 %v5627_v62, %v5627_v62  ;;  %v1440_v37 = vmul.f32 %v5601_v6, %v1439_v9  ;;  %v5645_v30 = vadd.f32 %v900_v57, %v5090_v44  ;;  %v5692_v9 = vpop.permute.xlu0 %1778 }
 0x230   : > { %vm1403_vm7 = vweird.f32 %v5597_v24  ;;  %v931_v42 = vadd.f32 0.05243302, %v930_v21  ;;  %v1006_v33 = vmul.f32 2.1237322e-06, %v5599_v56  ;;  %v1401_v58 = vadd.f32 %v5597_v24, %v1400_v53 }
 0x231   : > { %v1020_v38 = vadd.f32 0.014752088, %v1019_v34  ;;  %vm1443_vm13 = vweird.f32 %v5601_v6  ;;  %v970_v60 = vmul.f32 %v969_v32, %v5519_v7  ;;  %v5653_v8 = vadd.f32 1.0, %v985_v27  ;;  %vm5677_vm15 = vmor %vm1402_vm3, %vm1403_vm7 }
 0x232   : > { %v1446_v35 = vand.u32 2147483647, %v5569_v48  ;;  %v1448_v50 = vand.u32 2147483648, %v5569_v48  ;;  %v5657_v47 = vmin.f32 %v1824_v63, 16.0  ;;  %v1385_v51 = vadd.f32 1.1283791, %v1384_v25  ;;  %vm5670_vm6 = vmor %vm1442_vm11, %vm1443_vm13 }
 0x233   : > { %v1021_v39 = vmul.f32 %v1020_v38, %v5599_v56  ;;  %v1441_v0 = vadd.f32 %v5601_v6, %v1440_v37  ;;  %v5663_v18 = vmul.f32 0.70710677, %v5645_v30  ;;  %v1406_v55 = vand.u32 2147483647, %v5557_v11 }
 0x234   : > { %v5665_v31 = vpop.eup %4384  ;;  %v1409_v36 = vor.u32 1.1754944e-38, %v1408_v2  ;;  %v932_v45 = vmul.f32 %v931_v42, %v5504_v43  ;;  %v1007_v52 = vadd.f32 0.00028619796, %v1006_v33  ;;  %v1425_v26 = vadd.f32 1.1283791, %v1424_v1 }
 0x235   : > { %v971_v4 = vadd.f32 0.05243302, %v970_v60  ;;  %4386 = vrcp.f32 %v5653_v8  ;;  %v1022_v11 = vadd.f32 0.112945676, %v1021_v39  ;;  %v1405_v48 = vsel %vm5677_vm15, %v5597_v24, %v1401_v58 }
 0x236   : > { %vm5687_vm11 = vcmp.eq.f32.partialorder %v1446_v35, 8.507059e+37  ;;  %v1449_v29 = vor.u32 1.1754944e-38, %v1448_v50  ;;  %v1837_v16 = vmul.f32 3.8918573e-05, %v5657_v47  ;;  %v1445_v34 = vsel %vm5670_vm6, %v5601_v6, %v1441_v0 }
 0x237   : > { %v948_v21 = vmul.f32 %v5665_v31, %v5619_v5  ;;  %vm8459_vm7 = vcmask 785408   ;;  %v1044_v57 = vmul.f32 %v5663_v18, %v5663_v18  ;;  %v933_v53 = vadd.f32 0.18741608, %v932_v45 }
 0x238   : > { %v1798_v24 = vsel %vm8459_vm7, %v5591_v28, %v5692_v9  ;;  %v1008_v32 = vmul.f32 %v1007_v52, %v5599_v56  ;;  %v1349_v6 = vsel %vm8391_vm9, %v5336_v40, %v5682_v54  ;;  %vm1407_vm15 = vcmp.eq.f32.partialorder %v1406_v55, 8.507059e+37 }
 0x239   : > { %v5706_v27 = vadd.f32 %v1798_v24, %v5090_v44  ;;  %v1426_v25 = vmul.f32 %v1425_v26, %v5403_v3  ;;  %v972_v2 = vmul.f32 %v971_v4, %v5519_v7  ;;  %v1023_v28 = vmul.f32 %v1022_v11, %v5599_v56 }
 0x23a   : > { %v1386_v63 = vmul.f32 %v1385_v51, %v5367_v61  ;;  %v1410_v1 = vsel %vm1407_vm15, %v1409_v36, %v1405_v48  ;;  %v1450_v37 = vsel %vm5687_vm11, %v1449_v29, %v1445_v34  ;;  %v1838_v38 = vadd.f32 0.001143296, %v1837_v16 }
 0x23b   : > { %8460 = vst [vmem:[#allocation20_spill] sm:$0xff] %v5706_v27  ;;  %v5717_v42 = vpop.eup %4386  ;;  %v949_v33 = vsub.f32 1.0, %v948_v21  ;;  %v5720_v58 = vmul.f32 0.70710677, %v5706_v27  ;;  %v5722_v40 = vmin.f32 %v1044_v57, 16.0  ;;  %v5725_v3 = vadd.f32 %v1349_v6, %v5090_v44 }
 0x23c   : > { %v5728_v60 = vmul.f32 0.5, %v5464_v20  ;;  %v934_v61 = vmul.f32 %v933_v53, %v5504_v43  ;;  %v1826_v35 = vmul.f32 2.1237322e-06, %v5657_v47  ;;  %v1009_v50 = vadd.f32 0.0036580483, %v1008_v32 }
 0x23d   : > { %v5732_v39 = vmul.f32 %v1410_v1, %v1386_v63  ;;  %v1451_v51 = vmul.f32 %v1450_v37, %v1426_v25  ;;  %v973_v0 = vadd.f32 0.18741608, %v972_v2  ;;  %v1024_v55 = vadd.f32 0.4994258, %v1023_v28  ;;  %v5769_v37 = vpop.permute.xlu0 %890 }
 0x23e   : > { %v1361_v36 = vmul.f32 0.5, %v5386_v13  ;;  %v5736_v10 = vmul.f32 0.5, %v5469_v23  ;;  %v988_v45 = vmul.f32 %v5717_v42, %v5653_v8  ;;  %v1839_v20 = vmul.f32 %v1838_v38, %v5657_v47 }
 0x23f   : > { %v950_v43 = vmul.f32 %v5665_v31, %v949_v33  ;;  %v1864_v52 = vmul.f32 %v5720_v58, %v5720_v58  ;;  %v1057_v59 = vmul.f32 3.8918573e-05, %v5722_v40  ;;  %v5746_v26 = vmul.f32 0.70710677, %v5725_v3 }
 0x240   : > { %v935_v4 = vadd.f32 1.1283791, %v934_v61  ;;  %v1827_v13 = vadd.f32 0.00028619796, %v1826_v35  ;;  %v5749_v23 = vmul.f32 0.5, %v5562_v17  ;;  %v1010_v11 = vmul.f32 %v1009_v50, %v5599_v56 }
 0x241   : > { %v4138_v48 = vclamps-f32 %v5732_v39, 1.0  ;;  %v4139_v49 = vclamps-f32 %v1451_v51, 1.0  ;;  %v974_v29 = vmul.f32 %v973_v0, %v5519_v7  ;;  %v1025_v16 = vmul.f32 %v1024_v55, %v5599_v56 }
 0x242   : > { %vm953_vm6 = vweird.f32 %v5665_v31  ;;  %v956_v34 = vand.u32 2147483647, %v5619_v5  ;;  %v989_v21 = vsub.f32 1.0, %v988_v45  ;;  %v1840_v24 = vadd.f32 0.014752088, %v1839_v20 }
 0x243   : > { %v951_v57 = vadd.f32 %v5665_v31, %v950_v43  ;;  %v5758_v53 = vmin.f32 %v1864_v52, 16.0  ;;  %v1058_v17 = vadd.f32 0.001143296, %v1057_v59  ;;  %v1454_v32 = vmul.f32 %v5746_v26, %v5746_v26 }
 0x244   : > { %v936_v6 = vmul.f32 %v935_v4, %v5472_v19  ;;  %v958_v7 = vand.u32 2147483648, %v5619_v5  ;;  %v1828_v25 = vmul.f32 %v1827_v13, %v5657_v47  ;;  %v1011_v2 = vadd.f32 0.05243302, %v1010_v11 }
 0x245   : > { %v1655_v28 = vadd.f32 1.0, %v4139_v49  ;;  %vm952_vm3 = vweird.f32 %v5619_v5  ;;  %v5766_v63 = vadd.f32 1.0, %v1025_v16  ;;  %v1046_v1 = vmul.f32 2.1237322e-06, %v5722_v40 }
 0x246   : > { %vm5773_vm13 = vmor %vm952_vm3, %vm953_vm6  ;;  %v975_v19 = vadd.f32 1.1283791, %v974_v29  ;;  %v990_v33 = vmul.f32 %v5717_v42, %v989_v21  ;;  %v1841_v61 = vmul.f32 %v1840_v24, %v5657_v47  ;;  %v1059_v35 = vmul.f32 %v1058_v17, %v5722_v40 }
 0x247   : > { %v955_v5 = vsel %vm5773_vm13, %v5665_v31, %v951_v57  ;;  %vm957_vm11 = vcmp.eq.f32.partialorder %v956_v34, 8.507059e+37  ;;  %v1877_v50 = vmul.f32 3.8918573e-05, %v5758_v53  ;;  %v5784_v39 = vmin.f32 %v1454_v32, 16.0 }
 0x248   : > { %v959_v51 = vor.u32 1.1754944e-38, %v958_v7  ;;  %v1829_v0 = vadd.f32 0.0036580483, %v1828_v25  ;;  %v1012_v55 = vmul.f32 %v1011_v2, %v5599_v56  ;;  %vm8463_vm7 = vcmask 392192  }
 0x249   : > { %v901_v45 = vsel %vm8463_vm7, %v5617_v12, %v5769_v37  ;;  %v1662_v20 = vmul.f32 %v1655_v28, %v1361_v36  ;;  %vm993_vm15 = vweird.f32 %v5717_v42  ;;  %4388 = vrcp.f32 %v5766_v63 }
 0x24a   : > { %v1047_v43 = vadd.f32 0.00028619796, %v1046_v1  ;;  %v960_v31 = vsel %vm957_vm11, %v959_v51, %v955_v5  ;;  %v991_v52 = vadd.f32 %v5717_v42, %v990_v33  ;;  %v1842_v59 = vadd.f32 0.112945676, %v1841_v61 }
 0x24b   : > { %v1060_v4 = vadd.f32 0.014752088, %v1059_v35  ;;  %vm992_vm6 = vweird.f32 %v5653_v8  ;;  %v998_v13 = vand.u32 2147483648, %v5653_v8  ;;  %v1878_v11 = vadd.f32 0.001143296, %v1877_v50 }
 0x24c   : > { %v1467_v49 = vmul.f32 3.8918573e-05, %v5784_v39  ;;  %v996_v12 = vand.u32 2147483647, %v5653_v8  ;;  %v1830_v36 = vmul.f32 %v1829_v0, %v5657_v47  ;;  %v1013_v29 = vadd.f32 0.18741608, %v1012_v55  ;;  %vm5802_vm3 = vmor %vm992_vm6, %vm993_vm15 }
 0x24d   : > { %v1061_v16 = vmul.f32 %v1060_v4, %v5722_v40  ;;  %v1654_v34 = vadd.f32 1.0, %v4138_v48  ;;  %v961_v21 = vmul.f32 %v960_v31, %v936_v6  ;;  %v976_v24 = vmul.f32 %v975_v19, %v5481_v46 }
 0x24e   : > { %v1048_v17 = vmul.f32 %v1047_v43, %v5722_v40  ;;  %v995_v8 = vsel %vm5802_vm3, %v5717_v42, %v991_v52  ;;  %v1843_v32 = vmul.f32 %v1842_v59, %v5657_v47  ;;  %v5812_v48 = vadd.f32 %v901_v45, %v5090_v44 }
 0x24f   : > { %v1062_v7 = vadd.f32 0.112945676, %v1061_v16  ;;  %v5814_v6 = vpop.eup %4388  ;;  %v1675_v46 = vrot.slane %v1662_v20, 7  ;;  %v999_v25 = vor.u32 1.1754944e-38, %v998_v13  ;;  %v1879_v2 = vmul.f32 %v1878_v11, %v5758_v53  ;;  %v5839_v16 = vpop.permute.xlu1 %1782 }
 0x250   : > { %v1468_v28 = vadd.f32 0.001143296, %v1467_v49  ;;  %vm997_vm13 = vcmp.eq.f32.partialorder %v996_v12, 8.507059e+37  ;;  %v1831_v1 = vadd.f32 0.05243302, %v1830_v36  ;;  %v1014_v38 = vmul.f32 %v1013_v29, %v5599_v56 }
 0x251   : > { %v1063_v19 = vmul.f32 %v1062_v7, %v5722_v40  ;;  %v4123_v42 = vclamps-f32 %v961_v21, 1.0  ;;  %v1000_v33 = vsel %vm997_vm13, %v999_v25, %v995_v8  ;;  %v1049_v61 = vadd.f32 0.0036580483, %v1048_v17 }
 0x252   : > { %v1469_v35 = vmul.f32 %v1468_v28, %v5784_v39  ;;  %v1844_v5 = vadd.f32 0.4994258, %v1843_v32  ;;  %v1028_v50 = vmul.f32 %v5814_v6, %v5766_v63  ;;  %v1866_v51 = vmul.f32 2.1237322e-06, %v5758_v53 }
 0x253   : > { %v1064_v0 = vadd.f32 0.4994258, %v1063_v19  ;;  %v1880_v55 = vadd.f32 0.014752088, %v1879_v2  ;;  %v5824_v20 = vmul.f32 0.70710677, %v5812_v48  ;;  %v1661_v56 = vmul.f32 %v1654_v34, %v5633_v15  ;;  %v5837_v15 = vpop.permute.xlu2 %1336 }
 0x254   : > { %v1470_v45 = vadd.f32 0.014752088, %v1469_v35  ;;  %v1001_v43 = vmul.f32 %v1000_v33, %v976_v24  ;;  %v1832_v31 = vmul.f32 %v1831_v1, %v5657_v47  ;;  %v1015_v59 = vadd.f32 1.1283791, %v1014_v38 }
 0x255   : > { %v1065_v52 = vmul.f32 %v1064_v0, %v5722_v40  ;;  %v5830_v4 = vmul.f32 0.5, %v5645_v30  ;;  %v1050_v13 = vmul.f32 %v1049_v61, %v5722_v40  ;;  %v5835_v49 = vsel %vm770_vm14, %v1661_v56, %v1675_v46 }
 0x256   : > { %v1471_v11 = vmul.f32 %v1470_v45, %v5784_v39  ;;  %v1204_v12 = vadd.f32 1.0, %v4123_v42  ;;  %v1029_v36 = vsub.f32 1.0, %v1028_v50  ;;  %v1867_v29 = vadd.f32 0.00028619796, %v1866_v51 }
 0x257   : > { %v5842_v34 = vsel %vm8392_vm0, %v1661_v56, %v1675_v46  ;;  %v1845_v30 = vmul.f32 %v1844_v5, %v5657_v47  ;;  %v1881_v21 = vmul.f32 %v1880_v55, %v5758_v53  ;;  %v1084_v24 = vmul.f32 %v5824_v20, %v5824_v20 }
 0x258   : > { %v4124_v57 = vclamps-f32 %v1001_v43, 1.0  ;;  %v1833_v17 = vadd.f32 0.18741608, %v1832_v31  ;;  %v5848_v8 = vadd.f32 1.0, %v1065_v52  ;;  %v1472_v32 = vadd.f32 0.112945676, %v1471_v11 }
 0x259   : > { %v5851_v7 = vmul.f32 %v1015_v59, %v5588_v22  ;;  %v1051_v25 = vadd.f32 0.05243302, %v1050_v13  ;;  %v1456_v2 = vmul.f32 2.1237322e-06, %v5784_v39  ;;  %v1350_v46 = vsel %vm8396_vm10, %v5682_v54, %v5837_v15 }
 0x25a   : > { %v5858_v28 = vmul.f32 %v1204_v12, %v5728_v60  ;;  %v1030_v1 = vmul.f32 %v5814_v6, %v1029_v36  ;;  %v1868_v38 = vmul.f32 %v1867_v29, %v5758_v53  ;;  %4390 = vrcp.f32 %v5848_v8  ;;  %v895_v12 = vpop.permute.xlu1 %894 }
 0x25b   : > { %v5863_v19 = vadd.f32 1.0, %v1845_v30  ;;  %v1882_v22 = vadd.f32 0.112945676, %v1881_v21  ;;  %v1473_v42 = vmul.f32 %v1472_v32, %v5784_v39  ;;  %v5866_v33 = vmin.f32 %v1084_v24, 16.0 }
 0x25c   : > { %v1205_v61 = vadd.f32 1.0, %v4124_v57  ;;  %v1834_v35 = vmul.f32 %v1833_v17, %v5657_v47  ;;  %vm1032_vm11 = vweird.f32 %v5766_v63  ;;  %v5871_v54 = vadd.f32 %v1350_v46, %v5090_v44 }
 0x25d   : > { %vm1033_vm7 = vweird.f32 %v5814_v6  ;;  %v1036_v60 = vand.u32 2147483647, %v5766_v63  ;;  %v1052_v5 = vmul.f32 %v1051_v25, %v5722_v40  ;;  %v1457_v50 = vadd.f32 0.00028619796, %v1456_v2 }
 0x25e   : > { %v1031_v51 = vadd.f32 %v5814_v6, %v1030_v1  ;;  %v1869_v0 = vadd.f32 0.0036580483, %v1868_v38  ;;  %v1474_v55 = vadd.f32 0.4994258, %v1473_v42  ;;  %v1097_v45 = vmul.f32 3.8918573e-05, %v5866_v33  ;;  %vm5894_vm15 = vmor %vm1032_vm11, %vm1033_vm7 }
 0x25f   : > { %4392 = vrcp.f32 %v5863_v19  ;;  %v1883_v47 = vmul.f32 %v1882_v22, %v5758_v53  ;;  %v1086_v56 = vmul.f32 2.1237322e-06, %v5866_v33  ;;  %v5882_v43 = vmul.f32 0.70710677, %v5871_v54 }
 0x260   : > { %v5884_v31 = vpop.eup %4390  ;;  %v5887_v52 = vmul.f32 %v1205_v61, %v5736_v10  ;;  %v1835_v59 = vadd.f32 1.1283791, %v1834_v35  ;;  %v1038_v13 = vand.u32 2147483648, %v5766_v63  ;;  %v1098_v11 = vadd.f32 0.001143296, %v1097_v45 }
 0x261   : > { %v1053_v29 = vadd.f32 0.18741608, %v1052_v5  ;;  %v1068_v30 = vmul.f32 %v5884_v31, %v5848_v8  ;;  %v1458_v10 = vmul.f32 %v1457_v50, %v5784_v39  ;;  %v1475_v21 = vmul.f32 %v1474_v55, %v5784_v39 }
 0x262   : > { %v1035_v24 = vsel %vm5894_vm15, %v5814_v6, %v1031_v51  ;;  %v1870_v57 = vmul.f32 %v1869_v0, %v5758_v53  ;;  %v1099_v63 = vmul.f32 %v1098_v11, %v5866_v33  ;;  %v1494_v17 = vmul.f32 %v5882_v43, %v5882_v43 }
 0x263   : > { %v1884_v32 = vadd.f32 0.4994258, %v1883_v47  ;;  %v1069_v25 = vsub.f32 1.0, %v1068_v30  ;;  %v1087_v2 = vadd.f32 0.00028619796, %v1086_v56  ;;  %vm8468_vm6 = vcmask 261120  }
 0x264   : > { %v902_v46 = vsel %vm8468_vm6, %v5769_v37, %v895_v12  ;;  %v1225_v1 = vrot.slane %v5887_v52, 7  ;;  %v5913_v38 = vmul.f32 %v1835_v59, %v5627_v62  ;;  %vm1037_vm3 = vcmp.eq.f32.partialorder %v1036_v60, 8.507059e+37 }
 0x265   : > { %v1039_v6 = vor.u32 1.1754944e-38, %v1038_v13  ;;  %v5915_v22 = vpop.eup %4392  ;;  %v1054_v42 = vmul.f32 %v1053_v29, %v5722_v40  ;;  %v1459_v61 = vadd.f32 0.0036580483, %v1458_v10  ;;  %v5918_v35 = vadd.f32 1.0, %v1475_v21 }
 0x266   : > { %8469 = vst [vmem:[#allocation21_spill] sm:$0xff] %v5913_v38  ;;  %v1100_v5 = vadd.f32 0.014752088, %v1099_v63  ;;  %v1871_v51 = vadd.f32 0.05243302, %v1870_v57  ;;  %v5920_v0 = vmin.f32 %v1494_v17, 16.0  ;;  %v5923_v37 = vadd.f32 %v902_v46, %v5090_v44 }
 0x267   : > { %v1040_v50 = vsel %vm1037_vm3, %v1039_v6, %v1035_v24  ;;  %v1885_v62 = vmul.f32 %v1884_v32, %v5758_v53  ;;  %v1070_v60 = vmul.f32 %v5884_v31, %v1069_v25  ;;  %v1088_v55 = vmul.f32 %v1087_v2, %v5866_v33 }
 0x268   : > { %v1101_v45 = vmul.f32 %v1100_v5, %v5866_v33  ;;  %v1848_v40 = vmul.f32 %v5915_v22, %v5863_v19  ;;  %v1858_v56 = vand.u32 2147483648, %v5863_v19  ;;  %v1507_v59 = vmul.f32 3.8918573e-05, %v5920_v0 }
 0x269   : > { %v1055_v13 = vadd.f32 1.1283791, %v1054_v42  ;;  %v1460_v11 = vmul.f32 %v1459_v61, %v5784_v39  ;;  %4394 = vrcp.f32 %v5918_v35  ;;  %v1041_v29 = vmul.f32 %v1040_v50, %v5851_v7 }
 0x26a   : > { %v1102_v36 = vadd.f32 0.112945676, %v1101_v45  ;;  %v1872_v30 = vmul.f32 %v1871_v51, %v5758_v53  ;;  %v1508_v10 = vadd.f32 0.001143296, %v1507_v59  ;;  %v5939_v21 = vmul.f32 0.70710677, %v5923_v37 }
 0x26b   : > { %v5941_v24 = vadd.f32 1.0, %v1885_v62  ;;  %v1071_v57 = vadd.f32 %v5884_v31, %v1070_v60  ;;  %vm1073_vm13 = vweird.f32 %v5884_v31  ;;  %v1089_v63 = vadd.f32 0.0036580483, %v1088_v55 }
 0x26c   : > { %v1849_v17 = vsub.f32 1.0, %v1848_v40  ;;  %v1078_v32 = vand.u32 2147483648, %v5848_v8  ;;  %v1103_v25 = vmul.f32 %v1102_v36, %v5866_v33  ;;  %v5948_v7 = vadd.f32 %v895_v12, %v5090_v44 }
 0x26d   : > { %vm1072_vm11 = vweird.f32 %v5848_v8  ;;  %v1076_v2 = vand.u32 2147483647, %v5848_v8  ;;  %v1461_v46 = vadd.f32 0.05243302, %v1460_v11  ;;  %v1509_v6 = vmul.f32 %v1508_v10, %v5920_v0 }
 0x26e   : > { %v1873_v42 = vadd.f32 0.18741608, %v1872_v30  ;;  %v1056_v61 = vmul.f32 %v1055_v13, %v5663_v18  ;;  %vm5954_vm7 = vmor %vm1072_vm11, %vm1073_vm13  ;;  %v1104_v50 = vadd.f32 0.4994258, %v1103_v25  ;;  %v1124_v51 = vmul.f32 %v5939_v21, %v5939_v21 }
 0x26f   : > { %v5960_v12 = vpop.eup %4394  ;;  %v4125_v62 = vclamps-f32 %v1041_v29, 1.0  ;;  %4396 = vrcp.f32 %v5941_v24  ;;  %v1075_v8 = vsel %vm5954_vm7, %v5884_v31, %v1071_v57  ;;  %v1090_v60 = vmul.f32 %v1089_v63, %v5866_v33 }
 0x270   : > { %v1079_v18 = vor.u32 1.1754944e-38, %v1078_v32  ;;  %v1105_v55 = vmul.f32 %v1104_v50, %v5866_v33  ;;  %v1496_v45 = vmul.f32 2.1237322e-06, %v5920_v0  ;;  %v5970_v40 = vmul.f32 0.70710677, %v5948_v7 }
 0x271   : > { %vm1077_vm15 = vcmp.eq.f32.partialorder %v1076_v2, 8.507059e+37  ;;  %v1462_v59 = vmul.f32 %v1461_v46, %v5784_v39  ;;  %v1510_v13 = vadd.f32 0.014752088, %v1509_v6  ;;  %v1799_v11 = vsel %vm8391_vm9, %v5692_v9, %v5839_v16 }
 0x272   : > { %v1080_v36 = vsel %vm1077_vm15, %v1079_v18, %v1075_v8  ;;  %v1478_v31 = vmul.f32 %v5960_v12, %v5918_v35  ;;  %v5978_v29 = vadd.f32 1.0, %v1105_v55  ;;  %v5980_v30 = vmin.f32 %v1124_v51, 16.0 }
 0x273   : > { %v1850_v10 = vmul.f32 %v5915_v22, %v1849_v17  ;;  %v1206_v57 = vadd.f32 1.0, %v4125_v62  ;;  %v1874_v63 = vmul.f32 %v1873_v42, %v5758_v53  ;;  %v1091_v32 = vadd.f32 0.05243302, %v1090_v60 }
 0x274   : > { %4398 = vrcp.f32 %v5978_v29  ;;  %v1497_v25 = vadd.f32 0.00028619796, %v1496_v45  ;;  %v5986_v2 = vadd.f32 %v1799_v11, %v5090_v44  ;;  %v1164_v9 = vmul.f32 %v5970_v40, %v5970_v40 }
 0x275   : > { %v5990_v46 = vpop.eup %4396  ;;  %v5996_v17 = vsel %vm770_vm14, %v5858_v28, %v1225_v1  ;;  %v6002_v53 = vsel %vm8392_vm0, %v5858_v28, %v1225_v1  ;;  %v1081_v6 = vmul.f32 %v1080_v36, %v1056_v61  ;;  %v1511_v42 = vmul.f32 %v1510_v13, %v5920_v0  ;;  %v6029_v13 = vpop.f32.mrf.mxu0 }
 0x276   : > { %8472 = vst [vmem:[#allocation22_spill] sm:$0xff] %v5986_v2  ;;  %v6005_v5 = vor.u32 1.1754944e-38, %v1858_v56  ;;  %v1463_v50 = vadd.f32 0.18741608, %v1462_v59  ;;  %v1479_v51 = vsub.f32 1.0, %v1478_v31  ;;  %v6009_v8 = vadd.f32 %v5915_v22, %v1850_v10 }
 0x277   : > { %v1126_v62 = vmul.f32 2.1237322e-06, %v5980_v30  ;;  %v6012_v60 = vmul.f32 %v1206_v57, %v5749_v23  ;;  %v6014_v52 = vadd.f32 1.1283791, %v1874_v63  ;;  %v6017_v28 = vmul.f32 0.5, %v5812_v48  ;;  %8473 = vst [vmem:[#allocation23_spill] sm:$0xff] %v6029_v13 }
 0x278   : > { %v1092_v1 = vmul.f32 %v1091_v32, %v5866_v33  ;;  %v1498_v56 = vmul.f32 %v1497_v25, %v5920_v0  ;;  %v6022_v61 = vmul.f32 0.70710677, %v5986_v2  ;;  %v6024_v18 = vmin.f32 %v1164_v9, 16.0 }
 0x279   : > { %v1888_v55 = vmul.f32 %v5990_v46, %v5941_v24  ;;  %v4126_v45 = vclamps-f32 %v1081_v6, 1.0  ;;  %v1512_v59 = vadd.f32 0.112945676, %v1511_v42  ;;  %v1464_v11 = vmul.f32 %v1463_v50, %v5784_v39 }
 0x27a   : > { %v6031_v48 = vpop.eup %4398  ;;  %v1480_v36 = vmul.f32 %v5960_v12, %v1479_v51  ;;  %vm1482_vm6 = vweird.f32 %v5918_v35  ;;  %v1127_v31 = vadd.f32 0.00028619796, %v1126_v62  ;;  %vm1483_vm3 = vweird.f32 %v5960_v12 }
 0x27b   : > { %v1108_v10 = vmul.f32 %v6031_v48, %v5978_v29  ;;  %v1137_v57 = vmul.f32 3.8918573e-05, %v5980_v30  ;;  %v1166_v63 = vmul.f32 2.1237322e-06, %v6024_v18  ;;  %v1093_v32 = vadd.f32 0.18741608, %v1092_v1  ;;  %vm6058_vm13 = vmor %vm1482_vm6, %vm1483_vm3 }
 0x27c   : > { %v1499_v25 = vadd.f32 0.0036580483, %v1498_v56  ;;  %v1904_v9 = vmul.f32 %v6022_v61, %v6022_v61  ;;  %v2231_v39 = vrot.slane %v6029_v13, 6  ;;  %v1207_v42 = vadd.f32 1.0, %v4126_v45 }
 0x27d   : > { %v1488_v50 = vand.u32 2147483648, %v5918_v35  ;;  %v1513_v51 = vmul.f32 %v1512_v59, %v5920_v0  ;;  %v6048_v62 = vmul.f32 0.5, %v5725_v3  ;;  %v1481_v47 = vadd.f32 %v5960_v12, %v1480_v36 }
 0x27e   : > { %v1486_v1 = vand.u32 2147483647, %v5918_v35  ;;  %v1128_v56 = vmul.f32 %v1127_v31, %v5980_v30  ;;  %2232 = vrot.lane.b32.xlu1 %v2231_v39, %s4658_s17  ;;  %v1889_v23 = vsub.f32 1.0, %v1888_v55  ;;  %v1109_v59 = vsub.f32 1.0, %v1108_v10 }
 0x27f   : > { %v1138_v3 = vadd.f32 0.001143296, %v1137_v57  ;;  %v1167_v6 = vadd.f32 0.00028619796, %v1166_v63  ;;  %v1465_v2 = vadd.f32 1.1283791, %v1464_v11  ;;  %v1094_v36 = vmul.f32 %v1093_v32, %v5866_v33 }
 0x280   : > { %v1500_v14 = vmul.f32 %v1499_v25, %v5920_v0  ;;  %v6064_v31 = vmin.f32 %v1904_v9, 16.0  ;;  %v1226_v55 = vrot.slane %v6012_v60, 6  ;;  %v6068_v39 = vmul.f32 %v1207_v42, %v5830_v4 }
 0x281   : > { %v1489_v35 = vor.u32 1.1754944e-38, %v1488_v50  ;;  %v1514_v27 = vadd.f32 0.4994258, %v1513_v51  ;;  %v1485_v10 = vsel %vm6058_vm13, %v5960_v12, %v1481_v47  ;;  %vm1487_vm11 = vcmp.eq.f32.partialorder %v1486_v1, 8.507059e+37 }
 0x282   : > { %v1129_v57 = vadd.f32 0.0036580483, %v1128_v56  ;;  %v1177_v11 = vmul.f32 3.8918573e-05, %v6024_v18  ;;  %v1890_v33 = vmul.f32 %v5990_v46, %v1889_v23  ;;  %v1110_v63 = vmul.f32 %v6031_v48, %v1109_v59 }
 0x283   : > { %v1139_v32 = vmul.f32 %v1138_v3, %v5980_v30  ;;  %v1168_v25 = vmul.f32 %v1167_v6, %v6024_v18  ;;  %v1466_v4 = vmul.f32 %v1465_v2, %v5746_v26  ;;  %v1095_v9 = vadd.f32 1.1283791, %v1094_v36 }
 0x284   : > { %v1501_v42 = vadd.f32 0.05243302, %v1500_v14  ;;  %v1917_v50 = vmul.f32 3.8918573e-05, %v6064_v31  ;;  %v1227_v47 = vrot.slane %v6068_v39, 5  ;;  %v1490_v12 = vsel %vm1487_vm11, %v1489_v35, %v1485_v10 }
 0x285   : > { %v1515_v51 = vmul.f32 %v1514_v27, %v5920_v0  ;;  %v1140_v1 = vadd.f32 0.014752088, %v1139_v32  ;;  %vm1892_vm7 = vweird.f32 %v5941_v24  ;;  %vm1893_vm15 = vweird.f32 %v5990_v46 }
 0x286   : > { %v1130_v23 = vmul.f32 %v1129_v57, %v5980_v30  ;;  %v1169_v56 = vadd.f32 0.0036580483, %v1168_v25  ;;  %v1178_v6 = vadd.f32 0.001143296, %v1177_v11  ;;  %v2227_v26 = vrot.slane %v6029_v13, 4 }
 0x287   : > { %v1111_v14 = vadd.f32 %v6031_v48, %v1110_v63  ;;  %vm1113_vm6 = vweird.f32 %v6031_v48  ;;  %v1116_v2 = vand.u32 2147483647, %v5978_v29  ;;  %v1141_v45 = vmul.f32 %v1140_v1, %v5980_v30 }
 0x288   : > { %v1118_v27 = vand.u32 2147483648, %v5978_v29  ;;  %v1502_v59 = vmul.f32 %v1501_v42, %v5920_v0  ;;  %v1906_v3 = vmul.f32 2.1237322e-06, %v6064_v31  ;;  %v1918_v36 = vadd.f32 0.001143296, %v1917_v50  ;;  %2228 = vrot.lane.b32.xlu0 %v2227_v26, %s4660_s9  ;;  %v6109_v26 = vpop.permute.xlu1 %1344 }
 0x289   : > { %v1096_v35 = vmul.f32 %v1095_v9, %v5824_v20  ;;  %vm1112_vm3 = vweird.f32 %v5978_v29  ;;  %v1142_v10 = vadd.f32 0.112945676, %v1141_v45  ;;  %v1179_v57 = vmul.f32 %v1178_v6, %v6024_v18  ;;  %v2219_v6 = vpop.f32.mrf.mxu0 }
 0x28a   : > { %v1491_v11 = vmul.f32 %v1490_v12, %v1466_v4  ;;  %vm6097_vm13 = vmor %vm1112_vm3, %vm1113_vm6  ;;  %v6101_v32 = vadd.f32 1.0, %v1515_v51  ;;  %v1131_v25 = vadd.f32 0.05243302, %v1130_v23  ;;  %v1170_v42 = vmul.f32 %v1169_v56, %v6024_v18 }
 0x28b   : > { %v1115_v50 = vsel %vm6097_vm13, %v6031_v48, %v1111_v14  ;;  %vm1117_vm11 = vcmp.eq.f32.partialorder %v1116_v2, 8.507059e+37  ;;  %v1143_v20 = vmul.f32 %v1142_v10, %v5980_v30  ;;  %v1180_v29 = vadd.f32 0.014752088, %v1179_v57  ;;  %vm6130_vm6 = vmor %vm1892_vm7, %vm1893_vm15 }
 0x28c   : > { %v1119_v9 = vor.u32 1.1754944e-38, %v1118_v27  ;;  %v1503_v1 = vadd.f32 0.18741608, %v1502_v59  ;;  %v1907_v4 = vadd.f32 0.00028619796, %v1906_v3  ;;  %v1919_v12 = vmul.f32 %v1918_v36, %v6064_v31 }
 0x28d   : > { %v1144_v51 = vadd.f32 0.4994258, %v1143_v20  ;;  %v1181_v23 = vmul.f32 %v1180_v29, %v6024_v18  ;;  %v2223_v56 = vrot.slane %v6029_v13, 2  ;;  %v6115_v48 = vadd.f32 %v6109_v26, %v5090_v44 }
 0x28e   : > { %v1120_v14 = vsel %vm1117_vm11, %v1119_v9, %v1115_v50  ;;  %4400 = vrcp.f32 %v6101_v32  ;;  %v1132_v2 = vmul.f32 %v1131_v25, %v5980_v30  ;;  %v1171_v45 = vadd.f32 0.05243302, %v1170_v42 }
 0x28f   : > { %v1145_v27 = vmul.f32 %v1144_v51, %v5980_v30  ;;  %v1182_v59 = vadd.f32 0.112945676, %v1181_v23  ;;  %2224 = vrot.lane.b32.xlu2 %v2223_v56, %s4659_s6  ;;  %v2239_v3 = vrot.slane %v2219_v6, 2  ;;  %v2243_v36 = vrot.slane %v2219_v6, 4 }
 0x290   : > { %v6122_v10 = vadd.f32 %v5990_v46, %v1890_v33  ;;  %v1504_v57 = vmul.f32 %v1503_v1, %v5920_v0  ;;  %v1908_v63 = vmul.f32 %v1907_v4, %v6064_v31  ;;  %v1920_v50 = vadd.f32 0.014752088, %v1919_v12 }
 0x291   : > { %v1121_v42 = vmul.f32 %v1120_v14, %v1096_v35  ;;  %v6134_v20 = vadd.f32 1.0, %v1145_v27  ;;  %v1183_v29 = vmul.f32 %v1182_v59, %v6024_v18  ;;  %v6138_v33 = vmul.f32 0.70710677, %v6115_v48  ;;  %2244 = vrot.lane.b32.xlu1 %v2243_v36, %s4663_s21  ;;  %2240 = vrot.lane.b32.xlu0 %v2239_v3, %s4662_s8 }
 0x292   : > { %v8480_v0 = vand.u32 2147483648, %v5941_v24  ;;  %v1232_v35 = vsel %vm330_vm1, %v1226_v55, %v1227_v47  ;;  %v6152_v1 = vmul.f32 0.5, %v5923_v37  ;;  %v1172_v4 = vmul.f32 %v1171_v45, %v6024_v18 }
 0x293   : > { %v1238_v12 = vsel %vm333_vm2, %v1226_v55, %v1227_v47  ;;  %v4140_v51 = vclamps-f32 %v1491_v11, 1.0  ;;  %v1133_v23 = vadd.f32 0.18741608, %v1132_v2  ;;  %4402 = vrcp.f32 %v6134_v20  ;;  %v1341_v11 = vpop.permute.xlu0 %1340 }
 0x294   : > { %v6144_v9 = vor.u32 1.1754944e-38, %v8480_v0  ;;  %v6161_v56 = vpop.eup %4400  ;;  %v1505_v14 = vadd.f32 1.1283791, %v1504_v57  ;;  %v1909_v27 = vadd.f32 0.0036580483, %v1908_v63  ;;  %v6168_v45 = vmul.f32 0.5, %v5948_v7 }
 0x295   : > { %v4127_v39 = vclamps-f32 %v1121_v42, 1.0  ;;  %v1921_v60 = vmul.f32 %v1920_v50, %v6064_v31  ;;  %v1184_v55 = vadd.f32 0.4994258, %v1183_v29  ;;  %v1614_v47 = vmul.f32 %v6138_v33, %v6138_v33 }
 0x296   : > { %v6175_v2 = vsel %vm773_vm12, %v5996_v17, %v1232_v35  ;;  %v6179_v59 = vsel %vm8397_vm5, %v6002_v53, %v1238_v12  ;;  %v6182_v3 = vmul.f32 0.5, %v5871_v54  ;;  %v1173_v7 = vadd.f32 0.18741608, %v1172_v4 }
 0x297   : > { %v6184_v36 = vadd.f32 1.0, %v4140_v51  ;;  %v1134_v57 = vmul.f32 %v1133_v23, %v5980_v30  ;;  %v1185_v63 = vmul.f32 %v1184_v55, %v6024_v18  ;;  %v6188_v50 = vmin.f32 %v1614_v47, 16.0  ;;  %2236 = vrot.lane.b32.xlu2 %v2219_v6, %s4661_s14 }
 0x298   : > { %v6192_v17 = vmul.f32 %v1505_v14, %v5882_v43  ;;  %v1518_v53 = vmul.f32 %v6161_v56, %v6101_v32  ;;  %v1910_v54 = vmul.f32 %v1909_v27, %v6064_v31  ;;  %vm8481_vm7 = vcmask 392192  }
 0x299   : > { %v1351_v42 = vsel %vm8481_vm7, %v5837_v15, %v1341_v11  ;;  %v4403_v29 = vpop.eup %4402  ;;  %v1208_v0 = vadd.f32 1.0, %v4127_v39  ;;  %v1922_v35 = vadd.f32 0.112945676, %v1921_v60  ;;  %v6200_v4 = vadd.f32 1.0, %v1185_v63  ;;  %v6223_v63 = vpop.f32.mrf.mxu0 }
 0x29a   : > { %v1148_v43 = vmul.f32 %v4403_v29, %v6134_v20  ;;  %v1174_v12 = vmul.f32 %v1173_v7, %v6024_v18  ;;  %v1616_v51 = vmul.f32 2.1237322e-06, %v6188_v50  ;;  %v1135_v23 = vadd.f32 1.1283791, %v1134_v57 }
 0x29b   : > { %4404 = vrcp.f32 %v6200_v4  ;;  %v1627_v15 = vmul.f32 3.8918573e-05, %v6188_v50  ;;  %v6209_v14 = vadd.f32 %v1351_v42, %v5090_v44  ;;  %v1519_v27 = vsub.f32 1.0, %v1518_v53 }
 0x29c   : > { %v6211_v39 = vadd.f32 0.05243302, %v1910_v54  ;;  %v1149_v60 = vsub.f32 1.0, %v1148_v43  ;;  %vm8482_vm15 = vcmask 261120   ;;  %v6216_v47 = vmul.f32 %v1208_v0, %v6017_v28 }
 0x29d   : > { %v1352_v55 = vsel %vm8482_vm15, %v1341_v11, %v6109_v26  ;;  %v6219_v18 = vmul.f32 %v1922_v35, %v6064_v31  ;;  %v1156_v7 = vand.u32 2147483647, %v6134_v20  ;;  %v1158_v57 = vand.u32 2147483648, %v6134_v20  ;;  %v4478_v35 = vld [vmem:[%s8365_s4 + $0x18] sm:$0xf] }
 0x29e   : > { %v1150_v42 = vmul.f32 %v4403_v29, %v1149_v60  ;;  %vm1153_vm3 = vweird.f32 %v4403_v29  ;;  %v1175_v53 = vadd.f32 1.1283791, %v1174_v12  ;;  %v1617_v54 = vadd.f32 0.00028619796, %v1616_v51 }
 0x29f   : > { %v1136_v43 = vmul.f32 %v1135_v23, %v5939_v21  ;;  %v1628_v37 = vadd.f32 0.001143296, %v1627_v15  ;;  %v6227_v26 = vadd.f32 %v1352_v55, %v5090_v44  ;;  %v6230_v28 = vmul.f32 0.70710677, %v6209_v14 }
 0x2a0   : > { %v6233_v11 = vmul.f32 %v6161_v56, %v1519_v27  ;;  %v1151_v0 = vadd.f32 %v4403_v29, %v1150_v42  ;;  %vm1152_vm13 = vweird.f32 %v6134_v20  ;;  %v3545_v12 = vmul.f32 %v4478_v35, %v6223_v63  ;;  %v6246_v42 = vpop.f32.mrf.mxu3 }
 0x2a1   : > { %v4405_v21 = vpop.eup %4404  ;;  %vm1154_vm11 = vmor %vm1152_vm13, %vm1153_vm3  ;;  %v1159_v51 = vor.u32 1.1754944e-38, %v1158_v57  ;;  %v1618_v23 = vmul.f32 %v1617_v54, %v6188_v50  ;;  %v1629_v15 = vmul.f32 %v1628_v37, %v6188_v50  ;;  %v1534_v27 = vmul.f32 %v6230_v28, %v6230_v28  ;;  %8483 = vst [vmem:[#allocation24_spill] sm:$0xff] %v6246_v42 }
 0x2a2   : > { %v1155_v60 = vsel %vm1154_vm11, %v4403_v29, %v1151_v0  ;;  %vm1157_vm7 = vcmp.eq.f32.partialorder %v1156_v7, 8.507059e+37  ;;  %v1176_v20 = vmul.f32 %v1175_v53, %v5970_v40  ;;  %v1188_v55 = vmul.f32 %v4405_v21, %v6200_v4  ;;  %4210 = vmatpush.msk.msrb.mxu2 %vm8408_vm4, %v3545_v12 }
 0x2a3   : > { %v1160_v35 = vsel %vm1157_vm7, %v1159_v51, %v1155_v60  ;;  %v1196_v57 = vand.u32 2147483647, %v6200_v4  ;;  %v1630_v6 = vadd.f32 0.014752088, %v1629_v15  ;;  %v6251_v54 = vmul.f32 0.70710677, %v6227_v26 }
 0x2a4   : > { %vm1522_vm15 = vweird.f32 %v6101_v32  ;;  %vm1523_vm3 = vweird.f32 %v6161_v56  ;;  %v1161_v37 = vmul.f32 %v1160_v35, %v1136_v43  ;;  %v1189_v29 = vsub.f32 1.0, %v1188_v55 }
 0x2a5   : > { %v1198_v40 = vand.u32 2147483648, %v6200_v4  ;;  %v6256_v7 = vmin.f32 %v1534_v27, 16.0  ;;  %vm1193_vm13 = vweird.f32 %v4405_v21  ;;  %v1619_v53 = vadd.f32 0.0036580483, %v1618_v23 }
 0x2a6   : > { %v1631_v0 = vmul.f32 %v1630_v6, %v6188_v50  ;;  %v2681_v12 = vrot.slane %v6246_v42, 6  ;;  %v4128_v51 = vclamps-f32 %v1161_v37, 1.0  ;;  %v1190_v15 = vmul.f32 %v4405_v21, %v1189_v29 }
 0x2a7   : > { %v1536_v60 = vmul.f32 2.1237322e-06, %v6256_v7  ;;  %v1547_v30 = vmul.f32 3.8918573e-05, %v6256_v7  ;;  %vm1192_vm11 = vweird.f32 %v6200_v4  ;;  %v1574_v55 = vmul.f32 %v6251_v54, %v6251_v54 }
 0x2a8   : > { %v1632_v43 = vadd.f32 0.112945676, %v1631_v0  ;;  %2682 = vrot.lane.b32.xlu1 %v2681_v12, %s4658_s17  ;;  %v2677_v23 = vrot.slane %v6246_v42, 4  ;;  %v1191_v27 = vadd.f32 %v4405_v21, %v1190_v15  ;;  %v1209_v6 = vadd.f32 1.0, %v4128_v51  ;;  %vm1194_vm7 = vmor %vm1192_vm11, %vm1193_vm13 }
 0x2a9   : > { %v1537_v35 = vadd.f32 0.00028619796, %v1536_v60  ;;  %v1548_v13 = vadd.f32 0.001143296, %v1547_v30  ;;  %vm1197_vm9 = vcmp.eq.f32.partialorder %v1196_v57, 8.507059e+37  ;;  %v1199_v37 = vor.u32 1.1754944e-38, %v1198_v40 }
 0x2aa   : > { %v1633_v29 = vmul.f32 %v1632_v43, %v6188_v50  ;;  %v3539_v4 = vrot.slane %v6223_v63, 4  ;;  %2678 = vrot.lane.b32.xlu0 %v2677_v23, %s4660_s9  ;;  %v1195_v0 = vsel %vm1194_vm7, %v4405_v21, %v1191_v27  ;;  %v1216_v38 = vmul.f32 %v1209_v6, %v6152_v1 }
 0x2ab   : > { %v1620_v12 = vmul.f32 %v1619_v53, %v6188_v50  ;;  %v1538_v15 = vmul.f32 %v1537_v35, %v6256_v7  ;;  %v8484_v51 = vand.u32 2147483647, %v6101_v32  ;;  %v1912_v57 = vmul.f32 %v6211_v39, %v6064_v31 }
 0x2ac   : > { %v1200_v40 = vsel %vm1197_vm9, %v1199_v37, %v1195_v0  ;;  %v1634_v60 = vadd.f32 0.4994258, %v1633_v29  ;;  %v6282_v43 = vmin.f32 %v1574_v55, 16.0  ;;  %v1924_v21 = vadd.f32 0.4994258, %v6219_v18  ;;  %vm6297_vm9 = vmor %vm1522_vm15, %vm1523_vm3  ;;  %v4479_v0 = vld [vmem:[%s8365_s4 + $0x10] sm:$0xff] }
 0x2ad   : > { %vm6276_vm0 = vcmp.eq.f32.partialorder %v8484_v51, 8.507059e+37  ;;  %v1201_v1 = vmul.f32 %v1200_v40, %v1176_v20  ;;  %v1539_v23 = vadd.f32 0.0036580483, %v1538_v15  ;;  %v1549_v53 = vmul.f32 %v1548_v13, %v6256_v7 }
 0x2ae   : > { %v1228_v27 = vrot.slane %v6216_v47, 4  ;;  %v1635_v6 = vmul.f32 %v1634_v60, %v6188_v50  ;;  %v1576_v35 = vmul.f32 2.1237322e-06, %v6282_v43  ;;  %v3541_v51 = vsel %vm8408_vm4, %v6223_v63, %v3539_v4 }
 0x2af   : > { %v1521_v39 = vadd.f32 %v6161_v56, %v6233_v11  ;;  %v4129_v55 = vclamps-f32 %v1201_v1, 1.0  ;;  %v1229_v37 = vrot.slane %v1216_v38, 3  ;;  %v1621_v29 = vadd.f32 0.05243302, %v1620_v12 }
 0x2b0   : > { %v6301_v47 = vadd.f32 1.0, %v1635_v6  ;;  %v1550_v18 = vadd.f32 0.014752088, %v1549_v53  ;;  %v1587_v20 = vmul.f32 3.8918573e-05, %v6282_v43  ;;  %v2673_v63 = vrot.slane %v6246_v42, 2 }
 0x2b1   : > { %v1210_v4 = vadd.f32 1.0, %v4129_v55  ;;  %v1540_v11 = vmul.f32 %v1539_v23, %v6256_v7  ;;  %v1577_v38 = vadd.f32 0.00028619796, %v1576_v35  ;;  %v3544_v12 = vmul.f32 %v4479_v0, %v3541_v51 }
 0x2b2   : > { %v8489_v15 = vand.u32 2147483648, %v6101_v32  ;;  %v6311_v60 = vadd.f32 0.18741608, %v1912_v57  ;;  %v1925_v1 = vmul.f32 %v1924_v21, %v6064_v31  ;;  %4406 = vrcp.f32 %v6301_v47  ;;  %2674 = vrot.lane.b32.xlu2 %v2673_v63, %s4659_s6  ;;  %v6322_v32 = vpop.f32.mrf.mxu1  ;;  %v4480_v63 = vld [vmem:[%s8365_s4 + $0x8] sm:$0xff] }
 0x2b3   : > { %v1525_v23 = vsel %vm6297_vm9, %v6161_v56, %v1521_v39  ;;  %v1217_v53 = vmul.f32 %v1210_v4, %v6168_v45  ;;  %vm8490_vm15 = vcmask 1044484   ;;  %v1551_v35 = vmul.f32 %v1550_v18, %v6256_v7  ;;  %3562 = vmatpush.msrb.mxu2 %v3544_v12  ;;  %8491 = vst [vmem:[#allocation25_spill] sm:$0xff] %v6322_v32 }
 0x2b4   : > { %v1529_v40 = vor.u32 1.1754944e-38, %v8489_v15  ;;  %v1234_v6 = vsel %vm8490_vm15, %v1228_v27, %v1229_v37  ;;  %vm8492_vm3 = vcmask 1045509   ;;  %v1578_v21 = vmul.f32 %v1577_v38, %v6282_v43 }
 0x2b5   : > { %v1240_v57 = vsel %vm8492_vm3, %v1228_v27, %v1229_v37  ;;  %v1588_v55 = vadd.f32 0.001143296, %v1587_v20  ;;  %v3543_v13 = vmul.f32 %v4480_v63, %v3541_v51  ;;  %v1230_v56 = vrot.slane %v1217_v53, 2  ;;  %v4481_v27 = vld [vmem:[%s8365_s4] sm:$0xff] }
 0x2b6   : > { %v1622_v45 = vmul.f32 %v1621_v29, %v6188_v50  ;;  %v1541_v39 = vadd.f32 0.05243302, %v1540_v11  ;;  %v1552_v4 = vadd.f32 0.112945676, %v1551_v35  ;;  %v1579_v0 = vadd.f32 0.0036580483, %v1578_v21 }
 0x2b7   : > { %v1589_v18 = vmul.f32 %v1588_v55, %v6282_v43  ;;  %3563 = vmatpush.msrb.mxu2 %v3543_v13  ;;  %v3542_v37 = vmul.f32 %v4481_v27, %v3541_v51  ;;  %v3131_v20 = vrot.slane %v6322_v32, 6  ;;  %v1530_v38 = vsel %vm6276_vm0, %v1529_v40, %v1525_v23  ;;  %v1795_v40 = vpop.permute.xlu1 %1794  ;;  %v6348_v23 = vpop.permute.xlu0 %1790  ;;  %v4482_v21 = vld [vmem:[%s4917_s5] sm:$0xff] }
 0x2b8   : > { %vm8493_vm13 = vcmask 1045508   ;;  %vm8494_vm11 = vcmask 1046533   ;;  %v1553_v11 = vmul.f32 %v1552_v4, %v6256_v7  ;;  %v6340_v15 = vpop.eup %4406  ;;  %vm8495_vm7 = vcmask 1044481  }
 0x2b9   : > { %v1235_v12 = vsel %vm8493_vm13, %v1234_v6, %v1230_v56  ;;  %v1241_v29 = vsel %vm8494_vm11, %v1240_v57, %v1230_v56  ;;  %v1580_v35 = vmul.f32 %v1579_v0, %v6282_v43  ;;  %v1590_v30 = vadd.f32 0.014752088, %v1589_v18  ;;  %3564 = vmatpush.msrb.mxu2 %v3542_v37  ;;  %3132 = vrot.lane.b32.xlu1 %v3131_v20, %s4658_s17 }
 0x2ba   : > { %v1236_v53 = vsel %vm8408_vm4, %v6175_v2, %v1235_v12  ;;  %v1242_v51 = vsel %vm8495_vm7, %v6179_v59, %v1241_v29  ;;  %v1623_v57 = vadd.f32 0.18741608, %v1622_v45  ;;  %v1638_v2 = vmul.f32 %v6340_v15, %v6301_v47 }
 0x2bb   : > { %v1243_v6 = vrot.slane %v1242_v51, 1  ;;  %4130 = vst.msk [vmem:[%s5564_s16 + $0x1] ss:$8 sm:$0xf] %vm5533_vm8, %v1236_v53  ;;  %v1542_v59 = vmul.f32 %v1541_v39, %v6256_v7  ;;  %vm8496_vm0 = vcmask 228352   ;;  %v1591_v63 = vmul.f32 %v1590_v30, %v6282_v43 }
 0x2bc   : > { %4211 = vmatmul.msk.f32.vlgmr.msrb.gmra.mxu2 %vm8496_vm0, %v4482_v21  ;;  %4131 = vst.msk [vmem:[%s5564_s16 + $0x1] ss:$8 sm:$0x70] %vm5533_vm8, %v1236_v53  ;;  %v1554_v55 = vadd.f32 0.4994258, %v1553_v11  ;;  %v3127_v13 = vrot.slane %v6322_v32, 4  ;;  %v6364_v56 = vadd.f32 %v1795_v40, %v5090_v44  ;;  %v6368_v45 = vmul.f32 %v6184_v36, %v6048_v62  ;;  %v1787_v11 = vpop.permute.xlu2 %1786  ;;  %vm8499_vm13 = vmmov %vm8496_vm0 }
 0x2bd   : > { %4132 = vst.msk [vmem:[%s5564_s16 + $0x39] ss:$8 sm:$0xf] %vm5533_vm8, %v1243_v6  ;;  %v1639_v39 = vsub.f32 1.0, %v1638_v2  ;;  %v1581_v4 = vadd.f32 0.05243302, %v1580_v35  ;;  %v1531_v36 = vmul.f32 %v1530_v38, %v6192_v17  ;;  %v1624_v17 = vmul.f32 %v1623_v57, %v6188_v50 }
 0x2be   : > { %8497 = vst [vmem:[#allocation26_spill] sm:$0xff] %v6364_v56  ;;  %vm8498_vm9 = vcmask 261120   ;;  %v1555_v18 = vmul.f32 %v1554_v55, %v6256_v7  ;;  %v1592_v27 = vadd.f32 0.112945676, %v1591_v63  ;;  %3128 = vrot.lane.b32.xlu0 %v3127_v13, %s4660_s9  ;;  %v3123_v37 = vrot.slane %v6322_v32, 2 }
 0x2bf   : > { %v1802_v0 = vsel %vm8498_vm9, %v6348_v23, %v1795_v40  ;;  %4133 = vst.msk [vmem:[%s5564_s16 + $0x39] ss:$8 sm:$0x70] %vm5533_vm8, %v1243_v6  ;;  %v6385_v20 = vadd.f32 1.0, %v1925_v1  ;;  %v1543_v12 = vadd.f32 0.18741608, %v1542_v59  ;;  %v1640_v53 = vmul.f32 %v6340_v15, %v1639_v39 }
 0x2c0   : > { %v6382_v62 = vadd.f32 %v1802_v0, %v5090_v44  ;;  %v6388_v29 = vmul.f32 0.70710677, %v6364_v56  ;;  %v6391_v51 = vadd.f32 1.0, %v1555_v18  ;;  %v1593_v35 = vmul.f32 %v1592_v27, %v6282_v43  ;;  %3124 = vrot.lane.b32.xlu2 %v3123_v37, %s4659_s6  ;;  %v4483_v21 = vld [vmem:[%s4917_s5 + $0x8] sm:$0x3f]  ;;  %s4231_s5 = smul.u32 7, %s4632_s25 }
 0x2c1   : > { %vm1642_vm15 = vweird.f32 %v6301_v47  ;;  %v1646_v1 = vand.u32 2147483647, %v6301_v47  ;;  %vm1643_vm3 = vweird.f32 %v6340_v15  ;;  %v1582_v40 = vmul.f32 %v1581_v4, %v6282_v43 }
 0x2c2   : > { %v6396_v30 = vmul.f32 0.70710677, %v6382_v62  ;;  %v2064_v38 = vmul.f32 %v6388_v29, %v6388_v29  ;;  %4408 = vrcp.f32 %v6391_v51  ;;  %v1800_v6 = vsel %vm8396_vm10, %v5839_v16, %v1787_v11  ;;  %vm6427_vm11 = vmor %vm1642_vm15, %vm1643_vm3 }
 0x2c3   : > { %v1648_v2 = vand.u32 2147483648, %v6301_v47  ;;  %v1544_v50 = vmul.f32 %v1543_v12, %v6256_v7  ;;  %v1594_v57 = vadd.f32 0.4994258, %v1593_v35  ;;  %v6417_v63 = vmul.f32 %v6311_v60, %v6064_v31  ;;  %v6444_v35 = vpop.f32.mrf.mxu3 }
 0x2c4   : > { %v6410_v59 = vmin.f32 %v2064_v38, 16.0  ;;  %4212 = vmatmul.msk.f32.gmra.mxu2 %vm8499_vm13, %v4483_v21  ;;  %v1641_v13 = vadd.f32 %v6340_v15, %v1640_v53  ;;  %v2024_v16 = vmul.f32 %v6396_v30, %v6396_v30  ;;  %4410 = vrcp.f32 %v6385_v20 }
 0x2c5   : > { %v1625_v7 = vadd.f32 1.1283791, %v1624_v17  ;;  %v1595_v4 = vmul.f32 %v1594_v57, %v6282_v43  ;;  %v6433_v31 = vadd.f32 %v1800_v6, %v5090_v44  ;;  %v4141_v60 = vclamps-f32 %v1531_v36, 1.0 }
 0x2c6   : > { %v1583_v0 = vadd.f32 0.18741608, %v1582_v40  ;;  %v2077_v18 = vmul.f32 3.8918573e-05, %v6410_v59  ;;  %v6436_v27 = vmin.f32 %v2024_v16, 16.0  ;;  %vm6438_vm7 = vcmp.eq.f32.partialorder %v1646_v1, 8.507059e+37 }
 0x2c7   : > { %v1649_v47 = vor.u32 1.1754944e-38, %v1648_v2  ;;  %v1545_v12 = vadd.f32 1.1283791, %v1544_v50  ;;  %v6442_v53 = vadd.f32 1.0, %v1595_v4  ;;  %v1645_v36 = vsel %vm6427_vm11, %v6340_v15, %v1641_v13 }
 0x2c8   : > { %v4409_v17 = vpop.eup %4408  ;;  %v1566_v38 = vand.u32 2147483647, %v6391_v51  ;;  %v2078_v40 = vadd.f32 0.001143296, %v2077_v18  ;;  %v2037_v6 = vmul.f32 3.8918573e-05, %v6436_v27  ;;  %2686 = vrot.lane.b32.xlu2 %v6444_v35, %s4661_s14  ;;  %v1626_v15 = vmul.f32 %v1625_v7, %v6138_v33 }
 0x2c9   : > { %v1558_v1 = vmul.f32 %v4409_v17, %v6391_v51  ;;  %v1568_v2 = vand.u32 2147483648, %v6391_v51  ;;  %4412 = vrcp.f32 %v6442_v53  ;;  %v6457_v50 = vmul.f32 0.70710677, %v6433_v31 }
 0x2ca   : > { %v1657_v57 = vadd.f32 1.0, %v4141_v60  ;;  %vm1562_vm0 = vweird.f32 %v6391_v51  ;;  %v1584_v21 = vmul.f32 %v1583_v0, %v6282_v43  ;;  %v6462_v13 = vpop.eup %4410  ;;  %v1650_v16 = vsel %vm6438_vm7, %v1649_v47, %v1645_v36 }
 0x2cb   : > { %v1559_v39 = vsub.f32 1.0, %v1558_v1  ;;  %vm1563_vm9 = vweird.f32 %v4409_v17  ;;  %v2079_v4 = vmul.f32 %v2078_v40, %v6410_v59  ;;  %v1546_v18 = vmul.f32 %v1545_v12, %v6230_v28 }
 0x2cc   : > { %vm6468_vm15 = vcmp.eq.f32.partialorder %v1566_v38, 8.507059e+37  ;;  %v2038_v33 = vadd.f32 0.001143296, %v2037_v6  ;;  %vm8506_vm3 = vcmask 392192   ;;  %v1569_v60 = vor.u32 1.1754944e-38, %v1568_v2  ;;  %vm6478_vm13 = vmor %vm1562_vm0, %vm1563_vm9  ;;  %v6487_v2 = vpop.f32.mrf.mxu1 }
 0x2cd   : > { %v1801_v7 = vsel %vm8506_vm3, %v1787_v11, %v6348_v23  ;;  %v1560_v43 = vmul.f32 %v4409_v17, %v1559_v39  ;;  %v2080_v0 = vadd.f32 0.014752088, %v2079_v4  ;;  %v1944_v37 = vmul.f32 %v6457_v50, %v6457_v50 }
 0x2ce   : > { %v1651_v47 = vmul.f32 %v1650_v16, %v1626_v15  ;;  %v1585_v28 = vadd.f32 1.1283791, %v1584_v21  ;;  %v2066_v12 = vmul.f32 2.1237322e-06, %v6410_v59  ;;  %v2039_v38 = vmul.f32 %v2038_v33, %v6436_v27 }
 0x2cf   : > { %v4413_v40 = vpop.eup %4412  ;;  %v1561_v23 = vadd.f32 %v4409_v17, %v1560_v43  ;;  %v2081_v11 = vmul.f32 %v2080_v0, %v6410_v59  ;;  %v2026_v6 = vmul.f32 2.1237322e-06, %v6436_v27  ;;  %v2689_v1 = vrot.slane %v6444_v35, 2 }
 0x2d0   : > { %v1598_v51 = vmul.f32 %v4413_v40, %v6442_v53  ;;  %vm1602_vm11 = vweird.f32 %v6442_v53  ;;  %v1606_v15 = vand.u32 2147483647, %v6442_v53  ;;  %v2040_v21 = vadd.f32 0.014752088, %v2039_v38  ;;  %3136 = vrot.lane.b32.xlu2 %v6487_v2, %s4661_s14 }
 0x2d1   : > { %v1565_v16 = vsel %vm6478_vm13, %v4409_v17, %v1561_v23  ;;  %v1608_v39 = vand.u32 2147483648, %v6442_v53  ;;  %v2082_v4 = vadd.f32 0.112945676, %v2081_v11  ;;  %v6497_v33 = vmin.f32 %v1944_v37, 16.0  ;;  %2690 = vrot.lane.b32.xlu0 %v2689_v1, %s4662_s8 }
 0x2d2   : > { %v1570_v43 = vsel %vm6468_vm15, %v1569_v60, %v1565_v16  ;;  %v1599_v0 = vsub.f32 1.0, %v1598_v51  ;;  %vm1603_vm7 = vweird.f32 %v4413_v40  ;;  %v2041_v38 = vmul.f32 %v2040_v21, %v6436_v27 }
 0x2d3   : > { %v1664_v32 = vmul.f32 %v1657_v57, %v6182_v3  ;;  %v1571_v42 = vmul.f32 %v1570_v43, %v1546_v18  ;;  %v2083_v36 = vmul.f32 %v2082_v4, %v6410_v59  ;;  %v1946_v17 = vmul.f32 2.1237322e-06, %v6497_v33  ;;  %vm6512_vm0 = vmor %vm1602_vm11, %vm1603_vm7 }
 0x2d4   : > { %v4144_v23 = vclamps-f32 %v1651_v47, 1.0  ;;  %v1600_v11 = vmul.f32 %v4413_v40, %v1599_v0  ;;  %v2042_v37 = vadd.f32 0.112945676, %v2041_v38  ;;  %v6507_v56 = vadd.f32 %v1801_v7, %v5090_v44 }
 0x2d5   : > { %v4142_v1 = vclamps-f32 %v1571_v42, 1.0  ;;  %v1586_v55 = vmul.f32 %v1585_v28, %v6251_v54  ;;  %v1609_v3 = vor.u32 1.1754944e-38, %v1608_v39  ;;  %v2067_v57 = vadd.f32 0.00028619796, %v2066_v12 }
 0x2d6   : > { %v1601_v18 = vadd.f32 %v4413_v40, %v1600_v11  ;;  %vm1607_vm9 = vcmp.eq.f32.partialorder %v1606_v15, 8.507059e+37  ;;  %v2027_v51 = vadd.f32 0.00028619796, %v2026_v6  ;;  %v2043_v47 = vmul.f32 %v2042_v37, %v6436_v27 }
 0x2d7   : > { %v1677_v21 = vrot.slane %v1664_v32, 5  ;;  %v1366_v7 = vmul.f32 0.5, %v6115_v48  ;;  %v2084_v16 = vadd.f32 0.4994258, %v2083_v36  ;;  %v1947_v42 = vadd.f32 0.00028619796, %v1946_v17 }
 0x2d8   : > { %v1364_v54 = vmul.f32 0.5, %v6209_v14  ;;  %v1605_v53 = vsel %vm6512_vm0, %v4413_v40, %v1601_v18  ;;  %v1658_v28 = vadd.f32 1.0, %v4142_v1  ;;  %v2044_v4 = vadd.f32 0.4994258, %v2043_v47 }
 0x2d9   : > { %v1660_v43 = vadd.f32 1.0, %v4144_v23  ;;  %v1610_v39 = vsel %vm1607_vm9, %v1609_v3, %v1605_v53  ;;  %v6522_v12 = vmul.f32 0.70710677, %v6507_v56  ;;  %v1957_v6 = vmul.f32 3.8918573e-05, %v6497_v33 }
 0x2da   : > { %vm1852_vm15 = vweird.f32 %v5863_v19  ;;  %vm1853_vm3 = vweird.f32 %v5915_v22  ;;  %v1611_v48 = vmul.f32 %v1610_v39, %v1586_v55  ;;  %v2068_v32 = vmul.f32 %v2067_v57, %v6410_v59 }
 0x2db   : > { %v2028_v14 = vmul.f32 %v2027_v51, %v6436_v27  ;;  %v2045_v40 = vmul.f32 %v2044_v4, %v6436_v27  ;;  %v1928_v15 = vmul.f32 %v6462_v13, %v6385_v20  ;;  %v1936_v0 = vand.u32 2147483647, %v6385_v20  ;;  %vm6585_vm9 = vmor %vm1852_vm15, %vm1853_vm3 }
 0x2dc   : > { %v2085_v38 = vmul.f32 %v2084_v16, %v6410_v59  ;;  %v1948_v36 = vmul.f32 %v1947_v42, %v6497_v33  ;;  %v8511_v17 = vrot.slane %v6368_v45, 6  ;;  %v1365_v11 = vmul.f32 0.5, %v6227_v26 }
 0x2dd   : > { %v4143_v37 = vclamps-f32 %v1611_v48, 1.0  ;;  %v1665_v1 = vmul.f32 %v1658_v28, %v1364_v54  ;;  %v1667_v3 = vmul.f32 %v1660_v43, %v1366_v7  ;;  %v1958_v57 = vadd.f32 0.001143296, %v1957_v6 }
 0x2de   : > { %v1682_v23 = vsel %vm330_vm1, %v8511_v17, %v1677_v21  ;;  %v8512_v55 = vmov %v8511_v17  ;;  %v1984_v18 = vmul.f32 %v6522_v12, %v6522_v12  ;;  %v2069_v47 = vadd.f32 0.0036580483, %v2068_v32 }
 0x2df   : > { %v1688_v60 = vsel %vm333_vm2, %v8512_v55, %v1677_v21  ;;  %v1659_v51 = vadd.f32 1.0, %v4143_v37  ;;  %v2029_v16 = vadd.f32 0.0036580483, %v2028_v14  ;;  %v6544_v42 = vadd.f32 1.0, %v2045_v40 }
 0x2e0   : > { %v8513_v53 = vand.u32 2147483647, %v5941_v24  ;;  %v1683_v45 = vsel %vm773_vm12, %v5835_v49, %v1682_v23  ;;  %v1929_v21 = vsub.f32 1.0, %v1928_v15  ;;  %v6554_v7 = vadd.f32 1.0, %v2085_v38 }
 0x2e1   : > { %v1949_v54 = vadd.f32 0.0036580483, %v1948_v36  ;;  %v1666_v28 = vmul.f32 %v1659_v51, %v1365_v11  ;;  %v1678_v4 = vrot.slane %v1665_v1, 4  ;;  %v1959_v43 = vmul.f32 %v1958_v57, %v6497_v33 }
 0x2e2   : > { %vm6548_vm13 = vcmp.eq.f32.partialorder %v8513_v53, 8.507059e+37  ;;  %v6557_v39 = vmin.f32 %v1984_v18, 16.0  ;;  %v1689_v24 = vsel %vm8397_vm5, %v5842_v34, %v1688_v60  ;;  %v1680_v6 = vrot.slane %v1667_v3, 2 }
 0x2e3   : > { %v2693_v48 = vrot.slane %v6444_v35, 4  ;;  %v3139_v32 = vrot.slane %v6487_v2, 2  ;;  %v1679_v14 = vrot.slane %v1666_v28, 3  ;;  %v2070_v49 = vmul.f32 %v2069_v47, %v6410_v59 }
 0x2e4   : > { %v2030_v40 = vmul.f32 %v2029_v16, %v6436_v27  ;;  %4414 = vrcp.f32 %v6544_v42  ;;  %v8516_v15 = vand.u32 2147483647, %v5863_v19  ;;  %v1930_v34 = vmul.f32 %v6462_v13, %v1929_v21 }
 0x2e5   : > { %4416 = vrcp.f32 %v6554_v7  ;;  %v1960_v35 = vadd.f32 0.014752088, %v1959_v43  ;;  %v1986_v36 = vmul.f32 2.1237322e-06, %v6557_v39  ;;  %2694 = vrot.lane.b32.xlu1 %v2693_v48, %s4663_s21  ;;  %3140 = vrot.lane.b32.xlu0 %v3139_v32, %s4662_s8  ;;  %vm8519_vm7 = vcmask 1044484  }
 0x2e6   : > { %vm6568_vm11 = vcmp.eq.f32.partialorder %v8516_v15, 8.507059e+37  ;;  %v1684_v17 = vsel %vm8519_vm7, %v1678_v4, %v1679_v14  ;;  %vm8520_vm0 = vcmask 1045509   ;;  %v1950_v11 = vmul.f32 %v1949_v54, %v6497_v33 }
 0x2e7   : > { %v1690_v23 = vsel %vm8520_vm0, %v1678_v4, %v1679_v14  ;;  %v1997_v37 = vmul.f32 3.8918573e-05, %v6557_v39  ;;  %vm8523_vm10 = vcmask 1045508   ;;  %vm8524_vm5 = vcmask 1046533  }
 0x2e8   : > { %v1685_v55 = vsel %vm8523_vm10, %v1684_v17, %v1680_v6  ;;  %v1691_v60 = vsel %vm8524_vm5, %v1690_v23, %v1680_v6  ;;  %v1961_v3 = vmul.f32 %v1960_v35, %v6497_v33  ;;  %v1987_v57 = vadd.f32 0.00028619796, %v1986_v36 }
 0x2e9   : > { %v1686_v18 = vsel %vm8408_vm4, %v1683_v45, %v1685_v55  ;;  %vm8525_vm7 = vcmask 1044481   ;;  %v2071_v47 = vadd.f32 0.05243302, %v2070_v49  ;;  %v2031_v16 = vadd.f32 0.05243302, %v2030_v40 }
 0x2ea   : > { %v1692_v51 = vsel %vm8525_vm7, %v1689_v24, %v1691_v60  ;;  %vm1932_vm15 = vweird.f32 %v6385_v20  ;;  %vm1933_vm3 = vweird.f32 %v6462_v13  ;;  %4145 = vst.msk [vmem:[%s5564_s16 + $0x2] ss:$8 sm:$0xf] %vm5533_vm8, %v1686_v18  ;;  %v1962_v53 = vadd.f32 0.112945676, %v1961_v3  ;;  %v6599_v21 = vpop.eup %4414 }
 0x2eb   : > { %v1693_v19 = vrot.slane %v1692_v51, 1  ;;  %v1855_v45 = vsel %vm6585_vm9, %v5915_v22, %v6009_v8  ;;  %v1938_v54 = vand.u32 2147483648, %v6385_v20  ;;  %4146 = vst.msk [vmem:[%s5564_s16 + $0x2] ss:$8 sm:$0x70] %vm5533_vm8, %v1686_v18  ;;  %v1988_v28 = vmul.f32 %v1987_v57, %v6557_v39  ;;  %v6610_v43 = vpop.eup %4416  ;;  %vm6632_vm10 = vmor %vm1932_vm15, %vm1933_vm3  ;;  %v8529_v18 = vld [vmem:[#allocation21_spill] sm:$0xff] }
 0x2ec   : > { %v1998_v4 = vadd.f32 0.001143296, %v1997_v37  ;;  %v1931_v24 = vadd.f32 %v6462_v13, %v1930_v34  ;;  %v1951_v6 = vadd.f32 0.05243302, %v1950_v11  ;;  %v1963_v48 = vmul.f32 %v1962_v53, %v6497_v33 }
 0x2ed   : > { %4147 = vst.msk [vmem:[%s5564_s16 + $0x3a] ss:$8 sm:$0xf] %vm5533_vm8, %v1693_v19  ;;  %v3143_v22 = vrot.slane %v6487_v2, 4  ;;  %v1876_v8 = vmul.f32 %v6014_v52, %v5720_v58  ;;  %v8526_v32 = vsel %vm6130_vm6, %v5990_v46, %v6122_v10  ;;  %v2072_v58 = vmul.f32 %v2071_v47, %v6410_v59 }
 0x2ee   : > { %v1900_v14 = vsel %vm6548_vm13, %v6144_v9, %v8526_v32  ;;  %4148 = vst.msk [vmem:[%s5564_s16 + $0x3a] ss:$8 sm:$0x70] %vm5533_vm8, %v1693_v19  ;;  %v1999_v52 = vmul.f32 %v1998_v4, %v6557_v39  ;;  %v1915_v46 = vadd.f32 1.1283791, %v6417_v63  ;;  %v2048_v10 = vmul.f32 %v6599_v21, %v6544_v42 }
 0x2ef   : > { %v1964_v25 = vadd.f32 0.4994258, %v1963_v48  ;;  %v1989_v9 = vadd.f32 0.0036580483, %v1988_v28  ;;  %3144 = vrot.lane.b32.xlu1 %v3143_v22, %s4663_s21  ;;  %v1939_v2 = vor.u32 1.1754944e-38, %v1938_v54  ;;  %v2088_v26 = vmul.f32 %v6610_v43, %v6554_v7 }
 0x2f0   : > { %v2032_v40 = vmul.f32 %v2031_v16, %v6436_v27  ;;  %v2000_v15 = vadd.f32 0.014752088, %v1999_v52  ;;  %v1935_v34 = vsel %vm6632_vm10, %v6462_v13, %v1931_v24  ;;  %vm1937_vm5 = vcmp.eq.f32.partialorder %v1936_v0, 8.507059e+37 }
 0x2f1   : > { %v1952_v63 = vmul.f32 %v1951_v6, %v6497_v33  ;;  %v1965_v35 = vmul.f32 %v1964_v25, %v6497_v33  ;;  %v1860_v36 = vsel %vm6568_vm11, %v6005_v5, %v1855_v45  ;;  %v6658_v17 = vmul.f32 %v1900_v14, %v1876_v8 }
 0x2f2   : > { %v2073_v23 = vadd.f32 0.18741608, %v2072_v58  ;;  %v2001_v11 = vmul.f32 %v2000_v15, %v6557_v39  ;;  %v1916_v37 = vmul.f32 %v1915_v46, %v6022_v61  ;;  %v2049_v1 = vsub.f32 1.0, %v2048_v10 }
 0x2f3   : > { %v1966_v13 = vadd.f32 1.0, %v1965_v35  ;;  %v1990_v20 = vmul.f32 %v1989_v9, %v6557_v39  ;;  %v1940_v0 = vsel %vm1937_vm5, %v1939_v2, %v1935_v34  ;;  %v2089_v55 = vsub.f32 1.0, %v2088_v26  ;;  %v6706_v35 = vpop.permute.xlu2 %2224 }
 0x2f4   : > { %v2033_v60 = vadd.f32 0.18741608, %v2032_v40  ;;  %v2002_v3 = vadd.f32 0.112945676, %v2001_v11  ;;  %v1953_v57 = vadd.f32 0.18741608, %v1952_v63  ;;  %v6664_v38 = vmul.f32 %v1860_v36, %v8529_v18 }
 0x2f5   : > { %4418 = vrcp.f32 %v1966_v13  ;;  %v2074_v5 = vmul.f32 %v2073_v23, %v6410_v59  ;;  %v4154_v47 = vclamps-f32 %v6658_v17, 1.0  ;;  %v6669_v61 = vmul.f32 %v1940_v0, %v1916_v37  ;;  %v8536_v11 = vld [vmem:[#allocation23_spill] sm:$0xff] }
 0x2f6   : > { %v2003_v51 = vmul.f32 %v2002_v3, %v6557_v39  ;;  %v2050_v16 = vmul.f32 %v6599_v21, %v2049_v1  ;;  %v1991_v19 = vadd.f32 0.05243302, %v1990_v20  ;;  %v2090_v53 = vmul.f32 %v6610_v43, %v2089_v55  ;;  %v8538_v20 = vld [vmem:[#allocation20_spill] sm:$0xff] }
 0x2f7   : > { %v2098_v45 = vand.u32 2147483648, %v6554_v7  ;;  %v2034_v54 = vmul.f32 %v2033_v60, %v6436_v27  ;;  %vm2052_vm6 = vweird.f32 %v6544_v42  ;;  %vm2053_vm13 = vweird.f32 %v6599_v21 }
 0x2f8   : > { %v2004_v28 = vadd.f32 0.4994258, %v2003_v51  ;;  %v2058_v59 = vand.u32 2147483648, %v6544_v42  ;;  %v1954_v4 = vmul.f32 %v1953_v57, %v6497_v33  ;;  %v2075_v24 = vadd.f32 1.1283791, %v2074_v5  ;;  %vm6691_vm9 = vmor %vm2052_vm6, %vm2053_vm13 }
 0x2f9   : > { %vm2092_vm11 = vweird.f32 %v6554_v7  ;;  %vm2093_vm0 = vweird.f32 %v6610_v43  ;;  %v2096_v22 = vand.u32 2147483647, %v6554_v7  ;;  %v2051_v27 = vadd.f32 %v6599_v21, %v2050_v16 }
 0x2fa   : > { %v2005_v6 = vmul.f32 %v2004_v28, %v6557_v39  ;;  %v2056_v8 = vand.u32 2147483647, %v6544_v42  ;;  %v1992_v32 = vmul.f32 %v1991_v19, %v6557_v39  ;;  %v2091_v14 = vadd.f32 %v6610_v43, %v2090_v53  ;;  %vm6695_vm7 = vmor %vm2092_vm11, %vm2093_vm0 }
 0x2fb   : > { %v4419_v48 = vpop.eup %4418  ;;  %v2099_v49 = vor.u32 1.1754944e-38, %v2098_v45  ;;  %v2035_v33 = vadd.f32 1.1283791, %v2034_v54  ;;  %v2059_v46 = vor.u32 1.1754944e-38, %v2058_v59  ;;  %v1955_v10 = vadd.f32 1.1283791, %v1954_v4 }
 0x2fc   : > { %v1968_v52 = vmul.f32 %v4419_v48, %v1966_v13  ;;  %v1978_v25 = vand.u32 2147483648, %v1966_v13  ;;  %v2006_v9 = vadd.f32 1.0, %v2005_v6  ;;  %vm1972_vm15 = vweird.f32 %v1966_v13 }
 0x2fd   : > { %vm1973_vm3 = vweird.f32 %v4419_v48  ;;  %v1976_v26 = vand.u32 2147483647, %v1966_v13  ;;  %v2055_v42 = vsel %vm6691_vm9, %v6599_v21, %v2051_v27  ;;  %vm2057_vm10 = vcmp.eq.f32.partialorder %v2056_v8, 8.507059e+37 }
 0x2fe   : > { %v1969_v2 = vsub.f32 1.0, %v1968_v52  ;;  %v1993_v40 = vadd.f32 0.18741608, %v1992_v32  ;;  %4420 = vrcp.f32 %v2006_v9  ;;  %v2076_v15 = vmul.f32 %v2075_v24, %v6388_v29  ;;  %vm6710_vm6 = vmor %vm1972_vm15, %vm1973_vm3 }
 0x2ff   : > { %v2095_v34 = vsel %vm6695_vm7, %v6610_v43, %v2091_v14  ;;  %vm2097_vm5 = vcmp.eq.f32.partialorder %v2096_v22, 8.507059e+37  ;;  %v2036_v36 = vmul.f32 %v2035_v33, %v6396_v30  ;;  %v1956_v17 = vmul.f32 %v1955_v10, %v6457_v50 }
 0x300   : > { %v1970_v63 = vmul.f32 %v4419_v48, %v1969_v2  ;;  %v1979_v21 = vor.u32 1.1754944e-38, %v1978_v25  ;;  %vm8537_vm13 = vcmask 916480   ;;  %v2060_v37 = vsel %vm2057_vm10, %v2059_v46, %v2055_v42 }
 0x301   : > { %v2247_v29 = vsel %vm8537_vm13, %v8536_v11, %v6706_v35  ;;  %vm1977_vm11 = vcmp.eq.f32.partialorder %v1976_v26, 8.507059e+37  ;;  %v2100_v13 = vsel %vm2097_vm5, %v2099_v49, %v2095_v34  ;;  %v1994_v30 = vmul.f32 %v1993_v40, %v6557_v39  ;;  %v6737_v49 = vpop.permute.xlu2 %2236  ;;  %v8541_v34 = vld [vmem:[#allocation26_spill] sm:$0xff]  ;;  %vm8543_vm3 = vmmov %vm8537_vm13 }
 0x302   : > { %v1971_v1 = vadd.f32 %v4419_v48, %v1970_v63  ;;  %v6718_v43 = vadd.f32 %v2247_v29, %v5090_v44  ;;  %v4153_v50 = vclamps-f32 %v6664_v38, 1.0  ;;  %v1811_v0 = vmul.f32 0.5, %v8538_v20  ;;  %v8542_v20 = vld [vmem:[#allocation24_spill] sm:$0xff] }
 0x303   : > { %v2105_v57 = vadd.f32 1.0, %v4154_v47  ;;  %v4155_v18 = vclamps-f32 %v6669_v61, 1.0  ;;  %v2061_v5 = vmul.f32 %v2060_v37, %v2036_v36  ;;  %v2101_v16 = vmul.f32 %v2100_v13, %v2076_v15  ;;  %v8539_v47 = vld [vmem:[#allocation19_spill] sm:$0xff]  ;;  %v8540_v61 = vld [vmem:[#allocation22_spill] sm:$0xff] }
 0x304   : > { %v1975_v55 = vsel %vm6710_vm6, %v4419_v48, %v1971_v1  ;;  %v6726_v60 = vmul.f32 0.70710677, %v6718_v43  ;;  %v4421_v3 = vpop.eup %4420  ;;  %v1995_v38 = vadd.f32 1.1283791, %v1994_v30  ;;  %vm2012_vm0 = vweird.f32 %v2006_v9 }
 0x305   : > { %v1980_v51 = vsel %vm1977_vm11, %v1979_v21, %v1975_v55  ;;  %v2008_v53 = vmul.f32 %v4421_v3, %v2006_v9  ;;  %v2016_v45 = vand.u32 2147483647, %v2006_v9  ;;  %v2018_v54 = vand.u32 2147483648, %v2006_v9 }
 0x306   : > { %v1981_v19 = vmul.f32 %v1980_v51, %v1956_v17  ;;  %v2274_v39 = vmul.f32 %v6726_v60, %v6726_v60  ;;  %vm2013_vm9 = vweird.f32 %v4421_v3  ;;  %v1810_v24 = vmul.f32 0.5, %v8539_v47 }
 0x307   : > { %v2009_v59 = vsub.f32 1.0, %v2008_v53  ;;  %v1812_v6 = vmul.f32 0.5, %v8540_v61  ;;  %v2106_v48 = vadd.f32 1.0, %v4155_v18  ;;  %v4158_v22 = vclamps-f32 %v2061_v5, 1.0  ;;  %vm2014_vm7 = vmor %vm2012_vm0, %vm2013_vm9 }
 0x308   : > { %v4156_v28 = vclamps-f32 %v1981_v19, 1.0  ;;  %v6731_v4 = vmin.f32 %v2274_v39, 16.0  ;;  %v1813_v27 = vmul.f32 0.5, %v6433_v31  ;;  %v2104_v33 = vadd.f32 1.0, %v4153_v50 }
 0x309   : > { %v2010_v8 = vmul.f32 %v4421_v3, %v2009_v59  ;;  %v2112_v58 = vmul.f32 %v2105_v57, %v1811_v0  ;;  %v4159_v52 = vclamps-f32 %v2101_v16, 1.0  ;;  %v2019_v7 = vor.u32 1.1754944e-38, %v2018_v54 }
 0x30a   : > { %v2107_v32 = vadd.f32 1.0, %v4156_v28  ;;  %v2287_v14 = vmul.f32 3.8918573e-05, %v6731_v4  ;;  %v1996_v46 = vmul.f32 %v1995_v38, %v6522_v12  ;;  %vm2017_vm15 = vcmp.eq.f32.partialorder %v2016_v45, 8.507059e+37 }
 0x30b   : > { %v2011_v10 = vadd.f32 %v4421_v3, %v2010_v8  ;;  %v1815_v2 = vmul.f32 0.5, %v6382_v62  ;;  %v2109_v31 = vadd.f32 1.0, %v4158_v22  ;;  %v2113_v26 = vmul.f32 %v2106_v48, %v1812_v6  ;;  %v2233_v22 = vpop.permute.xlu1 %2232 }
 0x30c   : > { %v2288_v25 = vadd.f32 0.001143296, %v2287_v14  ;;  %v2114_v40 = vmul.f32 %v2107_v32, %v1813_v27  ;;  %v1816_v63 = vmul.f32 0.5, %v8541_v34  ;;  %v2110_v36 = vadd.f32 1.0, %v4159_v52  ;;  %v6745_v13 = vpop.permute.xlu2 %2674  ;;  %v2229_v27 = vpop.permute.xlu0 %2228 }
 0x30d   : > { %v2015_v42 = vsel %vm2014_vm7, %v4421_v3, %v2011_v10  ;;  %v2111_v9 = vmul.f32 %v2104_v33, %v1810_v24  ;;  %v2125_v23 = vrot.slane %v2112_v58, 7  ;;  %v2116_v11 = vmul.f32 %v2109_v31, %v1815_v2 }
 0x30e   : > { %v2289_v15 = vmul.f32 %v2288_v25, %v6731_v4  ;;  %v2020_v17 = vsel %vm2017_vm15, %v2019_v7, %v2015_v42  ;;  %v2126_v29 = vrot.slane %v2113_v26, 6  ;;  %v1814_v37 = vmul.f32 0.5, %v6507_v56 }
 0x30f   : > { %v2021_v21 = vmul.f32 %v2020_v17, %v1996_v46  ;;  %v2127_v62 = vrot.slane %v2114_v40, 5  ;;  %v2117_v30 = vmul.f32 %v2110_v36, %v1816_v63  ;;  %v2697_v0 = vsel %vm8543_vm3, %v8542_v20, %v6745_v13 }
 0x310   : > { %v2290_v12 = vadd.f32 0.014752088, %v2289_v15  ;;  %v2131_v55 = vsel %vm770_vm14, %v2111_v9, %v2125_v23  ;;  %v6753_v57 = vadd.f32 %v2697_v0, %v5090_v44  ;;  %vm8544_vm10 = vcmask 1041409  }
 0x311   : > { %v4157_v1 = vclamps-f32 %v2021_v21, 1.0  ;;  %v2137_v18 = vsel %vm8544_vm10, %v2111_v9, %v2125_v23  ;;  %v2129_v56 = vrot.slane %v2116_v11, 3  ;;  %v2276_v5 = vmul.f32 2.1237322e-06, %v6731_v4 }
 0x312   : > { %v2291_v50 = vmul.f32 %v2290_v12, %v6731_v4  ;;  %v2132_v19 = vsel %vm330_vm1, %v2126_v29, %v2127_v62  ;;  %v2138_v53 = vsel %vm333_vm2, %v2126_v29, %v2127_v62  ;;  %v6760_v39 = vmul.f32 0.70710677, %v6753_v57 }
 0x313   : > { %v2108_v3 = vadd.f32 1.0, %v4157_v1  ;;  %v2130_v38 = vrot.slane %v2117_v30, 2  ;;  %v2133_v59 = vsel %vm773_vm12, %v2131_v55, %v2132_v19  ;;  %vm8545_vm5 = vcmask 1042433  }
 0x314   : > { %v2292_v51 = vadd.f32 0.112945676, %v2291_v50  ;;  %v2724_v28 = vmul.f32 %v6760_v39, %v6760_v39  ;;  %v2139_v47 = vsel %vm8545_vm5, %v2137_v18, %v2138_v53  ;;  %vm8546_vm6 = vcmask 1044484  }
 0x315   : > { %v2115_v16 = vmul.f32 %v2108_v3, %v1814_v37  ;;  %vm8547_vm13 = vcmask 1045509   ;;  %v2277_v48 = vadd.f32 0.00028619796, %v2276_v5  ;;  %vm8548_vm11 = vcmask 1045508  }
 0x316   : > { %v2293_v45 = vmul.f32 %v2292_v51, %v6731_v4  ;;  %vm8549_vm0 = vcmask 1046533   ;;  %vm8550_vm9 = vcmask 523264   ;;  %vm8551_vm7 = vcmask 1044481  }
 0x317   : > { %v2128_v54 = vrot.slane %v2115_v16, 4  ;;  %v2250_v33 = vsel %vm8550_vm9, %v2233_v22, %v6737_v49  ;;  %v6776_v7 = vmin.f32 %v2724_v28, 16.0  ;;  %vm8552_vm15 = vcmask 785408  }
 0x318   : > { %v2294_v24 = vadd.f32 0.4994258, %v2293_v45  ;;  %v6782_v10 = vadd.f32 %v2250_v33, %v5090_v44  ;;  %v2248_v25 = vsel %vm8552_vm15, %v6706_v35, %v2229_v27  ;;  %v2278_v2 = vmul.f32 %v2277_v48, %v6731_v4 }
 0x319   : > { %v2134_v61 = vsel %vm8546_vm6, %v2128_v54, %v2129_v56  ;;  %v2140_v6 = vsel %vm8547_vm13, %v2128_v54, %v2129_v56  ;;  %v6796_v26 = vadd.f32 %v2248_v25, %v5090_v44  ;;  %v2737_v42 = vmul.f32 3.8918573e-05, %v6776_v7 }
 0x31a   : > { %v2135_v8 = vsel %vm8548_vm11, %v2134_v61, %v2130_v38  ;;  %v2141_v32 = vsel %vm8549_vm0, %v2140_v6, %v2130_v38  ;;  %v2295_v14 = vmul.f32 %v2294_v24, %v6731_v4  ;;  %v6803_v35 = vmul.f32 0.70710677, %v6782_v10 }
 0x31b   : > { %v2136_v58 = vsel %vm8408_vm4, %v2133_v59, %v2135_v8  ;;  %v2142_v52 = vsel %vm8551_vm7, %v2139_v47, %v2141_v32  ;;  %vm8553_vm3 = vcmask 654336   ;;  %v2738_v15 = vadd.f32 0.001143296, %v2737_v42 }
 0x31c   : > { %v2143_v46 = vrot.slane %v2142_v52, 1  ;;  %4160 = vst.msk [vmem:[%s5564_s16 + $0x3] ss:$8 sm:$0xf] %vm5533_vm8, %v2136_v58  ;;  %v6793_v31 = vadd.f32 1.0, %v2295_v14  ;;  %v2249_v40 = vsel %vm8553_vm3, %v2229_v27, %v2233_v22  ;;  %v2394_v63 = vmul.f32 %v6803_v35, %v6803_v35 }
 0x31d   : > { %4161 = vst.msk [vmem:[%s5564_s16 + $0x3] ss:$8 sm:$0x70] %vm5533_vm8, %v2136_v58  ;;  %v2279_v34 = vadd.f32 0.0036580483, %v2278_v2  ;;  %v2739_v17 = vmul.f32 %v2738_v15, %v6776_v7  ;;  %v6814_v9 = vadd.f32 %v2249_v40, %v5090_v44  ;;  %vm8557_vm11 = vcmask 916480  }
 0x31e   : > { %4162 = vst.msk [vmem:[%s5564_s16 + $0x3b] ss:$8 sm:$0xf] %vm5533_vm8, %v2143_v46  ;;  %4422 = vrcp.f32 %v6793_v31  ;;  %v6810_v36 = vmul.f32 0.70710677, %v6796_v26  ;;  %v6817_v21 = vmin.f32 %v2394_v63, 16.0  ;;  %vm2302_vm5 = vweird.f32 %v6793_v31 }
 0x31f   : > { %4163 = vst.msk [vmem:[%s5564_s16 + $0x3b] ss:$8 sm:$0x70] %vm5533_vm8, %v2143_v46  ;;  %v2726_v23 = vmul.f32 2.1237322e-06, %v6776_v7  ;;  %v2280_v29 = vmul.f32 %v2279_v34, %v6731_v4  ;;  %vm8559_vm0 = vcmask 392192  }
 0x320   : > { %v2314_v11 = vmul.f32 %v6810_v36, %v6810_v36  ;;  %v2740_v12 = vadd.f32 0.014752088, %v2739_v17  ;;  %v2407_v37 = vmul.f32 3.8918573e-05, %v6817_v21  ;;  %v6827_v30 = vmul.f32 0.70710677, %v6814_v9 }
 0x321   : > { %v2727_v20 = vadd.f32 0.00028619796, %v2726_v23  ;;  %v2281_v3 = vadd.f32 0.05243302, %v2280_v29  ;;  %v2396_v51 = vmul.f32 2.1237322e-06, %v6817_v21 }
 0x322   : > { %v6823_v1 = vmin.f32 %v2314_v11, 16.0  ;;  %v2741_v62 = vmul.f32 %v2740_v12, %v6776_v7  ;;  %v2408_v0 = vadd.f32 0.001143296, %v2407_v37  ;;  %v2354_v19 = vmul.f32 %v6827_v30, %v6827_v30 }
 0x323   : > { %v2728_v53 = vmul.f32 %v2727_v20, %v6776_v7  ;;  %v2282_v54 = vmul.f32 %v2281_v3, %v6731_v4  ;;  %v2397_v24 = vadd.f32 0.00028619796, %v2396_v51  ;;  %v2308_v11 = vand.u32 2147483648, %v6793_v31  ;;  %v6868_v3 = vpop.permute.xlu1 %2244 }
 0x324   : > { %v6829_v50 = vpop.eup %4422  ;;  %v2327_v55 = vmul.f32 3.8918573e-05, %v6823_v1  ;;  %v2742_v18 = vadd.f32 0.112945676, %v2741_v62  ;;  %v2409_v56 = vmul.f32 %v2408_v0, %v6817_v21  ;;  %v6843_v61 = vmin.f32 %v2354_v19, 16.0 }
 0x325   : > { %v2298_v5 = vmul.f32 %v6829_v50, %v6793_v31  ;;  %v2729_v6 = vadd.f32 0.0036580483, %v2728_v53  ;;  %v2316_v22 = vmul.f32 2.1237322e-06, %v6823_v1  ;;  %v2283_v8 = vadd.f32 0.18741608, %v2282_v54 }
 0x326   : > { %v2328_v16 = vadd.f32 0.001143296, %v2327_v55  ;;  %v2410_v38 = vadd.f32 0.014752088, %v2409_v56  ;;  %v2743_v28 = vmul.f32 %v2742_v18, %v6776_v7  ;;  %v2398_v33 = vmul.f32 %v2397_v24, %v6817_v21 }
 0x327   : > { %v2299_v47 = vsub.f32 1.0, %v2298_v5  ;;  %v2367_v52 = vmul.f32 3.8918573e-05, %v6843_v61  ;;  %v2730_v46 = vmul.f32 %v2729_v6, %v6776_v7  ;;  %v2317_v25 = vadd.f32 0.00028619796, %v2316_v22 }
 0x328   : > { %v2329_v45 = vmul.f32 %v2328_v16, %v6823_v1  ;;  %v2411_v59 = vmul.f32 %v2410_v38, %v6817_v21  ;;  %v2744_v32 = vadd.f32 0.4994258, %v2743_v28  ;;  %v2356_v42 = vmul.f32 2.1237322e-06, %v6843_v61  ;;  %v6876_v38 = vpop.permute.xlu2 %3124 }
 0x329   : > { %v2300_v14 = vmul.f32 %v6829_v50, %v2299_v47  ;;  %v2284_v40 = vmul.f32 %v2283_v8, %v6731_v4  ;;  %vm2303_vm10 = vweird.f32 %v6829_v50  ;;  %v2399_v63 = vadd.f32 0.0036580483, %v2398_v33 }
 0x32a   : > { %v2412_v48 = vadd.f32 0.112945676, %v2411_v59  ;;  %v2330_v27 = vadd.f32 0.014752088, %v2329_v45  ;;  %v2745_v15 = vmul.f32 %v2744_v32, %v6776_v7  ;;  %v2368_v23 = vadd.f32 0.001143296, %v2367_v52  ;;  %vm6862_vm6 = vmor %vm2302_vm5, %vm2303_vm10 }
 0x32b   : > { %v2301_v34 = vadd.f32 %v6829_v50, %v2300_v14  ;;  %v2731_v12 = vadd.f32 0.05243302, %v2730_v46  ;;  %v2318_v29 = vmul.f32 %v2317_v25, %v6823_v1  ;;  %v2306_v37 = vand.u32 2147483647, %v6793_v31 }
 0x32c   : > { %v2413_v58 = vmul.f32 %v2412_v48, %v6817_v21  ;;  %v2331_v2 = vmul.f32 %v2330_v27, %v6823_v1  ;;  %v2357_v4 = vadd.f32 0.00028619796, %v2356_v42  ;;  %v2369_v20 = vmul.f32 %v2368_v23, %v6843_v61  ;;  %v8556_v48 = vld [vmem:[#allocation25_spill] sm:$0xff] }
 0x32d   : > { %v6866_v55 = vadd.f32 1.0, %v2745_v15  ;;  %v2285_v18 = vadd.f32 1.1283791, %v2284_v40  ;;  %v2305_v56 = vsel %vm6862_vm6, %v6829_v50, %v2301_v34  ;;  %v2400_v5 = vmul.f32 %v2399_v63, %v6817_v21 }
 0x32e   : > { %v2414_v17 = vadd.f32 0.4994258, %v2413_v58  ;;  %v2332_v62 = vadd.f32 0.112945676, %v2331_v2  ;;  %v2309_v51 = vor.u32 1.1754944e-38, %v2308_v11  ;;  %v2732_v16 = vmul.f32 %v2731_v12, %v6776_v7 }
 0x32f   : > { %v2319_v19 = vadd.f32 0.0036580483, %v2318_v29  ;;  %v2370_v53 = vadd.f32 0.014752088, %v2369_v20  ;;  %vm2307_vm13 = vcmp.eq.f32.partialorder %v2306_v37, 8.507059e+37  ;;  %v2358_v54 = vmul.f32 %v2357_v4, %v6843_v61  ;;  %v2241_v20 = vpop.permute.xlu0 %2240 }
 0x330   : > { %v2415_v31 = vmul.f32 %v2414_v17, %v6817_v21  ;;  %v2333_v45 = vmul.f32 %v2332_v62, %v6823_v1  ;;  %v6882_v28 = vadd.f32 %v6868_v3, %v5090_v44  ;;  %v2310_v50 = vsel %vm2307_vm13, %v2309_v51, %v2305_v56 }
 0x331   : > { %4424 = vrcp.f32 %v6866_v55  ;;  %v2371_v59 = vmul.f32 %v2370_v53, %v6843_v61  ;;  %v2286_v47 = vmul.f32 %v2285_v18, %v6726_v60  ;;  %v2401_v24 = vadd.f32 0.05243302, %v2400_v5 }
 0x332   : > { %v6887_v6 = vadd.f32 1.0, %v2415_v31  ;;  %v3147_v22 = vsel %vm8557_vm11, %v8556_v48, %v6876_v38  ;;  %v2733_v27 = vadd.f32 0.18741608, %v2732_v16  ;;  %v2320_v8 = vmul.f32 %v2319_v19, %v6823_v1 }
 0x333   : > { %v2311_v32 = vmul.f32 %v2310_v50, %v2286_v47  ;;  %v2334_v14 = vadd.f32 0.4994258, %v2333_v45  ;;  %v2359_v33 = vadd.f32 0.0036580483, %v2358_v54  ;;  %v6894_v58 = vmul.f32 0.70710677, %v6882_v28 }
 0x334   : > { %v2372_v52 = vadd.f32 0.112945676, %v2371_v59  ;;  %v6897_v46 = vadd.f32 %v3147_v22, %v5090_v44  ;;  %v2402_v60 = vmul.f32 %v2401_v24, %v6817_v21  ;;  %4426 = vrcp.f32 %v6887_v6 }
 0x335   : > { %v2734_v2 = vmul.f32 %v2733_v27, %v6776_v7  ;;  %v2321_v42 = vadd.f32 0.05243302, %v2320_v8  ;;  %v4168_v15 = vclamps-f32 %v2311_v32, 1.0  ;;  %v2335_v34 = vmul.f32 %v2334_v14, %v6823_v1 }
 0x336   : > { %8558 = vst [vmem:[#allocation21_spill] sm:$0xff] %v6897_v46  ;;  %v2373_v40 = vmul.f32 %v2372_v52, %v6843_v61  ;;  %v2360_v63 = vmul.f32 %v2359_v33, %v6843_v61  ;;  %v2514_v17 = vmul.f32 %v6894_v58, %v6894_v58  ;;  %v6910_v11 = vmul.f32 0.70710677, %v6897_v46 }
 0x337   : > { %v6901_v25 = vpop.eup %4424  ;;  %v2403_v29 = vadd.f32 0.18741608, %v2402_v60  ;;  %v2260_v37 = vmul.f32 0.5, %v6718_v43  ;;  %v2735_v62 = vadd.f32 1.1283791, %v2734_v2  ;;  %v2322_v4 = vmul.f32 %v2321_v42, %v6823_v1 }
 0x338   : > { %v2374_v23 = vadd.f32 0.4994258, %v2373_v40  ;;  %v2748_v12 = vmul.f32 %v6901_v25, %v6866_v55  ;;  %v6914_v7 = vmin.f32 %v2514_v17, 16.0  ;;  %v2554_v18 = vadd.f32 1.0, %v4168_v15 }
 0x339   : > { %v6921_v56 = vmul.f32 0.5, %v6782_v10  ;;  %v6923_v5 = vadd.f32 1.0, %v2335_v34  ;;  %v2361_v31 = vadd.f32 0.05243302, %v2360_v63  ;;  %v6926_v51 = vmul.f32 0.5, %v6796_v26 }
 0x33a   : > { %v6918_v0 = vpop.eup %4426  ;;  %v2375_v16 = vmul.f32 %v2374_v23, %v6843_v61  ;;  %v3174_v43 = vmul.f32 %v6910_v11, %v6910_v11  ;;  %v2527_v19 = vmul.f32 3.8918573e-05, %v6914_v7  ;;  %v2749_v53 = vsub.f32 1.0, %v2748_v12 }
 0x33b   : > { %v2758_v45 = vand.u32 2147483648, %v6866_v55  ;;  %v2404_v54 = vmul.f32 %v2403_v29, %v6817_v21  ;;  %v2251_v10 = vsel %vm8559_vm0, %v6737_v49, %v2241_v20  ;;  %v6937_v50 = vmul.f32 %v2735_v62, %v6760_v39 }
 0x33c   : > { %v2418_v26 = vmul.f32 %v6918_v0, %v6887_v6  ;;  %v6942_v59 = vmul.f32 0.5, %v6814_v9  ;;  %v2323_v47 = vadd.f32 0.18741608, %v2322_v4  ;;  %v6944_v24 = vmul.f32 %v2554_v18, %v2260_v37 }
 0x33d   : > { %vm2752_vm9 = vweird.f32 %v6866_v55  ;;  %v2756_v48 = vand.u32 2147483647, %v6866_v55  ;;  %4428 = vrcp.f32 %v6923_v5  ;;  %v2362_v49 = vmul.f32 %v2361_v31, %v6843_v61 }
 0x33e   : > { %v6950_v21 = vadd.f32 1.0, %v2375_v16  ;;  %v2528_v39 = vadd.f32 0.001143296, %v2527_v19  ;;  %vm8560_vm7 = vcmask 261120   ;;  %v6955_v9 = vadd.f32 %v2251_v10, %v5090_v44 }
 0x33f   : > { %v2252_v22 = vsel %vm8560_vm7, %v2241_v20, %v6868_v3  ;;  %v2750_v27 = vmul.f32 %v6901_v25, %v2749_v53  ;;  %v2759_v8 = vor.u32 1.1754944e-38, %v2758_v45  ;;  %v2405_v32 = vadd.f32 1.1283791, %v2404_v54 }
 0x340   : > { %v6958_v14 = vmin.f32 %v3174_v43, 16.0  ;;  %v2419_v33 = vsub.f32 1.0, %v2418_v26  ;;  %v2324_v52 = vmul.f32 %v2323_v47, %v6823_v1  ;;  %v6962_v60 = vmul.f32 0.5, %v6882_v28 }
 0x341   : > { %v2529_v2 = vmul.f32 %v2528_v39, %v6914_v7  ;;  %vm6965_vm15 = vcmp.eq.f32.partialorder %v2756_v48, 8.507059e+37  ;;  %v2426_v3 = vand.u32 2147483647, %v6887_v6  ;;  %v2428_v40 = vand.u32 2147483648, %v6887_v6 }
 0x342   : > { %v2516_v15 = vmul.f32 2.1237322e-06, %v6914_v7  ;;  %v6973_v34 = vadd.f32 %v2252_v22, %v5090_v44  ;;  %v2363_v63 = vadd.f32 0.18741608, %v2362_v49  ;;  %4430 = vrcp.f32 %v6950_v21 }
 0x343   : > { %v2530_v1 = vadd.f32 0.014752088, %v2529_v2  ;;  %v6977_v28 = vmul.f32 0.70710677, %v6955_v9  ;;  %v6979_v17 = vpop.eup %4428  ;;  %v2751_v23 = vadd.f32 %v6901_v25, %v2750_v27  ;;  %vm2753_vm3 = vweird.f32 %v6901_v25 }
 0x344   : > { %v3176_v12 = vmul.f32 2.1237322e-06, %v6958_v14  ;;  %v3187_v29 = vmul.f32 3.8918573e-05, %v6958_v14  ;;  %v6986_v37 = vmul.f32 %v2405_v32, %v6803_v35  ;;  %v2420_v62 = vmul.f32 %v6918_v0, %v2419_v33  ;;  %vm6998_vm5 = vmor %vm2752_vm9, %vm2753_vm3 }
 0x345   : > { %v2325_v4 = vadd.f32 1.1283791, %v2324_v52  ;;  %v2531_v20 = vmul.f32 %v2530_v1, %v6914_v7  ;;  %vm2422_vm10 = vweird.f32 %v6887_v6  ;;  %v2517_v18 = vadd.f32 0.00028619796, %v2516_v15 }
 0x346   : > { %v6992_v31 = vmul.f32 0.70710677, %v6973_v34  ;;  %v2434_v16 = vmul.f32 %v6977_v28, %v6977_v28  ;;  %vm7002_vm6 = vcmp.eq.f32.partialorder %v2426_v3, 8.507059e+37  ;;  %v2429_v19 = vor.u32 1.1754944e-38, %v2428_v40 }
 0x347   : > { %v2338_v53 = vmul.f32 %v6979_v17, %v6923_v5  ;;  %v2364_v45 = vmul.f32 %v2363_v63, %v6843_v61  ;;  %v2532_v54 = vadd.f32 0.112945676, %v2531_v20  ;;  %v2755_v10 = vsel %vm6998_vm5, %v6901_v25, %v2751_v23 }
 0x348   : > { %v3177_v55 = vadd.f32 0.00028619796, %v3176_v12  ;;  %v3188_v26 = vadd.f32 0.001143296, %v3187_v29  ;;  %v7012_v47 = vmin.f32 %v2434_v16, 16.0  ;;  %v7014_v48 = vpop.eup %4430  ;;  %v2421_v49 = vadd.f32 %v6918_v0, %v2420_v62 }
 0x349   : > { %vm2423_vm13 = vweird.f32 %v6918_v0  ;;  %v7019_v39 = vmul.f32 %v2325_v4, %v6810_v36  ;;  %v2346_v61 = vand.u32 2147483647, %v6923_v5  ;;  %v2348_v22 = vand.u32 2147483648, %v6923_v5 }
 0x34a   : > { %v2518_v27 = vmul.f32 %v2517_v18, %v6914_v7  ;;  %v2533_v25 = vmul.f32 %v2532_v54, %v6914_v7  ;;  %v2474_v32 = vmul.f32 %v6992_v31, %v6992_v31  ;;  %v2760_v33 = vsel %vm6965_vm15, %v2759_v8, %v2755_v10  ;;  %vm7033_vm11 = vmor %vm2422_vm10, %vm2423_vm13 }
 0x34b   : > { %v2339_v52 = vsub.f32 1.0, %v2338_v53  ;;  %v2436_v2 = vmul.f32 2.1237322e-06, %v7012_v47  ;;  %v2447_v36 = vmul.f32 3.8918573e-05, %v7012_v47  ;;  %v2378_v15 = vmul.f32 %v7014_v48, %v6950_v21 }
 0x34c   : > { %v2365_v40 = vadd.f32 1.1283791, %v2364_v45  ;;  %v3178_v63 = vmul.f32 %v3177_v55, %v6958_v14  ;;  %v3189_v42 = vmul.f32 %v3188_v26, %v6958_v14  ;;  %v2425_v8 = vsel %vm7033_vm11, %v6918_v0, %v2421_v49 }
 0x34d   : > { %vm2342_vm0 = vweird.f32 %v6923_v5  ;;  %v2534_v1 = vadd.f32 0.4994258, %v2533_v25  ;;  %v2437_v6 = vadd.f32 0.00028619796, %v2436_v2  ;;  %v2448_v23 = vadd.f32 0.001143296, %v2447_v36  ;;  %v2679_v25 = vpop.permute.xlu0 %2678 }
 0x34e   : > { %v7046_v12 = vmul.f32 %v2760_v33, %v6937_v50  ;;  %v2349_v29 = vor.u32 1.1754944e-38, %v2348_v22  ;;  %v2519_v62 = vadd.f32 0.0036580483, %v2518_v27  ;;  %v7048_v4 = vmin.f32 %v2474_v32, 16.0 }
 0x34f   : > { %v2340_v20 = vmul.f32 %v6979_v17, %v2339_v52  ;;  %v2535_v18 = vmul.f32 %v2534_v1, %v6914_v7  ;;  %v2438_v16 = vmul.f32 %v2437_v6, %v7012_v47  ;;  %v2449_v0 = vmul.f32 %v2448_v23, %v7012_v47 }
 0x350   : > { %v2430_v43 = vsel %vm7002_vm6, %v2429_v19, %v2425_v8  ;;  %v2379_v53 = vsub.f32 1.0, %v2378_v15  ;;  %v3179_v45 = vadd.f32 0.0036580483, %v3178_v63  ;;  %v3190_v54 = vadd.f32 0.014752088, %v3189_v42 }
 0x351   : > { %vm7056_vm9 = vcmp.eq.f32.partialorder %v2346_v61, 8.507059e+37  ;;  %v7061_v10 = vmul.f32 %v2365_v40, %v6827_v30  ;;  %v7063_v55 = vadd.f32 1.0, %v2535_v18  ;;  %v2439_v26 = vadd.f32 0.0036580483, %v2438_v16  ;;  %v7073_v30 = vpop.permute.xlu1 %2682 }
 0x352   : > { %v2450_v49 = vadd.f32 0.014752088, %v2449_v0  ;;  %v4183_v22 = vclamps-f32 %v7046_v12, 1.0  ;;  %v2520_v27 = vmul.f32 %v2519_v62, %v6914_v7  ;;  %v2476_v35 = vmul.f32 2.1237322e-06, %v7048_v4 }
 0x353   : > { %v2487_v19 = vmul.f32 3.8918573e-05, %v7048_v4  ;;  %v2431_v61 = vmul.f32 %v2430_v43, %v6986_v37  ;;  %v2341_v32 = vadd.f32 %v6979_v17, %v2340_v20  ;;  %vm2343_vm7 = vweird.f32 %v6979_v17 }
 0x354   : > { %4432 = vrcp.f32 %v7063_v55  ;;  %v2380_v33 = vmul.f32 %v7014_v48, %v2379_v53  ;;  %v3180_v52 = vmul.f32 %v3179_v45, %v6958_v14  ;;  %v2440_v2 = vmul.f32 %v2439_v26, %v7012_v47  ;;  %vm7084_vm3 = vmor %vm2342_vm0, %vm2343_vm7 }
 0x355   : > { %v2451_v36 = vmul.f32 %v2450_v49, %v7012_v47  ;;  %v3191_v3 = vmul.f32 %v3190_v54, %v6958_v14  ;;  %v2477_v40 = vadd.f32 0.00028619796, %v2476_v35  ;;  %v2488_v37 = vadd.f32 0.001143296, %v2487_v19 }
 0x356   : > { %vm8571_vm15 = vcmask 785408   ;;  %v2388_v42 = vand.u32 2147483648, %v6950_v21  ;;  %v2521_v8 = vadd.f32 0.05243302, %v2520_v27  ;;  %vm8574_vm10 = vcmask 654336  }
 0x357   : > { %v2698_v15 = vsel %vm8571_vm15, %v6745_v13, %v2679_v25  ;;  %v2452_v1 = vadd.f32 0.112945676, %v2451_v36  ;;  %v2699_v6 = vsel %vm8574_vm10, %v2679_v25, %v7073_v30  ;;  %v4171_v23 = vclamps-f32 %v2431_v61, 1.0 }
 0x358   : > { %v2345_v62 = vsel %vm7084_vm3, %v6979_v17, %v2341_v32  ;;  %vm2383_vm5 = vweird.f32 %v7014_v48  ;;  %v2489_v13 = vmul.f32 %v2488_v37, %v7048_v4  ;;  %v2381_v5 = vadd.f32 %v7014_v48, %v2380_v33 }
 0x359   : > { %v2441_v20 = vadd.f32 0.05243302, %v2440_v2  ;;  %v2478_v18 = vmul.f32 %v2477_v40, %v7048_v4  ;;  %v7099_v16 = vadd.f32 %v2698_v15, %v5090_v44  ;;  %vm2382_vm6 = vweird.f32 %v6950_v21 }
 0x35a   : > { %v7101_v0 = vpop.eup %4432  ;;  %v2386_v43 = vand.u32 2147483647, %v6950_v21  ;;  %v2453_v17 = vmul.f32 %v2452_v1, %v7012_v47  ;;  %v7107_v53 = vadd.f32 %v2699_v6, %v5090_v44  ;;  %v2350_v45 = vsel %vm7056_vm9, %v2349_v29, %v2345_v62  ;;  %vm7114_vm13 = vmor %vm2382_vm6, %vm2383_vm5 }
 0x35b   : > { %v2389_v54 = vor.u32 1.1754944e-38, %v2388_v42  ;;  %v3192_v26 = vadd.f32 0.112945676, %v3191_v3  ;;  %v2522_v49 = vmul.f32 %v2521_v8, %v6914_v7  ;;  %v2557_v27 = vadd.f32 1.0, %v4171_v23 }
 0x35c   : > { %v2538_v21 = vmul.f32 %v7101_v0, %v7063_v55  ;;  %v2454_v19 = vadd.f32 0.4994258, %v2453_v17  ;;  %v2490_v25 = vadd.f32 0.014752088, %v2489_v13  ;;  %v2385_v29 = vsel %vm7114_vm13, %v7014_v48, %v2381_v5 }
 0x35d   : > { %v2442_v50 = vmul.f32 %v2441_v20, %v7012_v47  ;;  %v2479_v61 = vadd.f32 0.0036580483, %v2478_v18  ;;  %v7125_v32 = vmul.f32 0.70710677, %v7099_v16  ;;  %v2351_v33 = vmul.f32 %v2350_v45, %v7019_v39 }
 0x35e   : > { %v2455_v2 = vmul.f32 %v2454_v19, %v7012_v47  ;;  %v2491_v36 = vmul.f32 %v2490_v25, %v7048_v4  ;;  %v7131_v3 = vmul.f32 0.70710677, %v7107_v53  ;;  %vm2387_vm11 = vcmp.eq.f32.partialorder %v2386_v43, 8.507059e+37 }
 0x35f   : > { %v3181_v40 = vadd.f32 0.05243302, %v3180_v52  ;;  %v2523_v37 = vadd.f32 0.18741608, %v2522_v49  ;;  %v2764_v48 = vmul.f32 %v7125_v32, %v7125_v32  ;;  %v2390_v15 = vsel %vm2387_vm11, %v2389_v54, %v2385_v29  ;;  %v7165_v49 = vpop.permute.xlu2 %2686 }
 0x360   : > { %v2539_v63 = vsub.f32 1.0, %v2538_v21  ;;  %v7135_v42 = vadd.f32 1.0, %v2455_v2  ;;  %v2492_v8 = vadd.f32 0.112945676, %v2491_v36  ;;  %v3193_v39 = vmul.f32 %v3192_v26, %v6958_v14 }
 0x361   : > { %v2443_v1 = vadd.f32 0.18741608, %v2442_v50  ;;  %v2480_v6 = vmul.f32 %v2479_v61, %v7048_v4  ;;  %v7139_v23 = vmin.f32 %v2764_v48, 16.0  ;;  %v7142_v62 = vmul.f32 %v2557_v27, %v6921_v56 }
 0x362   : > { %v4169_v52 = vclamps-f32 %v2351_v33, 1.0  ;;  %4434 = vrcp.f32 %v7135_v42  ;;  %v2804_v13 = vmul.f32 %v7131_v3, %v7131_v3  ;;  %v7149_v5 = vadd.f32 1.0, %v4183_v22 }
 0x363   : > { %v7152_v20 = vmul.f32 %v2390_v15, %v7061_v10  ;;  %v2524_v18 = vmul.f32 %v2523_v37, %v6914_v7  ;;  %v2493_v43 = vmul.f32 %v2492_v8, %v7048_v4  ;;  %v7157_v56 = vmul.f32 %v3181_v40, %v6958_v14 }
 0x364   : > { %v2540_v17 = vmul.f32 %v7101_v0, %v2539_v63  ;;  %v7161_v45 = vmul.f32 0.5, %v6955_v9  ;;  %v2777_v54 = vmul.f32 3.8918573e-05, %v7139_v23  ;;  %v3194_v12 = vadd.f32 0.4994258, %v3193_v39 }
 0x365   : > { %v2444_v22 = vmul.f32 %v2443_v1, %v7012_v47  ;;  %v2481_v26 = vadd.f32 0.05243302, %v2480_v6  ;;  %v2494_v10 = vadd.f32 0.4994258, %v2493_v43  ;;  %v2577_v7 = vrot.slane %v7142_v62, 5 }
 0x366   : > { %v7168_v27 = vadd.f32 1.0, %v4169_v52  ;;  %v2778_v35 = vadd.f32 0.001143296, %v2777_v54  ;;  %v7170_v21 = vmin.f32 %v2804_v13, 16.0  ;;  %v4170_v19 = vclamps-f32 %v7152_v20, 1.0 }
 0x367   : > { %v2525_v9 = vadd.f32 1.1283791, %v2524_v18  ;;  %v2546_v25 = vand.u32 2147483647, %v7063_v55  ;;  %v2495_v29 = vmul.f32 %v2494_v10, %v7048_v4  ;;  %v2541_v47 = vadd.f32 %v7101_v0, %v2540_v17 }
 0x368   : > { %v4435_v50 = vpop.eup %4434  ;;  %vm2543_vm0 = vweird.f32 %v7101_v0  ;;  %v2779_v61 = vmul.f32 %v2778_v35, %v7139_v23  ;;  %vm8577_vm9 = vcmask 523264   ;;  %vm2542_vm7 = vweird.f32 %v7063_v55 }
 0x369   : > { %v2700_v33 = vsel %vm8577_vm9, %v7073_v30, %v7165_v49  ;;  %v2445_v2 = vadd.f32 1.1283791, %v2444_v22  ;;  %v2458_v36 = vmul.f32 %v4435_v50, %v7135_v42  ;;  %v2482_v40 = vmul.f32 %v2481_v26, %v7048_v4  ;;  %vm7189_vm15 = vmor %vm2542_vm7, %vm2543_vm0 }
 0x36a   : > { %v2548_v37 = vand.u32 2147483648, %v7063_v55  ;;  %v7185_v48 = vadd.f32 1.0, %v2495_v29  ;;  %v2780_v15 = vadd.f32 0.014752088, %v2779_v61  ;;  %v2817_v63 = vmul.f32 3.8918573e-05, %v7170_v21  ;;  %v7216_v29 = vpop.permute.xlu0 %3128 }
 0x36b   : > { %v2526_v8 = vmul.f32 %v2525_v9, %v6894_v58  ;;  %vm7193_vm3 = vcmp.eq.f32.partialorder %v2546_v25, 8.507059e+37  ;;  %v2459_v1 = vsub.f32 1.0, %v2458_v36  ;;  %v7198_v6 = vadd.f32 %v2700_v33, %v5090_v44 }
 0x36c   : > { %v2545_v55 = vsel %vm7189_vm15, %v7101_v0, %v2541_v47  ;;  %v2466_v52 = vand.u32 2147483647, %v7135_v42  ;;  %v2468_v58 = vand.u32 2147483648, %v7135_v42  ;;  %4436 = vrcp.f32 %v7185_v48 }
 0x36d   : > { %v2460_v13 = vmul.f32 %v4435_v50, %v2459_v1  ;;  %vm2463_vm10 = vweird.f32 %v4435_v50  ;;  %v2483_v20 = vadd.f32 0.18741608, %v2482_v40  ;;  %v2781_v18 = vmul.f32 %v2780_v15, %v7139_v23 }
 0x36e   : > { %v2549_v43 = vor.u32 1.1754944e-38, %v2548_v37  ;;  %v2446_v17 = vmul.f32 %v2445_v2, %v6977_v28  ;;  %vm2462_vm5 = vweird.f32 %v7135_v42  ;;  %v2818_v54 = vadd.f32 0.001143296, %v2817_v63 }
 0x36f   : > { %v2461_v22 = vadd.f32 %v4435_v50, %v2460_v13  ;;  %v2766_v0 = vmul.f32 2.1237322e-06, %v7139_v23  ;;  %v2782_v26 = vadd.f32 0.112945676, %v2781_v18  ;;  %v7211_v10 = vmul.f32 0.70710677, %v7198_v6  ;;  %vm2464_vm6 = vmor %vm2462_vm5, %vm2463_vm10 }
 0x370   : > { %v2550_v35 = vsel %vm7193_vm3, %v2549_v43, %v2545_v55  ;;  %vm2467_vm13 = vcmp.eq.f32.partialorder %v2466_v52, 8.507059e+37  ;;  %v2469_v9 = vor.u32 1.1754944e-38, %v2468_v58  ;;  %v2819_v25 = vmul.f32 %v2818_v54, %v7170_v21 }
 0x371   : > { %v2465_v28 = vsel %vm2464_vm6, %v4435_v50, %v2461_v22  ;;  %v2484_v42 = vmul.f32 %v2483_v20, %v7048_v4  ;;  %v2783_v47 = vmul.f32 %v2782_v26, %v7139_v23  ;;  %v2844_v61 = vmul.f32 %v7211_v10, %v7211_v10 }
 0x372   : > { %v4437_v33 = vpop.eup %4436  ;;  %v2556_v2 = vadd.f32 1.0, %v4170_v19  ;;  %v3195_v36 = vmul.f32 %v3194_v12, %v6958_v14  ;;  %v2470_v40 = vsel %vm2467_vm13, %v2469_v9, %v2465_v28  ;;  %v2820_v37 = vadd.f32 0.014752088, %v2819_v25 }
 0x373   : > { %v2551_v15 = vmul.f32 %v2550_v35, %v2526_v8  ;;  %v2471_v63 = vmul.f32 %v2470_v40, %v2446_v17  ;;  %v2498_v39 = vmul.f32 %v4437_v33, %v7185_v48  ;;  %vm8582_vm11 = vcmask 785408  }
 0x374   : > { %v3148_v50 = vsel %vm8582_vm11, %v6876_v38, %v7216_v29  ;;  %v2767_v4 = vadd.f32 0.00028619796, %v2766_v0  ;;  %v2784_v30 = vadd.f32 0.4994258, %v2783_v47  ;;  %v2821_v1 = vmul.f32 %v2820_v37, %v7170_v21 }
 0x375   : > { %v7228_v55 = vmin.f32 %v2844_v61, 16.0  ;;  %v7232_v19 = vmul.f32 %v7168_v27, %v6926_v51  ;;  %v2485_v12 = vadd.f32 1.1283791, %v2484_v42  ;;  %v2499_v52 = vsub.f32 1.0, %v2498_v39 }
 0x376   : > { %v2506_v8 = vand.u32 2147483647, %v7185_v48  ;;  %v2508_v58 = vand.u32 2147483648, %v7185_v48  ;;  %v2785_v13 = vmul.f32 %v2784_v30, %v7139_v23  ;;  %v2822_v20 = vadd.f32 0.112945676, %v2821_v1 }
 0x377   : > { %v7238_v38 = vadd.f32 %v3148_v50, %v5090_v44  ;;  %v4172_v18 = vclamps-f32 %v2471_v63, 1.0  ;;  %v2500_v43 = vmul.f32 %v4437_v33, %v2499_v52  ;;  %vm2503_vm0 = vweird.f32 %v4437_v33 }
 0x378   : > { %v2857_v17 = vmul.f32 3.8918573e-05, %v7228_v55  ;;  %v2563_v51 = vmul.f32 %v2556_v2, %v6942_v59  ;;  %v4174_v27 = vclamps-f32 %v2551_v15, 1.0  ;;  %v7242_v54 = vadd.f32 1.0, %v2785_v13 }
 0x379   : > { %v2823_v22 = vmul.f32 %v2822_v20, %v7170_v21  ;;  %v2501_v0 = vadd.f32 %v4437_v33, %v2500_v43  ;;  %vm2502_vm9 = vweird.f32 %v7185_v48  ;;  %v2768_v26 = vmul.f32 %v2767_v4, %v7139_v23 }
 0x37a   : > { %v2858_v35 = vadd.f32 0.001143296, %v2857_v17  ;;  %v2486_v9 = vmul.f32 %v2485_v12, %v6992_v31  ;;  %vm2504_vm7 = vmor %vm2502_vm9, %vm2503_vm0  ;;  %v2509_v25 = vor.u32 1.1754944e-38, %v2508_v58  ;;  %v2806_v28 = vmul.f32 2.1237322e-06, %v7170_v21 }
 0x37b   : > { %v7250_v42 = vmul.f32 0.70710677, %v7238_v38  ;;  %v2505_v59 = vsel %vm2504_vm7, %v4437_v33, %v2501_v0  ;;  %vm2507_vm15 = vcmp.eq.f32.partialorder %v2506_v8, 8.507059e+37  ;;  %v2558_v47 = vadd.f32 1.0, %v4172_v18  ;;  %v3133_v33 = vpop.permute.xlu1 %3132 }
 0x37c   : > { %v2824_v61 = vadd.f32 0.4994258, %v2823_v22  ;;  %v2575_v2 = vrot.slane %v7232_v19, 7  ;;  %v7253_v40 = vadd.f32 1.0, %v3195_v36  ;;  %v2510_v48 = vsel %vm2507_vm15, %v2509_v25, %v2505_v59 }
 0x37d   : > { %4438 = vrcp.f32 %v7242_v54  ;;  %v2576_v37 = vrot.slane %v2563_v51, 6  ;;  %v2560_v31 = vadd.f32 1.0, %v4174_v27  ;;  %v2511_v15 = vmul.f32 %v2510_v48, %v2486_v9 }
 0x37e   : > { %v2859_v63 = vmul.f32 %v2858_v35, %v7228_v55  ;;  %v2769_v39 = vadd.f32 0.0036580483, %v2768_v26  ;;  %v2807_v50 = vadd.f32 0.00028619796, %v2806_v28  ;;  %v2825_v4 = vmul.f32 %v2824_v61, %v7170_v21 }
 0x37f   : > { %v3214_v30 = vmul.f32 %v7250_v42, %v7250_v42  ;;  %v4173_v1 = vclamps-f32 %v2511_v15, 1.0  ;;  %v2565_v36 = vmul.f32 %v2558_v47, %v7161_v45  ;;  %v2846_v19 = vmul.f32 2.1237322e-06, %v7228_v55 }
 0x380   : > { %v2860_v12 = vadd.f32 0.014752088, %v2859_v63  ;;  %v2581_v52 = vsel %vm770_vm14, %v6944_v24, %v2575_v2  ;;  %v3183_v8 = vadd.f32 0.18741608, %v7157_v56  ;;  %4440 = vrcp.f32 %v7253_v40 }
 0x381   : > { %v2265_v58 = vmul.f32 0.5, %v6973_v34  ;;  %v2582_v13 = vsel %vm330_vm1, %v2576_v37, %v2577_v7  ;;  %v2559_v20 = vadd.f32 1.0, %v4173_v1  ;;  %vm8583_vm3 = vcmask 654336  }
 0x382   : > { %v3149_v45 = vsel %vm8583_vm3, %v7216_v29, %v3133_v33  ;;  %v7272_v18 = vmin.f32 %v3214_v30, 16.0  ;;  %v2567_v17 = vmul.f32 %v2560_v31, %v6962_v60  ;;  %v2770_v56 = vmul.f32 %v2769_v39, %v7139_v23 }
 0x383   : > { %v7274_v43 = vpop.eup %4438  ;;  %v2808_v51 = vmul.f32 %v2807_v50, %v7170_v21  ;;  %v7279_v27 = vadd.f32 1.0, %v2825_v4  ;;  %v2566_v34 = vmul.f32 %v2559_v20, %v2265_v58  ;;  %v2578_v22 = vrot.slane %v2565_v36, 4 }
 0x384   : > { %v2847_v0 = vadd.f32 0.00028619796, %v2846_v19  ;;  %v2861_v26 = vmul.f32 %v2860_v12, %v7228_v55  ;;  %v2583_v35 = vsel %vm773_vm12, %v2581_v52, %v2582_v13  ;;  %vm8584_vm10 = vcmask 1041409   ;;  %v7309_v19 = vpop.permute.xlu2 %3136 }
 0x385   : > { %v2587_v29 = vsel %vm8584_vm10, %v6944_v24, %v2575_v2  ;;  %v2588_v60 = vsel %vm333_vm2, %v2576_v37, %v2577_v7  ;;  %v7289_v9 = vadd.f32 %v3149_v45, %v5090_v44  ;;  %v2579_v25 = vrot.slane %v2566_v34, 3 }
 0x386   : > { %v2788_v28 = vmul.f32 %v7274_v43, %v7242_v54  ;;  %v2862_v59 = vadd.f32 0.112945676, %v2861_v26  ;;  %v3227_v47 = vmul.f32 3.8918573e-05, %v7272_v18  ;;  %v7294_v61 = vpop.eup %4440  ;;  %v2580_v48 = vrot.slane %v2567_v17, 2 }
 0x387   : > { %8585 = vst [vmem:[#allocation23_spill] sm:$0xff] %v7289_v9  ;;  %v2771_v31 = vadd.f32 0.05243302, %v2770_v56  ;;  %v2809_v15 = vadd.f32 0.0036580483, %v2808_v51  ;;  %4442 = vrcp.f32 %v7279_v27  ;;  %vm8586_vm5 = vcmask 1042433  }
 0x388   : > { %v2589_v24 = vsel %vm8586_vm5, %v2587_v29, %v2588_v60  ;;  %vm8587_vm6 = vcmask 1044484   ;;  %vm8588_vm13 = vcmask 1045509   ;;  %v2848_v2 = vmul.f32 %v2847_v0, %v7228_v55 }
 0x389   : > { %v2584_v62 = vsel %vm8587_vm6, %v2578_v22, %v2579_v25  ;;  %v2590_v7 = vsel %vm8588_vm13, %v2578_v22, %v2579_v25  ;;  %vm8589_vm11 = vcmask 1045508   ;;  %vm8590_vm0 = vcmask 1046533  }
 0x38a   : > { %v2585_v37 = vsel %vm8589_vm11, %v2584_v62, %v2580_v48  ;;  %v2591_v63 = vsel %vm8590_vm0, %v2590_v7, %v2580_v48  ;;  %v2863_v39 = vmul.f32 %v2862_v59, %v7228_v55  ;;  %v7305_v50 = vmul.f32 0.70710677, %v7289_v9 }
 0x38b   : > { %v2586_v4 = vsel %vm8408_vm4, %v2583_v35, %v2585_v37  ;;  %vm8591_vm9 = vcmask 1044481   ;;  %v2789_v1 = vsub.f32 1.0, %v2788_v28  ;;  %v3228_v36 = vadd.f32 0.001143296, %v3227_v47 }
 0x38c   : > { %v2592_v30 = vsel %vm8591_vm9, %v2589_v24, %v2591_v63  ;;  %v2710_v12 = vmul.f32 0.5, %v6753_v57  ;;  %4175 = vst.msk [vmem:[%s5564_s16 + $0x4] ss:$8 sm:$0xf] %vm5533_vm8, %v2586_v4  ;;  %v2772_v58 = vmul.f32 %v2771_v31, %v7139_v23  ;;  %v2810_v13 = vmul.f32 %v2809_v15, %v7170_v21  ;;  %v7357_v24 = vpop.permute.xlu1 %2694 }
 0x38d   : > { %v2593_v52 = vrot.slane %v2592_v30, 1  ;;  %4176 = vst.msk [vmem:[%s5564_s16 + $0x4] ss:$8 sm:$0x70] %vm5533_vm8, %v2586_v4  ;;  %v2849_v20 = vadd.f32 0.0036580483, %v2848_v2  ;;  %v7320_v45 = vpop.eup %4442  ;;  %v3184_v56 = vmul.f32 %v3183_v8, %v6958_v14  ;;  %v3198_v34 = vmul.f32 %v7294_v61, %v7253_v40 }
 0x38e   : > { %v7323_v17 = vmul.f32 %v7149_v5, %v2710_v12  ;;  %v2864_v57 = vadd.f32 0.4994258, %v2863_v39  ;;  %vm8592_vm7 = vcmask 523264   ;;  %v2790_v22 = vmul.f32 %v7274_v43, %v2789_v1 }
 0x38f   : > { %4177 = vst.msk [vmem:[%s5564_s16 + $0x3c] ss:$8 sm:$0xf] %vm5533_vm8, %v2593_v52  ;;  %v3150_v51 = vsel %vm8592_vm7, %v3133_v33, %v7309_v19  ;;  %v3229_v5 = vmul.f32 %v3228_v36, %v7272_v18  ;;  %v3254_v14 = vmul.f32 %v7305_v50, %v7305_v50  ;;  %v2773_v8 = vadd.f32 0.18741608, %v2772_v58 }
 0x390   : > { %4178 = vst.msk [vmem:[%s5564_s16 + $0x3c] ss:$8 sm:$0x70] %vm5533_vm8, %v2593_v52  ;;  %vm2792_vm15 = vweird.f32 %v7242_v54  ;;  %v2811_v0 = vadd.f32 0.05243302, %v2810_v13  ;;  %v2865_v26 = vmul.f32 %v2864_v57, %v7228_v55  ;;  %vm2793_vm3 = vweird.f32 %v7274_v43 }
 0x391   : > { %v2828_v33 = vmul.f32 %v7320_v45, %v7279_v27  ;;  %v2850_v35 = vmul.f32 %v2849_v20, %v7228_v55  ;;  %v7347_v29 = vadd.f32 %v3150_v51, %v5090_v44  ;;  %v3185_v60 = vadd.f32 1.1283791, %v3184_v56  ;;  %vm7365_vm10 = vmor %vm2792_vm15, %vm2793_vm3 }
 0x392   : > { %v2796_v25 = vand.u32 2147483647, %v7242_v54  ;;  %v2798_v28 = vand.u32 2147483648, %v7242_v54  ;;  %v7351_v59 = vadd.f32 1.0, %v2865_v26  ;;  %v2791_v47 = vadd.f32 %v7274_v43, %v2790_v22 }
 0x393   : > { %8593 = vst [vmem:[#allocation20_spill] sm:$0xff] %v7347_v29  ;;  %v3216_v48 = vmul.f32 2.1237322e-06, %v7272_v18  ;;  %v3230_v31 = vadd.f32 0.014752088, %v3229_v5  ;;  %v7355_v15 = vmin.f32 %v3254_v14, 16.0  ;;  %v2774_v2 = vmul.f32 %v2773_v8, %v7139_v23 }
 0x394   : > { %v3199_v62 = vsub.f32 1.0, %v3198_v34  ;;  %v3206_v7 = vand.u32 2147483647, %v7253_v40  ;;  %v2812_v63 = vmul.f32 %v2811_v0, %v7170_v21  ;;  %v2829_v39 = vsub.f32 1.0, %v2828_v33 }
 0x395   : > { %v2851_v4 = vadd.f32 0.05243302, %v2850_v35  ;;  %4444 = vrcp.f32 %v7351_v59  ;;  %v7372_v30 = vmul.f32 0.70710677, %v7347_v29  ;;  %v3208_v1 = vand.u32 2147483648, %v7253_v40 }
 0x396   : > { %vm7375_vm5 = vcmp.eq.f32.partialorder %v2796_v25, 8.507059e+37  ;;  %v2799_v54 = vor.u32 1.1754944e-38, %v2798_v28  ;;  %v7381_v36 = vadd.f32 %v7357_v24, %v5090_v44  ;;  %v2795_v12 = vsel %vm7365_vm10, %v7274_v43, %v2791_v47 }
 0x397   : > { %v3217_v52 = vadd.f32 0.00028619796, %v3216_v48  ;;  %v3231_v58 = vmul.f32 %v3230_v31, %v7272_v18  ;;  %v3267_v13 = vmul.f32 3.8918573e-05, %v7355_v15  ;;  %v7389_v20 = vmul.f32 %v3185_v60, %v6910_v11 }
 0x398   : > { %v2775_v56 = vadd.f32 1.1283791, %v2774_v2  ;;  %v2813_v57 = vadd.f32 0.18741608, %v2812_v63  ;;  %v3256_v51 = vmul.f32 2.1237322e-06, %v7355_v15  ;;  %v3200_v34 = vmul.f32 %v7294_v61, %v3199_v62 }
 0x399   : > { %vm3202_vm6 = vweird.f32 %v7253_v40  ;;  %v2830_v22 = vmul.f32 %v7320_v45, %v2829_v39  ;;  %v2852_v43 = vmul.f32 %v2851_v4, %v7228_v55  ;;  %v3294_v5 = vmul.f32 %v7372_v30, %v7372_v30 }
 0x39a   : > { %v2800_v14 = vsel %vm7375_vm5, %v2799_v54, %v2795_v12  ;;  %vm2832_vm13 = vweird.f32 %v7279_v27  ;;  %vm2833_vm11 = vweird.f32 %v7320_v45  ;;  %v7403_v11 = vmul.f32 0.70710677, %v7381_v36 }
 0x39b   : > { %v7405_v8 = vpop.eup %4444  ;;  %v3218_v0 = vmul.f32 %v3217_v52, %v7272_v18  ;;  %v3232_v26 = vadd.f32 0.112945676, %v3231_v58  ;;  %v3268_v33 = vadd.f32 0.001143296, %v3267_v13  ;;  %v7408_v35 = vmin.f32 %v3294_v5, 16.0  ;;  %vm7421_vm9 = vmor %vm2832_vm13, %vm2833_vm11  ;;  %v2691_v5 = vpop.permute.xlu0 %2690 }
 0x39c   : > { %v2776_v60 = vmul.f32 %v2775_v56, %v7125_v32  ;;  %v2814_v25 = vmul.f32 %v2813_v57, %v7170_v21  ;;  %v2838_v28 = vand.u32 2147483648, %v7279_v27  ;;  %v3257_v47 = vadd.f32 0.00028619796, %v3256_v51 }
 0x39d   : > { %v2831_v48 = vadd.f32 %v7320_v45, %v2830_v22  ;;  %v2836_v31 = vand.u32 2147483647, %v7279_v27  ;;  %v2853_v62 = vadd.f32 0.18741608, %v2852_v43  ;;  %v3307_v2 = vmul.f32 3.8918573e-05, %v7408_v35 }
 0x39e   : > { %vm3203_vm0 = vweird.f32 %v7294_v61  ;;  %v2801_v37 = vmul.f32 %v2800_v14, %v2776_v60  ;;  %v2868_v21 = vmul.f32 %v7405_v8, %v7351_v59  ;;  %v2964_v63 = vmul.f32 %v7403_v11, %v7403_v11 }
 0x39f   : > { %v3201_v39 = vadd.f32 %v7294_v61, %v3200_v34  ;;  %v3219_v4 = vadd.f32 0.0036580483, %v3218_v0  ;;  %v3233_v23 = vmul.f32 %v3232_v26, %v7272_v18  ;;  %v3269_v54 = vmul.f32 %v3268_v33, %v7355_v15  ;;  %vm7445_vm3 = vmor %vm3202_vm6, %vm3203_vm0 }
 0x3a0   : > { %vm7432_vm7 = vcmp.eq.f32.partialorder %v3206_v7, 8.507059e+37  ;;  %v3209_v27 = vor.u32 1.1754944e-38, %v3208_v1  ;;  %v2815_v52 = vadd.f32 1.1283791, %v2814_v25  ;;  %v2839_v58 = vor.u32 1.1754944e-38, %v2838_v28 }
 0x3a1   : > { %v3258_v13 = vmul.f32 %v3257_v47, %v7355_v15  ;;  %v2835_v56 = vsel %vm7421_vm9, %v7320_v45, %v2831_v48  ;;  %vm2837_vm15 = vcmp.eq.f32.partialorder %v2836_v31, 8.507059e+37  ;;  %v2854_v57 = vmul.f32 %v2853_v62, %v7228_v55 }
 0x3a2   : > { %v3308_v51 = vadd.f32 0.001143296, %v3307_v2  ;;  %v2711_v1 = vmul.f32 0.5, %v7099_v16  ;;  %v4184_v34 = vclamps-f32 %v2801_v37, 1.0  ;;  %v2869_v22 = vsub.f32 1.0, %v2868_v21 }
 0x3a3   : > { %v7450_v43 = vmin.f32 %v2964_v63, 16.0  ;;  %v3205_v55 = vsel %vm7445_vm3, %v7294_v61, %v3201_v39  ;;  %v3220_v45 = vmul.f32 %v3219_v4, %v7272_v18  ;;  %v3234_v14 = vadd.f32 0.4994258, %v3233_v23 }
 0x3a4   : > { %v3270_v0 = vadd.f32 0.014752088, %v3269_v54  ;;  %v2816_v40 = vmul.f32 %v2815_v52, %v7131_v3  ;;  %v2840_v26 = vsel %vm2837_vm15, %v2839_v58, %v2835_v56  ;;  %v3259_v33 = vadd.f32 0.0036580483, %v3258_v13 }
 0x3a5   : > { %v2977_v60 = vmul.f32 3.8918573e-05, %v7450_v43  ;;  %v2855_v16 = vadd.f32 1.1283791, %v2854_v57  ;;  %v3309_v25 = vmul.f32 %v3308_v51, %v7408_v35  ;;  %v2966_v28 = vmul.f32 2.1237322e-06, %v7450_v43 }
 0x3a6   : > { %vm8604_vm10 = vcmask 392192   ;;  %v3005_v48 = vadd.f32 1.0, %v4184_v34  ;;  %v2870_v61 = vmul.f32 %v7405_v8, %v2869_v22  ;;  %vm8605_vm5 = vcmask 261120  }
 0x3a7   : > { %v2701_v47 = vsel %vm8604_vm10, %v7165_v49, %v2691_v5  ;;  %v2978_v31 = vadd.f32 0.001143296, %v2977_v60  ;;  %v2702_v62 = vsel %vm8605_vm5, %v2691_v5, %v7357_v24  ;;  %v2841_v3 = vmul.f32 %v2840_v26, %v2816_v40 }
 0x3a8   : > { %v3221_v2 = vadd.f32 0.05243302, %v3220_v45  ;;  %v3235_v37 = vmul.f32 %v3234_v14, %v7272_v18  ;;  %v3271_v32 = vmul.f32 %v3270_v0, %v7355_v15  ;;  %vm2872_vm6 = vweird.f32 %v7351_v59 }
 0x3a9   : > { %vm2873_vm13 = vweird.f32 %v7405_v8  ;;  %v2876_v21 = vand.u32 2147483647, %v7351_v59  ;;  %v3260_v49 = vmul.f32 %v3259_v33, %v7355_v15  ;;  %v3210_v63 = vsel %vm7432_vm7, %v3209_v27, %v3205_v55 }
 0x3aa   : > { %v2878_v39 = vand.u32 2147483648, %v7351_v59  ;;  %v3310_v24 = vadd.f32 0.014752088, %v3309_v25  ;;  %v2967_v4 = vadd.f32 0.00028619796, %v2966_v28  ;;  %v2871_v23 = vadd.f32 %v7405_v8, %v2870_v61  ;;  %vm7480_vm11 = vmor %vm2872_vm6, %vm2873_vm13 }
 0x3ab   : > { %v3296_v54 = vmul.f32 2.1237322e-06, %v7408_v35  ;;  %v2979_v52 = vmul.f32 %v2978_v31, %v7450_v43  ;;  %v7478_v58 = vadd.f32 %v2701_v47, %v5090_v44  ;;  %v3222_v12 = vmul.f32 %v3221_v2, %v7272_v18 }
 0x3ac   : > { %v7485_v27 = vadd.f32 1.0, %v3235_v37  ;;  %v3272_v59 = vadd.f32 0.112945676, %v3271_v32  ;;  %v7488_v56 = vadd.f32 %v2702_v62, %v5090_v44  ;;  %v4185_v57 = vclamps-f32 %v2841_v3, 1.0 }
 0x3ad   : > { %v3012_v51 = vmul.f32 %v3005_v48, %v2711_v1  ;;  %v3261_v7 = vadd.f32 0.05243302, %v3260_v49  ;;  %v2980_v34 = vadd.f32 0.014752088, %v2979_v52  ;;  %vm7490_vm0 = vcmp.eq.f32.partialorder %v2876_v21, 8.507059e+37 }
 0x3ae   : > { %v2879_v5 = vor.u32 1.1754944e-38, %v2878_v39  ;;  %v3311_v55 = vmul.f32 %v3310_v24, %v7408_v35  ;;  %v2968_v45 = vmul.f32 %v2967_v4, %v7450_v43  ;;  %v2875_v14 = vsel %vm7480_vm11, %v7405_v8, %v2871_v23 }
 0x3af   : > { %v3297_v0 = vadd.f32 0.00028619796, %v3296_v54  ;;  %v2981_v40 = vmul.f32 %v2980_v34, %v7450_v43  ;;  %v7501_v1 = vmul.f32 0.70710677, %v7478_v58  ;;  %v3223_v26 = vadd.f32 0.18741608, %v3222_v12 }
 0x3b0   : > { %4446 = vrcp.f32 %v7485_v27  ;;  %v3273_v33 = vmul.f32 %v3272_v59, %v7355_v15  ;;  %v7506_v60 = vmul.f32 0.70710677, %v7488_v56  ;;  %v7509_v25 = vmul.f32 %v3210_v63, %v7389_v20 }
 0x3b1   : > { %v2712_v28 = vmul.f32 0.5, %v7107_v53  ;;  %v2856_v8 = vmul.f32 %v2855_v16, %v7211_v10  ;;  %v3262_v47 = vmul.f32 %v3261_v7, %v7355_v15  ;;  %v3025_v48 = vrot.slane %v3012_v51, 7 }
 0x3b2   : > { %v2880_v61 = vsel %vm7490_vm0, %v2879_v5, %v2875_v14  ;;  %v3312_v31 = vadd.f32 0.112945676, %v3311_v55  ;;  %v2969_v62 = vadd.f32 0.0036580483, %v2968_v45  ;;  %v3006_v3 = vadd.f32 1.0, %v4185_v57 }
 0x3b3   : > { %v3298_v2 = vmul.f32 %v3297_v0, %v7408_v35  ;;  %v2982_v37 = vadd.f32 0.112945676, %v2981_v40  ;;  %v2884_v20 = vmul.f32 %v7501_v1, %v7501_v1  ;;  %v2713_v32 = vmul.f32 0.5, %v7198_v6 }
 0x3b4   : > { %v3224_v53 = vmul.f32 %v3223_v26, %v7272_v18  ;;  %v3274_v10 = vadd.f32 0.4994258, %v3273_v33  ;;  %v2924_v16 = vmul.f32 %v7506_v60, %v7506_v60  ;;  %v2881_v21 = vmul.f32 %v2880_v61, %v2856_v8 }
 0x3b5   : > { %v3263_v49 = vadd.f32 0.18741608, %v3262_v47  ;;  %v2983_v63 = vmul.f32 %v2982_v37, %v7450_v43  ;;  %v7524_v39 = vmin.f32 %v2884_v20, 16.0  ;;  %v7530_v4 = vsel %vm770_vm14, %v7323_v17, %v3025_v48 }
 0x3b6   : > { %v7526_v24 = vpop.eup %4446  ;;  %vm8610_vm9 = vcmask 1041409   ;;  %v3313_v18 = vmul.f32 %v3312_v31, %v7408_v35  ;;  %v2970_v23 = vmul.f32 %v2969_v62, %v7450_v43  ;;  %v7538_v54 = vmul.f32 %v3006_v3, %v2712_v28 }
 0x3b7   : > { %v7534_v6 = vsel %vm8610_vm9, %v7323_v17, %v3025_v48  ;;  %v3248_v52 = vand.u32 2147483648, %v7485_v27  ;;  %v3299_v13 = vadd.f32 0.0036580483, %v3298_v2  ;;  %v7542_v12 = vmul.f32 0.5, %v7381_v36  ;;  %v7563_v48 = vpop.permute.xlu1 %3144 }
 0x3b8   : > { %v3275_v59 = vmul.f32 %v3274_v10, %v7355_v15  ;;  %v2984_v57 = vadd.f32 0.4994258, %v2983_v63  ;;  %v2886_v51 = vmul.f32 2.1237322e-06, %v7524_v39  ;;  %v7546_v7 = vmin.f32 %v2924_v16, 16.0 }
 0x3b9   : > { %v4186_v17 = vclamps-f32 %v2881_v21, 1.0  ;;  %v3225_v34 = vadd.f32 1.1283791, %v3224_v53  ;;  %v3238_v22 = vmul.f32 %v7526_v24, %v7485_v27  ;;  %v3264_v5 = vmul.f32 %v3263_v49, %v7355_v15 }
 0x3ba   : > { %v3314_v55 = vadd.f32 0.4994258, %v3313_v18  ;;  %v2971_v45 = vadd.f32 0.05243302, %v2970_v23  ;;  %v2985_v14 = vmul.f32 %v2984_v57, %v7450_v43  ;;  %v2887_v36 = vadd.f32 0.00028619796, %v2886_v51 }
 0x3bb   : > { %v3026_v0 = vrot.slane %v7538_v54, 6  ;;  %v7554_v26 = vor.u32 1.1754944e-38, %v3248_v52  ;;  %v2897_v33 = vmul.f32 3.8918573e-05, %v7524_v39  ;;  %v7557_v28 = vadd.f32 1.0, %v3275_v59 }
 0x3bc   : > { %v3300_v8 = vmul.f32 %v3299_v13, %v7408_v35  ;;  %v7560_v47 = vadd.f32 1.0, %v2985_v14  ;;  %v2926_v15 = vmul.f32 2.1237322e-06, %v7546_v7  ;;  %v3007_v61 = vadd.f32 1.0, %v4186_v17 }
 0x3bd   : > { %v3239_v31 = vsub.f32 1.0, %v3238_v22  ;;  %v7565_v62 = vadd.f32 1.1283791, %v3264_v5  ;;  %v2888_v3 = vmul.f32 %v2887_v36, %v7524_v39  ;;  %v3315_v37 = vmul.f32 %v3314_v55, %v7408_v35 }
 0x3be   : > { %v2972_v20 = vmul.f32 %v2971_v45, %v7450_v43  ;;  %4448 = vrcp.f32 %v7560_v47  ;;  %v3288_v53 = vand.u32 2147483648, %v7557_v28  ;;  %v2898_v16 = vadd.f32 0.001143296, %v2897_v33 }
 0x3bf   : > { %v2889_v10 = vadd.f32 0.0036580483, %v2888_v3  ;;  %v7575_v21 = vadd.f32 %v7563_v48, %v5090_v44  ;;  %v7578_v49 = vmul.f32 %v3225_v34, %v7250_v42  ;;  %v3301_v63 = vadd.f32 0.05243302, %v3300_v8 }
 0x3c0   : > { %v2927_v18 = vadd.f32 0.00028619796, %v2926_v15  ;;  %v2937_v23 = vmul.f32 3.8918573e-05, %v7546_v7  ;;  %v7581_v52 = vmul.f32 %v3007_v61, %v2713_v32  ;;  %v3240_v13 = vmul.f32 %v7526_v24, %v3239_v31 }
 0x3c1   : > { %8611 = vst [vmem:[#allocation19_spill] sm:$0xff] %v7575_v21  ;;  %v2890_v59 = vmul.f32 %v2889_v10, %v7524_v39  ;;  %v2899_v57 = vmul.f32 %v2898_v16, %v7524_v39  ;;  %v7586_v51 = vadd.f32 1.0, %v3315_v37  ;;  %v2973_v17 = vadd.f32 0.18741608, %v2972_v20 }
 0x3c2   : > { %v2928_v22 = vmul.f32 %v2927_v18, %v7546_v7  ;;  %v2938_v5 = vadd.f32 0.001143296, %v2937_v23  ;;  %4450 = vrcp.f32 %v7557_v28  ;;  %v7591_v55 = vmul.f32 0.70710677, %v7575_v21 }
 0x3c3   : > { %v2891_v42 = vadd.f32 0.05243302, %v2890_v59  ;;  %v2900_v34 = vadd.f32 0.014752088, %v2899_v57  ;;  %v7593_v45 = vor.u32 1.1754944e-38, %v3288_v53  ;;  %v3302_v14 = vmul.f32 %v3301_v63, %v7408_v35 }
 0x3c4   : > { %v4449_v32 = vpop.eup %4448  ;;  %v2929_v36 = vadd.f32 0.0036580483, %v2928_v22  ;;  %v2939_v33 = vmul.f32 %v2938_v5, %v7546_v7  ;;  %v3027_v8 = vrot.slane %v7581_v52, 5  ;;  %v7599_v15 = vadd.f32 %v7526_v24, %v3240_v13 }
 0x3c5   : > { %v2988_v61 = vmul.f32 %v4449_v32, %v7560_v47  ;;  %v7603_v31 = vmul.f32 0.5, %v7478_v58  ;;  %v2892_v3 = vmul.f32 %v2891_v42, %v7524_v39  ;;  %v2901_v37 = vmul.f32 %v2900_v34, %v7524_v39 }
 0x3c6   : > { %v2930_v20 = vmul.f32 %v2929_v36, %v7546_v7  ;;  %v2940_v53 = vadd.f32 0.014752088, %v2939_v33  ;;  %vm3243_vm7 = vweird.f32 %v7526_v24  ;;  %4452 = vrcp.f32 %v7586_v51 }
 0x3c7   : > { %v2974_v10 = vmul.f32 %v2973_v17, %v7450_v43  ;;  %v2989_v16 = vsub.f32 1.0, %v2988_v61  ;;  %v3414_v63 = vmul.f32 %v7591_v55, %v7591_v55  ;;  %v2996_v58 = vand.u32 2147483647, %v7560_v47  ;;  %v3141_v61 = vpop.permute.xlu0 %3140 }
 0x3c8   : > { %v2902_v18 = vadd.f32 0.112945676, %v2901_v37  ;;  %v2931_v23 = vadd.f32 0.05243302, %v2930_v20  ;;  %v2941_v52 = vmul.f32 %v2940_v53, %v7546_v7  ;;  %v7615_v13 = vpop.eup %4450  ;;  %vm3242_vm15 = vweird.f32 %v7485_v27 }
 0x3c9   : > { %v2990_v59 = vmul.f32 %v4449_v32, %v2989_v16  ;;  %vm2993_vm3 = vweird.f32 %v4449_v32  ;;  %v2998_v57 = vand.u32 2147483648, %v7560_v47  ;;  %v7619_v22 = vmin.f32 %v3414_v63, 16.0  ;;  %vm7667_vm0 = vmor %vm3242_vm15, %vm3243_vm7 }
 0x3ca   : > { %v2893_v43 = vadd.f32 0.18741608, %v2892_v3  ;;  %v2903_v17 = vmul.f32 %v2902_v18, %v7524_v39  ;;  %v2932_v5 = vmul.f32 %v2931_v23, %v7546_v7  ;;  %v2942_v42 = vadd.f32 0.112945676, %v2941_v52 }
 0x3cb   : > { %v2975_v34 = vadd.f32 1.1283791, %v2974_v10  ;;  %v2991_v36 = vadd.f32 %v4449_v32, %v2990_v59  ;;  %vm2992_vm10 = vweird.f32 %v7560_v47  ;;  %v3416_v33 = vmul.f32 2.1237322e-06, %v7619_v22 }
 0x3cc   : > { %vm7625_vm5 = vmor %vm2992_vm10, %vm2993_vm3  ;;  %v2904_v20 = vadd.f32 0.4994258, %v2903_v17  ;;  %v2933_v53 = vadd.f32 0.18741608, %v2932_v5  ;;  %v2943_v3 = vmul.f32 %v2942_v42, %v7546_v7  ;;  %v3427_v16 = vmul.f32 3.8918573e-05, %v7619_v22  ;;  %v7631_v63 = vpop.eup %4452 }
 0x3cd   : > { %v2995_v10 = vsel %vm7625_vm5, %v4449_v32, %v2991_v36  ;;  %vm2997_vm6 = vcmp.eq.f32.partialorder %v2996_v58, 8.507059e+37  ;;  %v2999_v47 = vor.u32 1.1754944e-38, %v2998_v57  ;;  %v3417_v18 = vadd.f32 0.00028619796, %v3416_v33  ;;  %v7649_v36 = vpop.f32.mrf.mxu2 }
 0x3ce   : > { %v2894_v23 = vmul.f32 %v2893_v43, %v7524_v39  ;;  %v2905_v52 = vmul.f32 %v2904_v20, %v7524_v39  ;;  %v2944_v59 = vadd.f32 0.4994258, %v2943_v3  ;;  %vm8614_vm13 = vcmask 392192   ;;  %8616 = vst [vmem:[#allocation22_spill] sm:$0xff] %v7649_v36 }
 0x3cf   : > { %v3151_v17 = vsel %vm8614_vm13, %v7309_v19, %v3141_v61  ;;  %v3032_v5 = vsel %vm330_vm1, %v3026_v0, %v3027_v8  ;;  %v3000_v42 = vsel %vm2997_vm6, %v2999_v47, %v2995_v10  ;;  %v2934_v2 = vmul.f32 %v2933_v53, %v7546_v7 }
 0x3d0   : > { %vm8615_vm11 = vcmask 261120   ;;  %v7645_v58 = vadd.f32 1.0, %v2905_v52  ;;  %v2945_v57 = vmul.f32 %v2944_v59, %v7546_v7  ;;  %v3418_v39 = vmul.f32 %v3417_v18, %v7619_v22 }
 0x3d1   : > { %v3152_v32 = vsel %vm8615_vm11, %v3141_v61, %v7563_v48  ;;  %v3428_v43 = vadd.f32 0.001143296, %v3427_v16  ;;  %v7651_v19 = vadd.f32 0.18741608, %v3302_v14  ;;  %v2976_v33 = vmul.f32 %v2975_v34, %v7403_v11 }
 0x3d2   : > { %v7655_v37 = vmul.f32 0.5, %v7488_v56  ;;  %v7658_v20 = vadd.f32 %v3151_v17, %v5090_v44  ;;  %v3038_v48 = vsel %vm333_vm2, %v3026_v0, %v3027_v8  ;;  %v7673_v11 = vmul.f32 %v7615_v13, %v7557_v28 }
 0x3d3   : > { %v2895_v56 = vadd.f32 1.1283791, %v2894_v23  ;;  %4454 = vrcp.f32 %v7645_v58  ;;  %v7678_v54 = vsel %vm773_vm12, %v7530_v4, %v3032_v5  ;;  %v7684_v14 = vmul.f32 %v3000_v42, %v2976_v33 }
 0x3d4   : > { %8617 = vst [vmem:[#allocation26_spill] sm:$0xff] %v7658_v20  ;;  %v7687_v8 = vadd.f32 %v3152_v32, %v5090_v44  ;;  %v2935_v34 = vadd.f32 1.1283791, %v2934_v2  ;;  %v7689_v61 = vadd.f32 1.0, %v2945_v57  ;;  %v3419_v53 = vadd.f32 0.0036580483, %v3418_v39 }
 0x3d5   : > { %v3429_v3 = vmul.f32 %v3428_v43, %v7619_v22  ;;  %vm8621_vm9 = vcmask 1042433   ;;  %v2916_v16 = vand.u32 2147483647, %v7645_v58  ;;  %v2918_v10 = vand.u32 2147483648, %v7645_v58 }
 0x3d6   : > { %8620 = vst [vmem:[#allocation24_spill] sm:$0xff] %v7687_v8  ;;  %v7694_v4 = vsel %vm8621_vm9, %v7534_v6, %v3038_v48  ;;  %v7699_v47 = vmul.f32 0.70710677, %v7658_v20  ;;  %v7704_v2 = vmul.f32 %v7631_v63, %v7586_v51  ;;  %v2896_v23 = vmul.f32 %v2895_v56, %v7501_v1 }
 0x3d7   : > { %4456 = vrcp.f32 %v7689_v61  ;;  %vm2912_vm7 = vweird.f32 %v7645_v58  ;;  %v3430_v52 = vadd.f32 0.014752088, %v3429_v3  ;;  %v7713_v5 = vmul.f32 %v2935_v34, %v7506_v60 }
 0x3d8   : > { %v3334_v59 = vmul.f32 %v7699_v47, %v7699_v47  ;;  %v7716_v42 = vmul.f32 %v3419_v53, %v7619_v22  ;;  %v7719_v32 = vmul.f32 0.70710677, %v7687_v8  ;;  %v3581_v1 = vrot.slane %v7649_v36, 6  ;;  %v3569_v53 = vpop.f32.mrf.mxu2 }
 0x3d9   : > { %v4455_v17 = vpop.eup %4454  ;;  %vm7723_vm15 = vcmp.eq.f32.partialorder %v2916_v16, 8.507059e+37  ;;  %v2919_v43 = vor.u32 1.1754944e-38, %v2918_v10  ;;  %v3431_v33 = vmul.f32 %v3430_v52, %v7619_v22  ;;  %v3577_v56 = vrot.slane %v7649_v36, 4 }
 0x3da   : > { %8622 = vst [vmem:[#allocation25_spill] sm:$0xff] %v7719_v32  ;;  %v2908_v57 = vmul.f32 %v4455_v17, %v7645_v58  ;;  %v7728_v48 = vmin.f32 %v3334_v59, 16.0  ;;  %v3374_v60 = vmul.f32 %v7719_v32, %v7719_v32  ;;  %3582 = vrot.lane.b32.xlu1 %v3581_v1, %s4658_s17  ;;  %v3573_v34 = vrot.slane %v7649_v36, 2  ;;  %s8685_s17 = sld [smem:[#allocation9_spill]] }
 0x3db   : > { %vm2952_vm3 = vweird.f32 %v7689_v61  ;;  %v2956_v16 = vand.u32 2147483647, %v7689_v61  ;;  %v3432_v10 = vadd.f32 0.112945676, %v3431_v33  ;;  %v2958_v52 = vand.u32 2147483648, %v7689_v61  ;;  %3578 = vrot.lane.b32.xlu0 %v3577_v56, %s4660_s9 }
 0x3dc   : > { %v2909_v3 = vsub.f32 1.0, %v2908_v57  ;;  %v3336_v59 = vmul.f32 2.1237322e-06, %v7728_v48  ;;  %v3347_v40 = vmul.f32 3.8918573e-05, %v7728_v48  ;;  %v7740_v6 = vmin.f32 %v3374_v60, 16.0  ;;  %3574 = vrot.lane.b32.xlu2 %v3573_v34, %s4659_s6 }
 0x3dd   : > { %v4457_v0 = vpop.eup %4456  ;;  %vm2913_vm10 = vweird.f32 %v4455_v17  ;;  %v3593_v18 = vrot.slane %v3569_v53, 4  ;;  %v3433_v33 = vmul.f32 %v3432_v10, %v7619_v22  ;;  %v3589_v20 = vrot.slane %v3569_v53, 2  ;;  %s4232_s6 = smul.u32 28, %s4628_s24 }
 0x3de   : > { %v2910_v1 = vmul.f32 %v4455_v17, %v2909_v3  ;;  %v2948_v57 = vmul.f32 %v4457_v0, %v7689_v61  ;;  %v3337_v44 = vadd.f32 0.00028619796, %v3336_v59  ;;  %v3348_v36 = vadd.f32 0.001143296, %v3347_v40  ;;  %vm2914_vm5 = vmor %vm2912_vm7, %vm2913_vm10 }
 0x3df   : > { %v3376_v8 = vmul.f32 2.1237322e-06, %v7740_v6  ;;  %v3387_v60 = vmul.f32 3.8918573e-05, %v7740_v6  ;;  %v3434_v56 = vadd.f32 0.4994258, %v3433_v33  ;;  %vm2953_vm6 = vweird.f32 %v4457_v0  ;;  %s3965_s24 = sadd.s32 %s4232_s6, %s4231_s5 }
 0x3e0   : > { %v2911_v21 = vadd.f32 %v4455_v17, %v2910_v1  ;;  %v2949_v46 = vsub.f32 1.0, %v2948_v57  ;;  %v3338_v34 = vmul.f32 %v3337_v44, %v7728_v48  ;;  %v3349_v3 = vmul.f32 %v3348_v36, %v7728_v48  ;;  %vm2954_vm9 = vmor %vm2952_vm3, %vm2953_vm6  ;;  %s4233_s25 = smul.u32 56, %s8685_s17  ;;  %s4534_s6 = scalar_lea.hbm %s8686_s10, 896 }
 0x3e1   : > { %v3377_v32 = vadd.f32 0.00028619796, %v3376_v8  ;;  %v3388_v40 = vadd.f32 0.001143296, %v3387_v60  ;;  %v3435_v1 = vmul.f32 %v3434_v56, %v7619_v22  ;;  %vm7756_vm13 = vcmp.eq.f32.partialorder %v2956_v16, 8.507059e+37 }
 0x3e2   : > { %v2915_v29 = vsel %vm2914_vm5, %v4455_v17, %v2911_v21  ;;  %v2950_v10 = vmul.f32 %v4457_v0, %v2949_v46  ;;  %v3339_v57 = vadd.f32 0.0036580483, %v3338_v34  ;;  %v3350_v9 = vadd.f32 0.014752088, %v3349_v3  ;;  %3594 = vrot.lane.b32.xlu1 %v3593_v18, %s4663_s21  ;;  %s3967_s9 = sadd.s32 %s4233_s25, %s3965_s24 }
 0x3e3   : > { %v2920_v59 = vsel %vm7723_vm15, %v2919_v43, %v2915_v29  ;;  %v3389_v21 = vmul.f32 %v3388_v40, %v7740_v6  ;;  %vm3282_vm11 = vweird.f32 %v7557_v28  ;;  %v2959_v46 = vor.u32 1.1754944e-38, %v2958_v52  ;;  %3590 = vrot.lane.b32.xlu0 %v3589_v20, %s4662_s8 }
 0x3e4   : > { %v2921_v58 = vmul.f32 %v2920_v59, %v2896_v23  ;;  %v2951_v33 = vadd.f32 %v4457_v0, %v2950_v10  ;;  %v7764_v29 = vadd.f32 1.0, %v3435_v1  ;;  %v3351_v36 = vmul.f32 %v3350_v9, %v7728_v48  ;;  %3586 = vrot.lane.b32.xlu2 %v3569_v53, %s4661_s14  ;;  %s4226_s14 = sshll.u32 %s3967_s9, 3 }
 0x3e5   : > { %v3378_v8 = vmul.f32 %v3377_v32, %v7740_v6  ;;  %v3340_v17 = vmul.f32 %v3339_v57, %v7728_v48  ;;  %v3390_v39 = vadd.f32 0.014752088, %v3389_v21  ;;  %v8627_v43 = vsub.f32 1.0, %v7673_v11  ;;  %s3969_s7 = scalar_lea.hbm %s8686_s10, %s4226_s14 }
 0x3e6   : > { %v4187_v18 = vclamps-f32 %v2921_v58, 1.0  ;;  %v2955_v23 = vsel %vm2954_vm9, %v4457_v0, %v2951_v33  ;;  %vm3283_vm7 = vweird.f32 %v7615_v13  ;;  %4458 = vrcp.f32 %v7764_v29  ;;  %s3972_s18 = sshll.u32 %s3969_s7, 4  ;;  %s3973_s18 = int_to_ptr.hbm [resolvable:$true] %s3972_s18 }
 0x3e7   : > { %v3280_v61 = vmul.f32 %v7615_v13, %v8627_v43  ;;  %v2960_v9 = vsel %vm7756_vm13, %v2959_v46, %v2955_v23  ;;  %v3319_v20 = vsub.f32 1.0, %v7704_v2  ;;  %v8628_v32 = vclamps-f32 %v7684_v14, 1.0  ;;  %vm7814_vm5 = vmor %vm3282_vm11, %vm3283_vm7  ;;  %s4528_s15 = sshra.s32 %s3973_s18, 4  ;;  %s4529_s15 = int_to_ptr.hbm [resolvable:$true] %s4528_s15 }
 0x3e8   : > { %v2961_v0 = vmul.f32 %v2960_v9, %v7713_v5  ;;  %v3008_v16 = vadd.f32 1.0, %v4187_v18  ;;  %v3421_v52 = vadd.f32 0.05243302, %v7716_v42  ;;  %v3352_v11 = vadd.f32 0.112945676, %v3351_v36  ;;  %s4530_s27 = scalar_lea.hbm %s4529_s15, 112  ;;  %p4535_p13 = scmp.lt.s32.totalorder %s4529_s15, %s8686_s10 }
 0x3e9   : > { %v3010_v53 = vadd.f32 1.0, %v8628_v32  ;;  %v3379_v60 = vadd.f32 0.0036580483, %v3378_v8  ;;  %v3391_v56 = vmul.f32 %v3390_v39, %v7740_v6  ;;  %v3304_v34 = vmul.f32 %v7651_v19, %v7408_v35  ;;  %p4531_p7 = scmp.ne.s32.totalorder %s4529_s15, %s4530_s27  ;;  %p4536_p0 = scmp.lt.s32.totalorder %s4534_s6, %s4530_s27 }
 0x3ea   : > { %v4188_v3 = vclamps-f32 %v2961_v0, 1.0  ;;  %v3015_v10 = vmul.f32 %v3008_v16, %v7603_v31  ;;  %v3341_v40 = vadd.f32 0.05243302, %v3340_v17  ;;  %v8629_v2 = vand.u32 2147483647, %v7485_v27 }
 0x3eb   : > { %v3281_v5 = vadd.f32 %v7615_v13, %v3280_v61  ;;  %vm3322_vm3 = vweird.f32 %v7586_v51  ;;  %v3353_v42 = vmul.f32 %v3352_v11, %v7728_v48  ;;  %v3392_v59 = vadd.f32 0.112945676, %v3391_v56  ;;  %p4532_p10 = pnand %p4531_p7, %p4796_p11  ;;  %p4537_p1 = por %p4536_p0, %p4535_p13 }
 0x3ec   : > { %vm7789_vm15 = vcmp.eq.f32.partialorder %v8629_v2, 8.507059e+37  ;;  %v3320_v1 = vmul.f32 %v7631_v63, %v3319_v20  ;;  %v3326_v35 = vand.u32 2147483647, %v7586_v51  ;;  %v3017_v31 = vmul.f32 %v3010_v53, %v7542_v12  ;;  %v7799_v57 = vpop.eup %4458 }
 0x3ed   : > { %v3009_v19 = vadd.f32 1.0, %v4188_v3  ;;  %v8632_v27 = vand.u32 2147483647, %v7557_v28  ;;  %v3422_v33 = vmul.f32 %v3421_v52, %v7619_v22  ;;  %v3354_v44 = vadd.f32 0.4994258, %v3353_v42  ;;  %p4533_p12 = pneg %p4532_p10 }
 0x3ee   : > { %v3380_v21 = vmul.f32 %v3379_v60, %v7740_v6  ;;  %v3393_v46 = vmul.f32 %v3392_v59, %v7740_v6  ;;  %v3028_v8 = vrot.slane %v3015_v10, 4  ;;  %v3438_v18 = vmul.f32 %v7799_v57, %v7764_v29 }
 0x3ef   : > { %vm7803_vm10 = vcmp.eq.f32.partialorder %v8632_v27, 8.507059e+37  ;;  %v3016_v36 = vmul.f32 %v3009_v19, %v7655_v37  ;;  %v3342_v23 = vmul.f32 %v3341_v40, %v7728_v48  ;;  %v3285_v17 = vsel %vm7814_vm5, %v7615_v13, %v3281_v5  ;;  %p4538_p3 = pnand %p4537_p1, %p4533_p12 }
 0x3f0   : > { %v3328_v39 = vand.u32 2147483648, %v7586_v51  ;;  %v3355_v28 = vmul.f32 %v3354_v44, %v7728_v48  ;;  %v3394_v43 = vadd.f32 0.4994258, %v3393_v46  ;;  %v3321_v61 = vadd.f32 %v7631_v63, %v3320_v1 }
 0x3f1   : > { %vm3323_vm6 = vweird.f32 %v7631_v63  ;;  %v3029_v37 = vrot.slane %v3016_v36, 3  ;;  %v3439_v9 = vsub.f32 1.0, %v3438_v18  ;;  %v3030_v20 = vrot.slane %v3017_v31, 2 }
 0x3f2   : > { %v7829_v32 = vadd.f32 1.0, %v3355_v28  ;;  %v3381_v53 = vadd.f32 0.05243302, %v3380_v21  ;;  %v3395_v0 = vmul.f32 %v3394_v43, %v7740_v6  ;;  %vm8637_vm13 = vcmask 1044484   ;;  %vm7850_vm5 = vmor %vm3322_vm3, %vm3323_vm6 }
 0x3f3   : > { %v3034_v13 = vsel %vm8637_vm13, %v3028_v8, %v3029_v37  ;;  %vm8638_vm11 = vcmask 1045509   ;;  %v3423_v52 = vadd.f32 0.18741608, %v3422_v33  ;;  %v3343_v11 = vadd.f32 0.18741608, %v3342_v23 }
 0x3f4   : > { %v3040_v16 = vsel %vm8638_vm11, %v3028_v8, %v3029_v37  ;;  %vm8639_vm9 = vcmask 1045508   ;;  %vm8640_vm7 = vcmask 1046533   ;;  %v3440_v3 = vmul.f32 %v7799_v57, %v3439_v9 }
 0x3f5   : > { %v3035_v60 = vsel %vm8639_vm9, %v3034_v13, %v3030_v20  ;;  %v3041_v56 = vsel %vm8640_vm7, %v3040_v16, %v3030_v20  ;;  %4460 = vrcp.f32 %v7829_v32  ;;  %v8641_v10 = vsel %vm7667_vm0, %v7526_v24, %v7599_v15 }
 0x3f6   : > { %v3250_v40 = vsel %vm7789_vm15, %v7554_v26, %v8641_v10  ;;  %v3305_v2 = vadd.f32 1.1283791, %v3304_v34  ;;  %v3036_v7 = vsel %vm8408_vm4, %v7678_v54, %v3035_v60  ;;  %vm8644_vm13 = vcmask 1044481  }
 0x3f7   : > { %v3042_v24 = vsel %vm8644_vm13, %v7694_v4, %v3041_v56  ;;  %v3325_v15 = vsel %vm7850_vm5, %v7631_v63, %v3321_v61  ;;  %4190 = vst.msk [vmem:[%s5564_s16 + $0x5] ss:$8 sm:$0xf] %vm5533_vm8, %v3036_v7  ;;  %v3382_v51 = vmul.f32 %v3381_v53, %v7740_v6  ;;  %v7865_v34 = vadd.f32 1.0, %v3395_v0 }
 0x3f8   : > { %v3043_v26 = vrot.slane %v3042_v24, 1  ;;  %v3290_v54 = vsel %vm7803_vm10, %v7593_v45, %v3285_v17  ;;  %vm3327_vm0 = vcmp.eq.f32.partialorder %v3326_v35, 8.507059e+37  ;;  %v3329_v14 = vor.u32 1.1754944e-38, %v3328_v39  ;;  %4191 = vst.msk [vmem:[%s5564_s16 + $0x5] ss:$8 sm:$0x70] %vm5533_vm8, %v3036_v7 }
 0x3f9   : > { %v3424_v63 = vmul.f32 %v3423_v52, %v7619_v22  ;;  %v3441_v4 = vadd.f32 %v7799_v57, %v3440_v3  ;;  %vm3443_vm15 = vweird.f32 %v7799_v57  ;;  %v3344_v42 = vmul.f32 %v3343_v11, %v7728_v48  ;;  %v8647_v3 = vld [vmem:[#allocation23_spill] sm:$0xff] }
 0x3fa   : > { %4192 = vst.msk [vmem:[%s5564_s16 + $0x3d] ss:$8 sm:$0xf] %vm5533_vm8, %v3043_v26  ;;  %4462 = vrcp.f32 %v7865_v34  ;;  %v3251_v45 = vmul.f32 %v3250_v40, %v7578_v49  ;;  %v3266_v59 = vmul.f32 %v7565_v62, %v7305_v50  ;;  %v3330_v1 = vsel %vm3327_vm0, %v3329_v14, %v3325_v15  ;;  %v8648_v40 = vld [vmem:[#allocation20_spill] sm:$0xff]  ;;  %v8649_v15 = vld [vmem:[#allocation25_spill] sm:$0xff] }
 0x3fb   : > { %4193 = vst.msk [vmem:[%s5564_s16 + $0x3d] ss:$8 sm:$0x70] %vm5533_vm8, %v3043_v26  ;;  %v3448_v22 = vand.u32 2147483648, %v7764_v29  ;;  %v4461_v35 = vpop.eup %4460  ;;  %v3306_v31 = vmul.f32 %v3305_v2, %v7372_v30  ;;  %vm3442_vm3 = vweird.f32 %v7764_v29  ;;  %v3446_v48 = vand.u32 2147483647, %v7764_v29 }
 0x3fc   : > { %v3383_v19 = vadd.f32 0.18741608, %v3382_v51  ;;  %v3291_v27 = vmul.f32 %v3290_v54, %v3266_v59  ;;  %vm7891_vm10 = vmor %vm3442_vm3, %vm3443_vm15  ;;  %v3358_v50 = vmul.f32 %v4461_v35, %v7829_v32  ;;  %v3425_v58 = vadd.f32 1.1283791, %v3424_v63 }
 0x3fd   : > { %v3331_v62 = vmul.f32 %v3330_v1, %v3306_v31  ;;  %v3445_v33 = vsel %vm7891_vm10, %v7799_v57, %v3441_v4  ;;  %v3345_v44 = vadd.f32 1.1283791, %v3344_v42  ;;  %v4198_v30 = vclamps-f32 %v7509_v25, 1.0  ;;  %v8650_v4 = vld [vmem:[#allocation26_spill] sm:$0xff]  ;;  %v8651_v31 = vld [vmem:[#allocation21_spill] sm:$0xff] }
 0x3fe   : > { %v3449_v21 = vor.u32 1.1754944e-38, %v3448_v22  ;;  %v3359_v46 = vsub.f32 1.0, %v3358_v50  ;;  %v3366_v29 = vand.u32 2147483647, %v7829_v32  ;;  %v4199_v36 = vclamps-f32 %v3251_v45, 1.0 }
 0x3ff   : > { %vm3447_vm6 = vcmp.eq.f32.partialorder %v3446_v48, 8.507059e+37  ;;  %v3368_v8 = vand.u32 2147483648, %v7829_v32  ;;  %v3384_v18 = vmul.f32 %v3383_v19, %v7740_v6  ;;  %vm3363_vm11 = vweird.f32 %v4461_v35 }
 0x400   : > { %v4463_v12 = vpop.eup %4462  ;;  %v3450_v23 = vsel %vm3447_vm6, %v3449_v21, %v3445_v33  ;;  %v3360_v17 = vmul.f32 %v4461_v35, %v3359_v46  ;;  %v4200_v57 = vclamps-f32 %v3291_v27, 1.0  ;;  %v4201_v28 = vclamps-f32 %v3331_v62, 1.0  ;;  %v8652_v27 = vld [vmem:[#allocation19_spill] sm:$0xff] }
 0x401   : > { %v3398_v39 = vmul.f32 %v4463_v12, %v7865_v34  ;;  %v3426_v25 = vmul.f32 %v3425_v58, %v7591_v55  ;;  %v3346_v43 = vmul.f32 %v3345_v44, %v7699_v47  ;;  %vm3362_vm9 = vweird.f32 %v7829_v32  ;;  %v8653_v58 = vld [vmem:[#allocation24_spill] sm:$0xff] }
 0x402   : > { %v3361_v61 = vadd.f32 %v4461_v35, %v3360_v17  ;;  %vm3367_vm7 = vcmp.eq.f32.partialorder %v3366_v29, 8.507059e+37  ;;  %vm3364_vm5 = vmor %vm3362_vm9, %vm3363_vm11  ;;  %v3369_v20 = vor.u32 1.1754944e-38, %v3368_v8  ;;  %v3385_v6 = vadd.f32 1.1283791, %v3384_v18 }
 0x403   : > { %v3399_v37 = vsub.f32 1.0, %v3398_v39  ;;  %v3451_v9 = vmul.f32 %v3450_v23, %v3426_v25  ;;  %v3408_v53 = vand.u32 2147483648, %v7865_v34  ;;  %vm3403_vm13 = vweird.f32 %v4463_v12 }
 0x404   : > { %v3365_v0 = vsel %vm3364_vm5, %v4461_v35, %v3361_v61  ;;  %v3406_v16 = vand.u32 2147483647, %v7865_v34  ;;  %v3161_v55 = vmul.f32 0.5, %v7238_v38  ;;  %v3455_v52 = vadd.f32 1.0, %v4199_v36 }
 0x405   : > { %v3400_v13 = vmul.f32 %v4463_v12, %v3399_v37  ;;  %v3456_v47 = vadd.f32 1.0, %v4200_v57  ;;  %v3370_v11 = vsel %vm3367_vm7, %v3369_v20, %v3365_v0  ;;  %v3457_v60 = vadd.f32 1.0, %v4201_v28 }
 0x406   : > { %v3371_v32 = vmul.f32 %v3370_v11, %v3346_v43  ;;  %vm3402_vm0 = vweird.f32 %v7865_v34  ;;  %v3162_v10 = vmul.f32 0.5, %v8647_v3  ;;  %v3163_v2 = vmul.f32 0.5, %v8648_v40 }
 0x407   : > { %v3401_v56 = vadd.f32 %v4463_v12, %v3400_v13  ;;  %v4204_v5 = vclamps-f32 %v3451_v9, 1.0  ;;  %vm3404_vm15 = vmor %vm3402_vm0, %vm3403_vm13  ;;  %v3409_v7 = vor.u32 1.1754944e-38, %v3408_v53  ;;  %v3386_v26 = vmul.f32 %v3385_v6, %v8649_v15  ;;  %v8661_v53 = vld [vmem:[#allocation22_spill] sm:$0xff] }
 0x408   : > { %v4202_v24 = vclamps-f32 %v3371_v32, 1.0  ;;  %vm3407_vm3 = vcmp.eq.f32.partialorder %v3406_v16, 8.507059e+37  ;;  %v3462_v38 = vmul.f32 %v3455_v52, %v3161_v55  ;;  %v3463_v54 = vmul.f32 %v3456_v47, %v3162_v10  ;;  %v8663_v13 = vld [vmem:[#allocation18_spill] sm:$0xff] }
 0x409   : > { %v3405_v51 = vsel %vm3404_vm15, %v4463_v12, %v3401_v56  ;;  %v3464_v63 = vmul.f32 %v3457_v60, %v3163_v2  ;;  %v3164_v42 = vmul.f32 0.5, %v8650_v4  ;;  %v3454_v59 = vadd.f32 1.0, %v4198_v30 }
 0x40a   : > { %v3410_v14 = vsel %vm3407_vm3, %v3409_v7, %v3405_v51  ;;  %v3458_v34 = vadd.f32 1.0, %v4202_v24  ;;  %v3460_v1 = vadd.f32 1.0, %v4204_v5  ;;  %v3160_v48 = vmul.f32 0.5, %v8651_v31 }
 0x40b   : > { %v3411_v45 = vmul.f32 %v3410_v14, %v3386_v26  ;;  %v3475_v19 = vrot.slane %v3462_v38, 7  ;;  %v3166_v49 = vmul.f32 0.5, %v8652_v27  ;;  %v3476_v50 = vrot.slane %v3463_v54, 6 }
 0x40c   : > { %v3465_v35 = vmul.f32 %v3458_v34, %v3164_v42  ;;  %v3477_v62 = vrot.slane %v3464_v63, 5  ;;  %v3165_v33 = vmul.f32 0.5, %v8653_v58  ;;  %v3461_v21 = vmul.f32 %v3454_v59, %v3160_v48 }
 0x40d   : > { %v4203_v22 = vclamps-f32 %v3411_v45, 1.0  ;;  %v3467_v46 = vmul.f32 %v3460_v1, %v3166_v49  ;;  %vm8654_vm10 = vcmask 1041409   ;;  %vm8655_vm6 = vcmask 1044484  }
 0x40e   : > { %v3478_v12 = vrot.slane %v3465_v35, 4  ;;  %v3481_v30 = vsel %vm770_vm14, %v3461_v21, %v3475_v19  ;;  %v3487_v36 = vsel %vm8654_vm10, %v3461_v21, %v3475_v19  ;;  %v3482_v8 = vsel %vm330_vm1, %v3476_v50, %v3477_v62 }
 0x40f   : > { %v3459_v44 = vadd.f32 1.0, %v4203_v22  ;;  %v3488_v18 = vsel %vm333_vm2, %v3476_v50, %v3477_v62  ;;  %v3480_v17 = vrot.slane %v3467_v46, 2  ;;  %vm8656_vm11 = vcmask 1045509  }
 0x410   : > { %v3483_v28 = vsel %vm773_vm12, %v3481_v30, %v3482_v8  ;;  %vm8657_vm9 = vcmask 1042433   ;;  %vm8658_vm7 = vcmask 1045508   ;;  %vm8659_vm5 = vcmask 1046533  }
 0x411   : > { %v3466_v29 = vmul.f32 %v3459_v44, %v3165_v33  ;;  %v3489_v25 = vsel %vm8657_vm9, %v3487_v36, %v3488_v18  ;;  %vm8660_vm13 = vcmask 1044481   ;;  %vm8662_vm0 = vcmask 916480  }
 0x412   : > { %vm8664_vm15 = vcmask 523264   ;;  %vm8665_vm3 = vcmask 785408   ;;  %vm8666_vm10 = vcmask 654336  }
 0x413   : > { %v3479_v23 = vrot.slane %v3466_v29, 3 }
 0x415   : > { %v3484_v39 = vsel %vm8655_vm6, %v3478_v12, %v3479_v23  ;;  %v3490_v57 = vsel %vm8656_vm11, %v3478_v12, %v3479_v23  ;;  %vm8667_vm6 = vcmask 392192   ;;  %vm8668_vm11 = vcmask 261120  }
 0x416   : > { %v3485_v43 = vsel %vm8658_vm7, %v3484_v39, %v3480_v17  ;;  %v3491_v61 = vsel %vm8659_vm5, %v3490_v57, %v3480_v17 }
 0x417   : > { %v3486_v37 = vsel %vm8408_vm4, %v3483_v28, %v3485_v43  ;;  %v3492_v9 = vsel %vm8660_vm13, %v3489_v25, %v3491_v61 }
 0x418   : > { %v3493_v20 = vrot.slane %v3492_v9, 1  ;;  %4205 = vst.msk [vmem:[%s5564_s16 + $0x6] ss:$8 sm:$0xf] %vm5533_vm8, %v3486_v37 }
 0x419   : > { %4206 = vst.msk [vmem:[%s5564_s16 + $0x6] ss:$8 sm:$0x70] %vm5533_vm8, %v3486_v37 }
 0x41a   : > { %4207 = vst.msk [vmem:[%s5564_s16 + $0x3e] ss:$8 sm:$0xf] %vm5533_vm8, %v3493_v20 }
 0x41b   : > { %4208 = vst.msk [vmem:[%s5564_s16 + $0x3e] ss:$8 sm:$0x70] %vm5533_vm8, %v3493_v20 }
 0x436   : > { %v3575_v6 = vpop.permute.xlu2 %3574 }
 0x437   : > { %v3597_v0 = vsel %vm8662_vm0, %v8661_v53, %v3575_v6 }
 0x438   : > { %v7945_v16 = vadd.f32 %v3597_v0, %v8663_v13 }
 0x43a   : > { %v7948_v55 = vmul.f32 0.70710677, %v7945_v16 }
 0x43c   : > { %v3624_v52 = vmul.f32 %v7948_v55, %v7948_v55 }
 0x43e   : > { %v7952_v47 = vmin.f32 %v3624_v52, 16.0  ;;  %v3587_v32 = vpop.permute.xlu2 %3586 }
 0x440   : > { %v3637_v11 = vmul.f32 3.8918573e-05, %v7952_v47  ;;  %v3626_v58 = vmul.f32 2.1237322e-06, %v7952_v47 }
 0x442   : > { %v3638_v60 = vadd.f32 0.001143296, %v3637_v11  ;;  %v3627_v8 = vadd.f32 0.00028619796, %v3626_v58 }
 0x444   : > { %v3639_v10 = vmul.f32 %v3638_v60, %v7952_v47  ;;  %v3628_v9 = vmul.f32 %v3627_v8, %v7952_v47 }
 0x446   : > { %v3640_v51 = vadd.f32 0.014752088, %v3639_v10  ;;  %v3629_v10 = vadd.f32 0.0036580483, %v3628_v9 }
 0x448   : > { %v3641_v45 = vmul.f32 %v3640_v51, %v7952_v47 }
 0x44a   : > { %v3642_v35 = vadd.f32 0.112945676, %v3641_v45 }
 0x44c   : > { %v3583_v56 = vpop.permute.xlu1 %3582  ;;  %v3643_v33 = vmul.f32 %v3642_v35, %v7952_v47 }
 0x44d   : > { %v3600_v3 = vsel %vm8664_vm15, %v3583_v56, %v3587_v32  ;;  %v3579_v2 = vpop.permute.xlu0 %3578 }
 0x44e   : > { %v7958_v40 = vadd.f32 %v3600_v3, %v8663_v13  ;;  %v3598_v5 = vsel %vm8665_vm3, %v3575_v6, %v3579_v2  ;;  %v3599_v7 = vsel %vm8666_vm10, %v3579_v2, %v3583_v56  ;;  %v3644_v18 = vadd.f32 0.4994258, %v3643_v33 }
 0x44f   : > { %v7966_v15 = vadd.f32 %v3598_v5, %v8663_v13  ;;  %v7969_v26 = vadd.f32 %v3599_v7, %v8663_v13 }
 0x450   : > { %v7963_v24 = vmul.f32 0.70710677, %v7958_v40  ;;  %v3645_v20 = vmul.f32 %v3644_v18, %v7952_v47 }
 0x451   : > { %v7974_v54 = vmul.f32 0.70710677, %v7966_v15  ;;  %v7977_v14 = vmul.f32 0.70710677, %v7969_v26 }
 0x452   : > { %v3744_v38 = vmul.f32 %v7963_v24, %v7963_v24  ;;  %v8020_v2 = vadd.f32 1.0, %v3645_v20 }
 0x453   : > { %v3664_v4 = vmul.f32 %v7974_v54, %v7974_v54  ;;  %v3704_v42 = vmul.f32 %v7977_v14, %v7977_v14 }
 0x454   : > { %v7979_v63 = vmin.f32 %v3744_v38, 16.0  ;;  %v3595_v19 = vpop.permute.xlu1 %3594  ;;  %4464 = vrcp.f32 %v8020_v2  ;;  %vm3652_vm10 = vweird.f32 %v8020_v2 }
 0x455   : > { %v7987_v59 = vmin.f32 %v3664_v4, 16.0  ;;  %v7989_v1 = vmin.f32 %v3704_v42, 16.0  ;;  %v7995_v62 = vadd.f32 %v3595_v19, %v8663_v13  ;;  %v3591_v37 = vpop.permute.xlu0 %3590 }
 0x456   : > { %v3757_v34 = vmul.f32 3.8918573e-05, %v7979_v63  ;;  %v3746_v46 = vmul.f32 2.1237322e-06, %v7979_v63  ;;  %v3601_v52 = vsel %vm8667_vm6, %v3587_v32, %v3591_v37  ;;  %v3602_v38 = vsel %vm8668_vm11, %v3591_v37, %v3595_v19 }
 0x457   : > { %v3677_v31 = vmul.f32 3.8918573e-05, %v7987_v59  ;;  %v3717_v48 = vmul.f32 3.8918573e-05, %v7989_v1  ;;  %v8004_v36 = vmul.f32 0.70710677, %v7995_v62  ;;  %v8025_v4 = vadd.f32 %v3601_v52, %v8663_v13 }
 0x458   : > { %v3758_v22 = vadd.f32 0.001143296, %v3757_v34  ;;  %v3747_v39 = vadd.f32 0.00028619796, %v3746_v46  ;;  %v3666_v28 = vmul.f32 2.1237322e-06, %v7987_v59  ;;  %v8034_v19 = vadd.f32 %v3602_v38, %v8663_v13 }
 0x459   : > { %v3678_v49 = vadd.f32 0.001143296, %v3677_v31  ;;  %v3718_v21 = vadd.f32 0.001143296, %v3717_v48  ;;  %v3864_v61 = vmul.f32 %v8004_v36, %v8004_v36  ;;  %v3706_v6 = vmul.f32 2.1237322e-06, %v7989_v1 }
 0x45a   : > { %v3759_v27 = vmul.f32 %v3758_v22, %v7979_v63  ;;  %v3748_v11 = vmul.f32 %v3747_v39, %v7979_v63  ;;  %v3667_v60 = vadd.f32 0.00028619796, %v3666_v28  ;;  %v3630_v22 = vmul.f32 %v3629_v10, %v7952_v47  ;;  %v8049_v8 = vpop.eup %4464 }
 0x45b   : > { %v3679_v44 = vmul.f32 %v3678_v49, %v7987_v59  ;;  %v3719_v30 = vmul.f32 %v3718_v21, %v7989_v1  ;;  %v8018_v3 = vmin.f32 %v3864_v61, 16.0  ;;  %v3707_v7 = vadd.f32 0.00028619796, %v3706_v6 }
 0x45c   : > { %v3760_v50 = vadd.f32 0.014752088, %v3759_v27  ;;  %v3749_v32 = vadd.f32 0.0036580483, %v3748_v11  ;;  %v3668_v42 = vmul.f32 %v3667_v60, %v7987_v59  ;;  %v8039_v33 = vmul.f32 0.70710677, %v8025_v4 }
 0x45d   : > { %v3680_v12 = vadd.f32 0.014752088, %v3679_v44  ;;  %v3720_v17 = vadd.f32 0.014752088, %v3719_v30  ;;  %v3877_v34 = vmul.f32 3.8918573e-05, %v8018_v3  ;;  %v3708_v31 = vmul.f32 %v3707_v7, %v7989_v1 }
 0x45e   : > { %v3761_v29 = vmul.f32 %v3760_v50, %v7979_v63  ;;  %v3750_v49 = vmul.f32 %v3749_v32, %v7979_v63  ;;  %v3669_v50 = vadd.f32 0.0036580483, %v3668_v42  ;;  %v3631_v44 = vadd.f32 0.05243302, %v3630_v22 }
 0x45f   : > { %v3681_v23 = vmul.f32 %v3680_v12, %v7987_v59  ;;  %v3721_v43 = vmul.f32 %v3720_v17, %v7989_v1  ;;  %v3878_v27 = vadd.f32 0.001143296, %v3877_v34  ;;  %v3866_v46 = vmul.f32 2.1237322e-06, %v8018_v3 }
 0x460   : > { %v3762_v57 = vadd.f32 0.112945676, %v3761_v29  ;;  %v3709_v29 = vadd.f32 0.0036580483, %v3708_v31  ;;  %v8045_v30 = vmul.f32 0.70710677, %v8034_v19  ;;  %v3784_v13 = vmul.f32 %v8039_v33, %v8039_v33 }
 0x461   : > { %v3682_v25 = vadd.f32 0.112945676, %v3681_v23  ;;  %v3722_v53 = vadd.f32 0.112945676, %v3721_v43  ;;  %v3879_v12 = vmul.f32 %v3878_v27, %v8018_v3  ;;  %v3751_v23 = vadd.f32 0.05243302, %v3750_v49 }
 0x462   : > { %v3763_v0 = vmul.f32 %v3762_v57, %v7979_v63  ;;  %v3670_v17 = vmul.f32 %v3669_v50, %v7987_v59  ;;  %v3632_v57 = vmul.f32 %v3631_v44, %v7952_v47  ;;  %v8059_v43 = vmin.f32 %v3784_v13, 16.0 }
 0x463   : > { %v3683_v56 = vmul.f32 %v3682_v25, %v7987_v59  ;;  %v3723_v5 = vmul.f32 %v3722_v53, %v7989_v1  ;;  %v3880_v25 = vadd.f32 0.014752088, %v3879_v12  ;;  %v3648_v61 = vmul.f32 %v8049_v8, %v8020_v2 }
 0x464   : > { %v3764_v51 = vadd.f32 0.4994258, %v3763_v0  ;;  %v3710_v37 = vmul.f32 %v3709_v29, %v7989_v1  ;;  %v3867_v9 = vadd.f32 0.00028619796, %v3866_v46  ;;  %v3824_v20 = vmul.f32 %v8045_v30, %v8045_v30 }
 0x465   : > { %v3684_v45 = vadd.f32 0.4994258, %v3683_v56  ;;  %v3724_v35 = vadd.f32 0.4994258, %v3723_v5  ;;  %v3881_v6 = vmul.f32 %v3880_v25, %v8018_v3  ;;  %v3786_v53 = vmul.f32 2.1237322e-06, %v8059_v43 }
 0x466   : > { %v3765_v48 = vmul.f32 %v3764_v51, %v7979_v63  ;;  %v3797_v0 = vmul.f32 3.8918573e-05, %v8059_v43  ;;  %v3752_v52 = vmul.f32 %v3751_v23, %v7979_v63  ;;  %v3671_v11 = vadd.f32 0.05243302, %v3670_v17 }
 0x467   : > { %v3685_v58 = vmul.f32 %v3684_v45, %v7987_v59  ;;  %v3725_v21 = vmul.f32 %v3724_v35, %v7989_v1  ;;  %v8072_v60 = vmin.f32 %v3824_v20, 16.0  ;;  %v3882_v56 = vadd.f32 0.112945676, %v3881_v6 }
 0x468   : > { %v8051_v18 = vadd.f32 1.0, %v3765_v48  ;;  %v3787_v10 = vadd.f32 0.00028619796, %v3786_v53  ;;  %v3798_v5 = vadd.f32 0.001143296, %v3797_v0  ;;  %v3649_v51 = vsub.f32 1.0, %v3648_v61 }
 0x469   : > { %v8054_v39 = vadd.f32 1.0, %v3685_v58  ;;  %v8057_v28 = vadd.f32 1.0, %v3725_v21  ;;  %v3633_v7 = vadd.f32 0.18741608, %v3632_v57  ;;  %v3711_v38 = vadd.f32 0.05243302, %v3710_v37 }
 0x46a   : > { %4466 = vrcp.f32 %v8051_v18  ;;  %v3868_v32 = vmul.f32 %v3867_v9, %v8018_v3  ;;  %v3883_v42 = vmul.f32 %v3882_v56, %v8018_v3  ;;  %v3788_v45 = vmul.f32 %v3787_v10, %v8059_v43 }
 0x46b   : > { %4468 = vrcp.f32 %v8054_v39  ;;  %v3799_v34 = vmul.f32 %v3798_v5, %v8059_v43  ;;  %v3753_v22 = vadd.f32 0.18741608, %v3752_v52  ;;  %v3826_v35 = vmul.f32 2.1237322e-06, %v8072_v60 }
 0x46c   : > { %4470 = vrcp.f32 %v8057_v28  ;;  %v3837_v31 = vmul.f32 3.8918573e-05, %v8072_v60  ;;  %v3672_v27 = vmul.f32 %v3671_v11, %v7987_v59  ;;  %v3884_v49 = vadd.f32 0.4994258, %v3883_v42 }
 0x46d   : > { %v3634_v58 = vmul.f32 %v3633_v7, %v7952_v47  ;;  %v3658_v44 = vand.u32 2147483648, %v8020_v2  ;;  %v3712_v21 = vmul.f32 %v3711_v38, %v7989_v1  ;;  %v3800_v46 = vadd.f32 0.014752088, %v3799_v34 }
 0x46e   : > { %v3869_v12 = vadd.f32 0.0036580483, %v3868_v32  ;;  %v3885_v13 = vmul.f32 %v3884_v49, %v8018_v3  ;;  %v3789_v23 = vadd.f32 0.0036580483, %v3788_v45  ;;  %v3838_v17 = vadd.f32 0.001143296, %v3837_v31 }
 0x46f   : > { %v3650_v57 = vmul.f32 %v8049_v8, %v3649_v51  ;;  %v3754_v25 = vmul.f32 %v3753_v22, %v7979_v63  ;;  %v3801_v61 = vmul.f32 %v3800_v46, %v8059_v43  ;;  %v3827_v37 = vadd.f32 0.00028619796, %v3826_v35 }
 0x470   : > { %v8081_v48 = vpop.eup %4466  ;;  %v3673_v9 = vadd.f32 0.18741608, %v3672_v27  ;;  %v8097_v20 = vadd.f32 1.0, %v3885_v13  ;;  %v3839_v6 = vmul.f32 %v3838_v17, %v8072_v60  ;;  %v3713_v0 = vadd.f32 0.18741608, %v3712_v21 }
 0x471   : > { %v8084_v50 = vpop.eup %4468  ;;  %v3768_v47 = vmul.f32 %v8081_v48, %v8051_v18  ;;  %v3802_v11 = vadd.f32 0.112945676, %v3801_v61  ;;  %v8104_v63 = vadd.f32 1.1283791, %v3634_v58  ;;  %v3870_v56 = vmul.f32 %v3869_v12, %v8018_v3 }
 0x472   : > { %v8089_v29 = vpop.eup %4470  ;;  %v3688_v53 = vmul.f32 %v8084_v50, %v8054_v39  ;;  %4472 = vrcp.f32 %v8097_v20  ;;  %v3790_v10 = vmul.f32 %v3789_v23, %v8059_v43  ;;  %v3656_v5 = vand.u32 2147483647, %v8020_v2 }
 0x473   : > { %v3728_v52 = vmul.f32 %v8089_v29, %v8057_v28  ;;  %v8110_v7 = vor.u32 1.1754944e-38, %v3658_v44  ;;  %v3755_v51 = vadd.f32 1.1283791, %v3754_v25  ;;  %v3828_v38 = vmul.f32 %v3827_v37, %v8072_v60 }
 0x474   : > { %v8114_v32 = vadd.f32 %v8049_v8, %v3650_v57  ;;  %v3769_v42 = vsub.f32 1.0, %v3768_v47  ;;  %v3803_v45 = vmul.f32 %v3802_v11, %v8059_v43  ;;  %v3840_v34 = vadd.f32 0.014752088, %v3839_v6 }
 0x475   : > { %v3674_v22 = vmul.f32 %v3673_v9, %v7987_v59  ;;  %v3689_v35 = vsub.f32 1.0, %v3688_v53  ;;  %v3714_v31 = vmul.f32 %v3713_v0, %v7989_v1  ;;  %v3729_v27 = vsub.f32 1.0, %v3728_v52 }
 0x476   : > { %v3871_v49 = vadd.f32 0.05243302, %v3870_v56  ;;  %v3791_v58 = vadd.f32 0.05243302, %v3790_v10  ;;  %v3804_v44 = vadd.f32 0.4994258, %v3803_v45  ;;  %v3841_v21 = vmul.f32 %v3840_v34, %v8072_v60 }
 0x477   : > { %v8121_v46 = vmul.f32 %v3755_v51, %v7963_v24  ;;  %vm3772_vm9 = vweird.f32 %v8051_v18  ;;  %v3776_v12 = vand.u32 2147483647, %v8051_v18  ;;  %v3829_v13 = vadd.f32 0.0036580483, %v3828_v38 }
 0x478   : > { %v8125_v23 = vpop.eup %4472  ;;  %v3770_v59 = vmul.f32 %v8081_v48, %v3769_v42  ;;  %v3778_v1 = vand.u32 2147483648, %v8051_v18  ;;  %v3805_v17 = vmul.f32 %v3804_v44, %v8059_v43  ;;  %v3842_v57 = vadd.f32 0.112945676, %v3841_v21 }
 0x479   : > { %v3675_v25 = vadd.f32 1.1283791, %v3674_v22  ;;  %v3690_v61 = vmul.f32 %v8084_v50, %v3689_v35  ;;  %v3730_v24 = vmul.f32 %v8089_v29, %v3729_v27  ;;  %v3888_v37 = vmul.f32 %v8125_v23, %v8097_v20 }
 0x47a   : > { %v8134_v47 = vadd.f32 1.1283791, %v3714_v31  ;;  %v3872_v9 = vmul.f32 %v3871_v49, %v8018_v3  ;;  %v3792_v6 = vmul.f32 %v3791_v58, %v8059_v43  ;;  %v8138_v53 = vadd.f32 1.0, %v3805_v17 }
 0x47b   : > { %vm3773_vm7 = vweird.f32 %v8081_v48  ;;  %vm8141_vm5 = vcmp.eq.f32.partialorder %v3776_v12, 8.507059e+37  ;;  %vm3692_vm13 = vweird.f32 %v8054_v39  ;;  %v3830_v52 = vmul.f32 %v3829_v13, %v8072_v60 }
 0x47c   : > { %v3843_v11 = vmul.f32 %v3842_v57, %v8072_v60  ;;  %vm3653_vm0 = vweird.f32 %v8049_v8  ;;  %v3771_v56 = vadd.f32 %v8081_v48, %v3770_v59  ;;  %vm3693_vm15 = vweird.f32 %v8084_v50  ;;  %vm8161_vm6 = vmor %vm3772_vm9, %vm3773_vm7 }
 0x47d   : > { %v3696_v10 = vand.u32 2147483647, %v8054_v39  ;;  %4474 = vrcp.f32 %v8138_v53  ;;  %v3691_v51 = vadd.f32 %v8084_v50, %v3690_v61  ;;  %v3731_v38 = vadd.f32 %v8089_v29, %v3730_v24  ;;  %vm8169_vm11 = vmor %vm3692_vm13, %vm3693_vm15 }
 0x47e   : > { %vm3733_vm3 = vweird.f32 %v8089_v29  ;;  %v3889_v42 = vsub.f32 1.0, %v3888_v37  ;;  %v3698_v34 = vand.u32 2147483648, %v8054_v39  ;;  %v3738_v22 = vand.u32 2147483648, %v8057_v28 }
 0x47f   : > { %v3873_v35 = vadd.f32 0.18741608, %v3872_v9  ;;  %v3793_v31 = vadd.f32 0.18741608, %v3792_v6  ;;  %vm3732_vm4 = vweird.f32 %v8057_v28  ;;  %v3736_v18 = vand.u32 2147483647, %v8057_v28 }
 0x480   : > { %v3831_v49 = vadd.f32 0.05243302, %v3830_v52  ;;  %v3844_v58 = vadd.f32 0.4994258, %v3843_v11  ;;  %v3775_v44 = vsel %vm8161_vm6, %v8081_v48, %v3771_v56  ;;  %v3779_v21 = vor.u32 1.1754944e-38, %v3778_v1  ;;  %vm8185_vm7 = vmor %vm3732_vm4, %vm3733_vm3 }
 0x481   : > { %v3676_v12 = vmul.f32 %v3675_v25, %v7974_v54  ;;  %vm8179_vm9 = vcmp.eq.f32.partialorder %v3696_v10, 8.507059e+37  ;;  %v3695_v28 = vsel %vm8169_vm11, %v8084_v50, %v3691_v51  ;;  %v3735_v48 = vsel %vm8185_vm7, %v8089_v29, %v3731_v38 }
 0x482   : > { %v3890_v54 = vmul.f32 %v8125_v23, %v3889_v42  ;;  %v3845_v59 = vmul.f32 %v3844_v58, %v8072_v60  ;;  %v3699_v17 = vor.u32 1.1754944e-38, %v3698_v34  ;;  %v3739_v57 = vor.u32 1.1754944e-38, %v3738_v22 }
 0x483   : > { %v4475_v1 = vpop.eup %4474  ;;  %v3874_v25 = vmul.f32 %v3873_v35, %v8018_v3  ;;  %v3794_v61 = vmul.f32 %v3793_v31, %v8059_v43  ;;  %vm8201_vm4 = vcmp.eq.f32.partialorder %v3656_v5, 8.507059e+37  ;;  %vm3737_vm13 = vcmp.eq.f32.partialorder %v3736_v18, 8.507059e+37 }
 0x484   : > { %v3808_v50 = vmul.f32 %v4475_v1, %v8138_v53  ;;  %v3832_v29 = vmul.f32 %v3831_v49, %v8072_v60  ;;  %v8207_v37 = vadd.f32 1.0, %v3845_v59  ;;  %v3780_v9 = vsel %vm8141_vm5, %v3779_v21, %v3775_v44  ;;  %vm8224_vm5 = vmor %vm3652_vm10, %vm3653_vm0 }
 0x485   : > { %v3700_v3 = vsel %vm8179_vm9, %v3699_v17, %v3695_v28  ;;  %v3740_v43 = vsel %vm3737_vm13, %v3739_v57, %v3735_v48  ;;  %vm3892_vm15 = vweird.f32 %v8097_v20  ;;  %v3891_v5 = vadd.f32 %v8125_v23, %v3890_v54 }
 0x486   : > { %vm3893_vm3 = vweird.f32 %v8125_v23  ;;  %v3809_v6 = vsub.f32 1.0, %v3808_v50  ;;  %4476 = vrcp.f32 %v8207_v37  ;;  %v3896_v52 = vand.u32 2147483647, %v8097_v20 }
 0x487   : > { %v3898_v11 = vand.u32 2147483648, %v8097_v20  ;;  %v3795_v56 = vadd.f32 1.1283791, %v3794_v61  ;;  %v3818_v0 = vand.u32 2147483648, %v8138_v53  ;;  %vm3813_vm6 = vweird.f32 %v4475_v1  ;;  %vm8240_vm0 = vmor %vm3892_vm15, %vm3893_vm3 }
 0x488   : > { %v3810_v51 = vmul.f32 %v4475_v1, %v3809_v6  ;;  %v3816_v38 = vand.u32 2147483647, %v8138_v53  ;;  %v3833_v42 = vadd.f32 0.18741608, %v3832_v29  ;;  %v3655_v45 = vsel %vm8224_vm5, %v8049_v8, %v8114_v32 }
 0x489   : > { %v3781_v34 = vmul.f32 %v3780_v9, %v8121_v46  ;;  %v3716_v22 = vmul.f32 %v8134_v47, %v7977_v14  ;;  %v3875_v2 = vadd.f32 1.1283791, %v3874_v25  ;;  %v3701_v31 = vmul.f32 %v3700_v3, %v3676_v12 }
 0x48a   : > { %v3895_v27 = vsel %vm8240_vm0, %v8125_v23, %v3891_v5  ;;  %v3811_v8 = vadd.f32 %v4475_v1, %v3810_v51  ;;  %vm3812_vm10 = vweird.f32 %v8138_v53  ;;  %vm3897_vm11 = vcmp.eq.f32.partialorder %v3896_v52, 8.507059e+37 }
 0x48b   : > { %v3741_v32 = vmul.f32 %v3740_v43, %v3716_v22  ;;  %v3899_v14 = vor.u32 1.1754944e-38, %v3898_v11  ;;  %vm3814_vm9 = vmor %vm3812_vm10, %vm3813_vm6  ;;  %v3819_v46 = vor.u32 1.1754944e-38, %v3818_v0  ;;  %v3796_v20 = vmul.f32 %v3795_v56, %v8039_v33 }
 0x48c   : > { %v4477_v47 = vpop.eup %4476  ;;  %v3815_v18 = vsel %vm3814_vm9, %v4475_v1, %v3811_v8  ;;  %vm3817_vm7 = vcmp.eq.f32.partialorder %v3816_v38, 8.507059e+37  ;;  %v3834_v49 = vmul.f32 %v3833_v42, %v8072_v60  ;;  %v3660_v23 = vsel %vm8201_vm4, %v8110_v7, %v3655_v45 }
 0x48d   : > { %v3900_v58 = vsel %vm3897_vm11, %v3899_v14, %v3895_v27  ;;  %v3820_v53 = vsel %vm3817_vm7, %v3819_v46, %v3815_v18  ;;  %v3848_v44 = vmul.f32 %v4477_v47, %v8207_v37  ;;  %v3636_v21 = vmul.f32 %v8104_v63, %v7948_v55 }
 0x48e   : > { %v4214_v12 = vclamps-f32 %v3701_v31, 1.0  ;;  %v3876_v33 = vmul.f32 %v3875_v2, %v8004_v36  ;;  %v3821_v13 = vmul.f32 %v3820_v53, %v3796_v20  ;;  %v4216_v39 = vclamps-f32 %v3781_v34, 1.0 }
 0x48f   : > { %v4215_v28 = vclamps-f32 %v3741_v32, 1.0  ;;  %v3849_v60 = vsub.f32 1.0, %v3848_v44  ;;  %v3661_v48 = vmul.f32 %v3660_v23, %v3636_v21  ;;  %v3835_v59 = vadd.f32 1.1283791, %v3834_v49 }
 0x490   : > { %v3901_v54 = vmul.f32 %v3900_v58, %v3876_v33  ;;  %v3858_v7 = vand.u32 2147483648, %v8207_v37  ;;  %v4217_v1 = vclamps-f32 %v3821_v13, 1.0  ;;  %vm3853_vm4 = vweird.f32 %v4477_v47 }
 0x491   : > { %v3850_v17 = vmul.f32 %v4477_v47, %v3849_v60  ;;  %v3856_v55 = vand.u32 2147483647, %v8207_v37  ;;  %v3613_v63 = vmul.f32 0.5, %v7958_v40  ;;  %v3611_v36 = vmul.f32 0.5, %v7966_v15 }
 0x492   : > { %v3905_v57 = vadd.f32 1.0, %v4214_v12  ;;  %v3907_v25 = vadd.f32 1.0, %v4216_v39  ;;  %v3906_v61 = vadd.f32 1.0, %v4215_v28  ;;  %vm3852_vm13 = vweird.f32 %v8207_v37 }
 0x493   : > { %v3851_v24 = vadd.f32 %v4477_v47, %v3850_v17  ;;  %v4213_v50 = vclamps-f32 %v3661_v48, 1.0  ;;  %v3612_v29 = vmul.f32 0.5, %v7969_v26  ;;  %v4219_v9 = vclamps-f32 %v3901_v54, 1.0  ;;  %vm3854_vm15 = vmor %vm3852_vm13, %vm3853_vm4 }
 0x494   : > { %v3859_v3 = vor.u32 1.1754944e-38, %v3858_v7  ;;  %v3836_v43 = vmul.f32 %v3835_v59, %v8045_v30  ;;  %vm3857_vm3 = vcmp.eq.f32.partialorder %v3856_v55, 8.507059e+37  ;;  %v3908_v40 = vadd.f32 1.0, %v4217_v1 }
 0x495   : > { %v3855_v5 = vsel %vm3854_vm15, %v4477_v47, %v3851_v24  ;;  %v3912_v15 = vmul.f32 %v3905_v57, %v3611_v36  ;;  %v3914_v52 = vmul.f32 %v3907_v25, %v3613_v63  ;;  %v3913_v11 = vmul.f32 %v3906_v61, %v3612_v29 }
 0x496   : > { %v3860_v6 = vsel %vm3857_vm3, %v3859_v3, %v3855_v5  ;;  %v3614_v56 = vmul.f32 0.5, %v8025_v4  ;;  %v3904_v0 = vadd.f32 1.0, %v4213_v50  ;;  %v3910_v10 = vadd.f32 1.0, %v4219_v9 }
 0x497   : > { %v3861_v37 = vmul.f32 %v3860_v6, %v3836_v43  ;;  %v3610_v38 = vmul.f32 0.5, %v7945_v16  ;;  %v3925_v42 = vrot.slane %v3912_v15, 7  ;;  %v3616_v30 = vmul.f32 0.5, %v7995_v62 }
 0x498   : > { %v3915_v51 = vmul.f32 %v3908_v40, %v3614_v56  ;;  %v3927_v45 = vrot.slane %v3914_v52, 5  ;;  %v3926_v34 = vrot.slane %v3913_v11, 6  ;;  %v3615_v22 = vmul.f32 0.5, %v8034_v19 }
 0x499   : > { %v4218_v26 = vclamps-f32 %v3861_v37, 1.0  ;;  %v3911_v35 = vmul.f32 %v3904_v0, %v3610_v38  ;;  %v3917_v4 = vmul.f32 %v3910_v10, %v3616_v30  ;;  %vm8687_vm5 = vcmask 1041409  }
 0x49a   : > { %v3928_v27 = vrot.slane %v3915_v51, 4  ;;  %v3932_v16 = vsel %vm330_vm1, %v3926_v34, %v3927_v45  ;;  %v3938_v32 = vsel %vm333_vm2, %v3926_v34, %v3927_v45  ;;  %vm8688_vm6 = vcmask 1044484  }
 0x49b   : > { %v3909_v2 = vadd.f32 1.0, %v4218_v26  ;;  %v3931_v8 = vsel %vm770_vm14, %v3911_v35, %v3925_v42  ;;  %v3937_v62 = vsel %vm8687_vm5, %v3911_v35, %v3925_v42  ;;  %v3930_v14 = vrot.slane %v3917_v4, 2 }
 0x49c   : > { %vm8689_vm14 = vcmask 1045509   ;;  %v3933_v20 = vsel %vm773_vm12, %v3931_v8, %v3932_v16  ;;  %vm8690_vm1 = vcmask 1042433   ;;  %vm8691_vm0 = vcmask 1045508  }
 0x49d   : > { %v3916_v31 = vmul.f32 %v3909_v2, %v3615_v22  ;;  %v3939_v18 = vsel %vm8690_vm1, %v3937_v62, %v3938_v32  ;;  %vm8692_vm10 = vcmask 1046533   ;;  %vm8694_vm2 = vcmask 1043456  }
 0x49e   : > { %vm8695_vm11 = vcmask 1044481  }
 0x49f   : > { %v3929_v19 = vrot.slane %v3916_v31, 3 }
 0x4a1   : > { %v3934_v46 = vsel %vm8688_vm6, %v3928_v27, %v3929_v19  ;;  %v3940_v47 = vsel %vm8689_vm14, %v3928_v27, %v3929_v19 }
 0x4a2   : > { %v3935_v49 = vsel %vm8691_vm0, %v3934_v46, %v3930_v14  ;;  %v3941_v23 = vsel %vm8692_vm10, %v3940_v47, %v3930_v14 }
 0x4a3   : > { %v3936_v58 = vsel %vm8694_vm2, %v3933_v20, %v3935_v49  ;;  %v3942_v53 = vsel %vm8695_vm11, %v3939_v18, %v3941_v23 }
 0x4a4   : > { %v3943_v44 = vrot.slane %v3942_v53, 1  ;;  %4220 = vst.msk [vmem:[%s5564_s16 + $0x7] ss:$8 sm:$0xf] %vm5533_vm8, %v3936_v58 }
 0x4a5   : > { %4221 = vst.msk [vmem:[%s5564_s16 + $0x7] ss:$8 sm:$0x70] %vm5533_vm8, %v3936_v58 }
 0x4a6   : > { %4222 = vst.msk [vmem:[%s5564_s16 + $0x3f] ss:$8 sm:$0xf] %vm5533_vm8, %v3943_v44 }
 0x4a7   : > { %4223 = vst.msk [vmem:[%s5564_s16 + $0x3f] ss:$8 sm:$0x70] %vm5533_vm8, %v3943_v44 }
 0x4a8   : > { %4541 = shalt.err (!%p4538_p3)
}
 0x4a9   : > { %s4664_s11 = smov 896   ;;  %s4665_s16 = smov 1792  }
 0x4aa   : > { %s4666_s9 = smov 56  }
 0x4ab   : > { %4236 = dma.vmem_to_hbm [thread:$0]  (%p4796_p11), %s3971_s13, 1792, %s3973_s18, %s3953_s12, %s4664_s11, %s4665_s16, %s4666_s9  }
 0x4ac PF: > { %s8696_s14 = sld [smem:[#allocation8_spill]]  ;;  %p4247_p4 = scmp.ge.s32.totalorder %s4652_s30, 2 }
 0x4ae   : > { %p4243_p5 = pnand %p4247_p4, %p4804_p2 }
 0x4b0   : > { %p4244_p8 = pneg %p4243_p5 }
 0x4b2   : > { %s3987_s21 = sand.u32 1, %s8696_s14  }
 0x4b3   : > { %s3988_s7 = scalar_lea.sflag [#allocation4], %s3987_s21 }
 0x4b4   : > { %4599 = dma.done.wait (%p4244_p8), %s3988_s7, 1792  }
 0x4b5   : > { %4601 = vsyncadd (%p4244_p8), %s3988_s7, 4294965504  ;;  %s21_s30 = sadd.s32 1, %s4652_s30   ;;  %s8699_s13 = sld [smem:[#allocation17_spill]] }
 0x4b6   : > { %p8317_p9 = scmp.ge.s32.totalorder %s21_s30, 10   ;;  %s8700_s24 = sld [smem:[#allocation10_spill]] }
 0x4b7   : > { %s8701_s29 = sld [smem:[#allocation11_spill]]  ;;  %s8705_s18 = smov %s4608_s19 }
 0x4b8   : > { %s8702_s27 = sld [smem:[#allocation12_spill]]  ;;  %s8706_s19 = smov %s4612_s20 }
 0x4b9   : > { %s8703_s12 = sld [smem:[#allocation13_spill]]  ;;  %s8707_s20 = smov %s4814_s26 }
 0x4ba   : > { %s8704_s5 = sld [smem:[#allocation14_spill]]  ;;  %s8708_s21 = smov %s4620_s22 }
 0x4bb   : > { %s8709_s22 = smov %s4624_s23  ;;  %s8710_s23 = smov %s8699_s13 }
 0x4bc   : > { %s8711_s25 = smov %s4644_s28  ;;  %20 = sbr.rel (!%p8317_p9) target bundleno = 12 (0xc), region = 106 }
 0x4bd   : > { %s8712_s26 = smov %s8701_s29 }
 0x4bf   : > { %s8713_s28 = smov %s8703_s12 }
 0x4c0   : > { %s8714_s29 = smov %s8704_s5 }
 0x4c1   :  { %3994 = vsyncpa [#allocation3], 1 }
 0x4c2   :  { %3996 = vsyncpa [#allocation3 + $0x1], 1 }
 0x4c3   :  { %3997 = vsyncpa [#allocation4], 1 }
 0x4c4   :  { %3999 = vsyncpa [#allocation4 + $0x1], 1 }

</bundles_post_ra>
